<compile_context>
chip_gen: v7x
topology: tpu7x:2x2x1
jax: 0.10.0
libtpu: 0.0.40
codegen_flags: <defaults>
</compile_context>

<pallas_src>
import math
import numpy as np
import jax
import jax.numpy as jnp
from jax.experimental import pallas as pl
from jax.experimental.pallas import tpu as pltpu

LN_EPS = 1e-5
NEG_INF = -1e9
LANES = 128  # lane width of the packed parameter slab


# ------------------------- packed-parameter layout ----------------------------

def packed_layout(C, hidden, num_heads, n_attn_tokens):
    """Row/col offsets of every parameter inside the single packed f32 operand."""
    assert 4 * C <= LANES and hidden <= LANES and n_attn_tokens <= LANES
    heads_per_band = max(1, min(num_heads, LANES // n_attn_tokens))
    n_bands = -(-num_heads // heads_per_band)
    vec_row = 3 * C                                   # 4 rows of packed vectors
    bias_row = ((vec_row + 4 + 7) // 8) * 8           # 8-row aligned bias slab
    total_rows = bias_row + n_bands * n_attn_tokens
    return dict(vec_row=vec_row, bias_row=bias_row,
                heads_per_band=heads_per_band, total_rows=total_rows)


# ----------------------------- fused Pallas kernel -----------------------------

def make_fused_kernel(C, num_heads, hidden, n_attn_tokens, layout):
    """Whole Swin block: LN1, windowed multi-head cross attention (+rel-pos bias),
    token restoration, residual, LN2, MLP(GELU), residual -- one grid-less call."""
    hd = C // num_heads
    NT = n_attn_tokens          # kept (stride-2) tokens over all windows/batch = 64
    BL = 2 * NT                 # all tokens = 128
    vr = layout["vec_row"]
    br = layout["bias_row"]
    hpb = layout["heads_per_band"]

    def kernel(x_ref, y_ref, pk_ref, o_ref):
        f32 = jnp.float32

        def layernorm(v, g, b):
            mu = jnp.mean(v, axis=-1, keepdims=True)
            c = v - mu
            var = jnp.mean(c * c, axis=-1, keepdims=True)
            return c * jax.lax.rsqrt(var + LN_EPS) * g + b

        # ---- static slices out of the single packed parameter operand (1 DMA) ----
        wq   = pk_ref[0:C, 0:C]                        # qk scale pre-folded
        wkv  = pk_ref[0:C, C:3 * C]
        wp   = pk_ref[0:C, 3 * C:4 * C]
        w1   = pk_ref[C:2 * C, 0:hidden]
        w2t  = pk_ref[2 * C:3 * C, 0:hidden]           # fc2 weight, stored transposed
        ln1g = pk_ref[vr:vr + 1, 0:C]
        ln1b = pk_ref[vr:vr + 1, C:2 * C]
        ln2g = pk_ref[vr:vr + 1, 2 * C:3 * C]
        ln2b = pk_ref[vr:vr + 1, 3 * C:4 * C]
        bq   = pk_ref[vr + 1:vr + 2, 0:C]
        bkv  = pk_ref[vr + 1:vr + 2, C:3 * C]
        bp   = pk_ref[vr + 1:vr + 2, 3 * C:4 * C]
        b1   = pk_ref[vr + 2:vr + 3, 0:hidden]
        b2   = pk_ref[vr + 3:vr + 4, 0:C]

        x_full = x_ref[...].astype(f32)                # (BL, C) natural (b,h,w) order
        y_full = y_ref[...].astype(f32)

        # ---- stride-2 token subsample (kept tokens == even flat rows) as a 0/1
        #      selection matmul built from iota: no gathers / strided relayouts ----
        mi = jax.lax.broadcasted_iota(jnp.int32, (NT, BL), 0)
        ti = jax.lax.broadcasted_iota(jnp.int32, (NT, BL), 1)
        sel_even = jnp.where(ti == 2 * mi, f32(1.0), f32(0.0))        # (NT, BL)
        xe = jnp.dot(sel_even, x_full, preferred_element_type=f32)     # (NT, C)
        ye = jnp.dot(sel_even, y_full, preferred_element_type=f32)

        xn = layernorm(xe, ln1g, ln1b)                 # norm1 shared between x and y
        yn = layernorm(ye, ln1g, ln1b)

        # ---- full-width projections: 3 MXU passes instead of 12 per-head ones ----
        q  = jnp.dot(xn, wq, preferred_element_type=f32) + bq          # (NT, C)
        kv = jnp.dot(yn, wkv, preferred_element_type=f32) + bkv        # (NT, 2C)
        k = kv[:, 0:C]
        v = kv[:, C:2 * C]

        # ---- per-head attention over all windows at once; the packed bias slab
        #      carries rel-pos bias on same-window pairs and -1e9 elsewhere, so the
        #      row softmax is exactly the per-window softmax ----
        ctx_parts = []
        for h in range(num_heads):
            rr = br + (h // hpb) * NT
            cc = (h % hpb) * NT
            bias_h = pk_ref[rr:rr + NT, cc:cc + NT]                    # (NT, NT)
            qh = q[:, h * hd:(h + 1) * hd]
            kh = k[:, h * hd:(h + 1) * hd]
            vh = v[:, h * hd:(h + 1) * hd]
            s = jnp.einsum('nd,md->nm', qh, kh,
                           preferred_element_type=f32) + bias_h        # (NT, NT)
            s = s - jnp.max(s, axis=-1, keepdims=True)
            e = jnp.exp(s)
            # off-VALU reciprocal; scale the (NT, hd) context, not the (NT, NT) probs
            rinv = pl.reciprocal(jnp.sum(e, axis=-1, keepdims=True), approx=True)
            ctx_parts.append(jnp.dot(e, vh, preferred_element_type=f32) * rinv)
        ctx = jnp.concatenate(ctx_parts, axis=-1)                       # (NT, C)
        attn = jnp.dot(ctx, wp, preferred_element_type=f32) + bp        # (NT, C)

        # ---- token restoration + first residual: each attended (kept) token's
        #      output is shared with its dropped stride-2 partner; duplication into
        #      natural token order is another 0/1 matmul, so no output re-gather. ----
        # TODO(synk): the reference's post-attention view(-1, ws, ws, C) is shape-
        # inconsistent after the stride-2 halving; this duplication is the documented
        # deviation (same behaviour as the previously accepted version).
        tj = jax.lax.broadcasted_iota(jnp.int32, (BL, NT), 0)
        mj = jax.lax.broadcasted_iota(jnp.int32, (BL, NT), 1)
        d = tj - 2 * mj
        dup = jnp.where(jnp.logical_and(d >= 0, d <= 1), f32(1.0), f32(0.0))  # (BL, NT)
        hres = x_full + jnp.dot(dup, attn, preferred_element_type=f32)  # (BL, C)

        # ---- norm2 + MLP (exact erf GELU, matching nn.GELU) + second residual ----
        hn = layernorm(hres, ln2g, ln2b)
        m1 = jnp.dot(hn, w1, preferred_element_type=f32) + b1           # (BL, hidden)
        m1 = 0.5 * m1 * (1.0 + jax.lax.erf(m1 * f32(1.0 / math.sqrt(2.0))))
        m2 = jnp.einsum('nh,ch->nc', m1, w2t,
                        preferred_element_type=f32) + b2                # (BL, C)
        o_ref[...] = (hres + m2).astype(o_ref.dtype)

    return kernel


# ------------------------------ JAX wrapper ----------------------------------

def swin_element_forward(x, y, prep, cfg):
    """x, y: (B, L, C) with L = H*W (row-major). prep = prepare_params(...).
    Only free reshapes around a single pallas_call (no gathers / transposes)."""
    B, L, C = x.shape
    assert B * L == 2 * prep["n_attn_tokens"]
    kernel = make_fused_kernel(C, cfg["num_heads"], prep["hidden"],
                               prep["n_attn_tokens"], prep["layout"])
    out = pl.pallas_call(
        kernel,
        out_shape=jax.ShapeDtypeStruct((B * L, C), x.dtype),
        compiler_params=pltpu.CompilerParams(vmem_limit_bytes=32 * 1024 * 1024),
    )(x.reshape(B * L, C), y.reshape(B * L, C), prep["packed"])
    return out.reshape(B, L, C)


# ----------------------- one-time parameter preparation -----------------------

def compute_relative_position_index(ws):
    coords = np.stack(np.meshgrid(np.arange(ws), np.arange(ws), indexing="ij"))
    coords_flat = coords.reshape(2, -1)
    rel = coords_flat[:, :, None] - coords_flat[:, None, :]
    rel = rel.transpose(1, 2, 0).astype(np.int64)
    rel[:, :, 0] += ws - 1
    rel[:, :, 1] += ws - 1
    rel[:, :, 0] *= 2 * ws - 1
    return rel.sum(-1).astype(np.int32)                                # (ws^2, ws^2)


def prepare_params(params, cfg, batch):
    """Hoist everything input-independent: relative-position-bias gather + window
    mask expansion, qk-scale folding, fc2 transpose, and packing of ALL parameters
    into one contiguous f32 operand."""
    H, W = cfg["input_resolution"]
    ws = cfg["window_size"]
    nh = cfg["num_heads"]
    C = int(params["wq"].shape[0])
    hidden = int(params["w1"].shape[1])
    hd = C // nh
    scale = hd ** (-0.5)
    assert ws % 2 == 0 and W % 2 == 0, "kept-token == even-row mapping needs even ws/W"

    L = H * W
    N = (ws * ws) // 2                       # tokens per window after stride-2
    Nt = batch * (H // ws) * (W // ws) * N   # kept tokens overall (= batch*L//2)
    assert Nt == batch * L // 2

    # --- relative-position bias (reference crop [:, :N, :N]) expanded onto the
    #     kernel's kept-token ordering, -1e9 on cross-window pairs ---
    rel_index = compute_relative_position_index(ws)
    table = np.asarray(params["rel_bias_table"], np.float32)           # ((2ws-1)^2, nh)
    bias = table[rel_index.reshape(-1)].reshape(ws * ws, ws * ws, nh).transpose(2, 0, 1)
    # NOTE: the reference module crops the bias with [:, :N, :N] after the stride-2
    # subsample; reproduced exactly to keep the original forward semantics.
    bias = bias[:, :N, :N]
    t = 2 * np.arange(Nt)                    # kept token m sits at flat row 2*m
    b_ = t // L
    hh = (t % L) // W
    ww = t % W
    win = (b_ * (H // ws) + hh // ws) * (W // ws) + ww // ws
    u = (hh % ws) * (ws // 2) + (ww % ws) // 2
    same = win[:, None] == win[None, :]
    biasmask = np.where(same[None], bias[:, u[:, None], u[None, :]],
                        np.float32(NEG_INF)).astype(np.float32)        # (nh, Nt, Nt)

    # --- pack every parameter + the bias/mask slab into ONE f32 operand ---
    lay = packed_layout(C, hidden, nh, Nt)
    pk = np.zeros((lay["total_rows"], LANES), np.float32)
    pk[0:C, 0:C]              = np.asarray(params["wq"], np.float32) * scale
    pk[0:C, C:3 * C]          = np.asarray(params["wkv"], np.float32)
    pk[0:C, 3 * C:4 * C]      = np.asarray(params["wproj"], np.float32)
    pk[C:2 * C, 0:hidden]     = np.asarray(params["w1"], np.float32)
    pk[2 * C:3 * C, 0:hidden] = np.asarray(params["w2"], np.float32).T
    vr = lay["vec_row"]
    pk[vr, 0:C]              = np.asarray(params["ln1_g"], np.float32)
    pk[vr, C:2 * C]          = np.asarray(params["ln1_b"], np.float32)
    pk[vr, 2 * C:3 * C]      = np.asarray(params["ln2_g"], np.float32)
    pk[vr, 3 * C:4 * C]      = np.asarray(params["ln2_b"], np.float32)
    pk[vr + 1, 0:C]          = np.asarray(params["bq"], np.float32) * scale
    pk[vr + 1, C:3 * C]      = np.asarray(params["bkv"], np.float32)
    pk[vr + 1, 3 * C:4 * C]  = np.asarray(params["bproj"], np.float32)
    pk[vr + 2, 0:hidden]     = np.asarray(params["b1"], np.float32)
    pk[vr + 3, 0:C]          = np.asarray(params["b2"], np.float32)
    for h in range(nh):
        rr = lay["bias_row"] + (h // lay["heads_per_band"]) * Nt
        cc = (h % lay["heads_per_band"]) * Nt
        pk[rr:rr + Nt, cc:cc + Nt] = biasmask[h]

    return dict(packed=jnp.asarray(pk), layout=lay, n_attn_tokens=Nt, hidden=hidden)


def init_params(key, C, num_heads, window_size, mlp_ratio=4.0):
    hidden = int(C * mlp_ratio)
    ks = jax.random.split(key, 11)

    def nrm(k, shape, std=0.02):
        return (std * jax.random.normal(k, shape)).astype(jnp.float32)

    return dict(
        ln1_g=jnp.ones((C,), jnp.float32), ln1_b=jnp.zeros((C,), jnp.float32),
        ln2_g=jnp.ones((C,), jnp.float32), ln2_b=jnp.zeros((C,), jnp.float32),
        wq=nrm(ks[0], (C, C)),         bq=nrm(ks[1], (C,)),
        wkv=nrm(ks[2], (C, 2 * C)),    bkv=nrm(ks[3], (2 * C,)),
        wproj=nrm(ks[4], (C, C)),      bproj=nrm(ks[5], (C,)),
        rel_bias_table=nrm(ks[6], ((2 * window_size - 1) ** 2, num_heads)),
        w1=nrm(ks[7], (C, hidden)),    b1=nrm(ks[8], (hidden,)),
        w2=nrm(ks[9], (hidden, C)),    b2=nrm(ks[10], (C,)),
    )


# ----------------------- pure-JAX reference (correctness) ---------------------

def reference_forward(x, y, params, cfg):
    """Pure-JAX re-implementation with the same documented semantics (shared norm1,
    reference bias crop [:, :N, :N], attended token shared with its dropped partner)."""
    H, W = cfg["input_resolution"]
    ws = cfg["window_size"]
    nh = cfg["num_heads"]
    B, L, C = x.shape
    hd = C // nh
    scale = hd ** (-0.5)
    hi = jax.lax.Precision.HIGHEST

    def ln(v, g, b):
        m = v.mean(-1, keepdims=True)
        var = ((v - m) ** 2).mean(-1, keepdims=True)
        return (v - m) * jax.lax.rsqrt(var + LN_EPS) * g + b

    shortcut = x
    xn = ln(x, params["ln1_g"], params["ln1_b"]).reshape(B, H, W, C)
    yn = ln(y, params["ln1_g"], params["ln1_b"]).reshape(B, H, W, C)

    def partition(t):
        t = t.reshape(B, H // ws, ws, W // ws, ws, C)
        return jnp.transpose(t, (0, 1, 3, 2, 4, 5)).reshape(-1, ws * ws, C)

    xw = partition(xn)[:, ::2, :]
    yw = partition(yn)[:, ::2, :]
    N = xw.shape[1]

    q = jnp.einsum("bnc,cd->bnd", xw, params["wq"], precision=hi) + params["bq"]
    kv = jnp.einsum("bnc,cd->bnd", yw, params["wkv"], precision=hi) + params["bkv"]
    k, v = kv[..., :C], kv[..., C:]
    q = q.reshape(-1, N, nh, hd).transpose(0, 2, 1, 3) * scale
    k = k.reshape(-1, N, nh, hd).transpose(0, 2, 1, 3)
    v = v.reshape(-1, N, nh, hd).transpose(0, 2, 1, 3)
    attn = jnp.einsum("bhnd,bhmd->bhnm", q, k, precision=hi)

    rel_index = compute_relative_position_index(ws)
    bias = params["rel_bias_table"][rel_index.reshape(-1)].reshape(ws * ws, ws * ws, nh)
    bias = jnp.transpose(bias, (2, 0, 1))[:, :N, :N]
    attn = jax.nn.softmax(attn + bias[None], axis=-1)

    ctx = jnp.einsum("bhnm,bhmd->bhnd", attn, v, precision=hi)
    ctx = ctx.transpose(0, 2, 1, 3).reshape(-1, N, C)
    proj = jnp.einsum("bnc,cd->bnd", ctx, params["wproj"], precision=hi) + params["bproj"]

    full = jnp.repeat(proj, 2, axis=1)                                   # (nW*B, ws*ws, C)
    full = full.reshape(B, H // ws, W // ws, ws, ws, C)
    full = jnp.transpose(full, (0, 1, 3, 2, 4, 5)).reshape(B, L, C)

    h = shortcut + full
    hn = ln(h, params["ln2_g"], params["ln2_b"])
    m1 = jnp.einsum("blc,ch->blh", hn, params["w1"], precision=hi) + params["b1"]
    m1 = 0.5 * m1 * (1.0 + jax.lax.erf(m1 * jnp.float32(1.0 / math.sqrt(2.0))))
    m2 = jnp.einsum("blh,hc->blc", m1, params["w2"], precision=hi) + params["b2"]
    return h + m2


# ---------------------------------- main ---------------------------------------

if __name__ == "__main__":
    B, H, W, C = 2, 8, 8, 32
    num_heads, window_size = 4, 4

    key = jax.random.PRNGKey(0)
    kx, ky, kp = jax.random.split(key, 3)
    x = jax.random.normal(kx, (B, H * W, C), dtype=jnp.float32)
    y = jax.random.normal(ky, (B, H * W, C), dtype=jnp.float32)

    cfg = dict(input_resolution=(H, W), window_size=window_size, num_heads=num_heads)
    params = init_params(kp, C, num_heads, window_size)
    prep = prepare_params(params, cfg, B)

    fwd = jax.jit(lambda a, b: swin_element_forward(a, b, prep, cfg))
    out = fwd(x, y)
    jax.block_until_ready(out)
    assert out.shape == (B, H * W, C)

    # correctness check against the pure-JAX reference of the same forward semantics
    ref = reference_forward(x, y, params, cfg)
    np.testing.assert_allclose(np.asarray(out), np.asarray(ref), rtol=1e-3, atol=2e-3)

    print("KERNEL_OK")
</pallas_src>

<mosaic_0001>
module attributes {stable_mosaic.version = 11 : i64} {
  func.func @kernel(%arg0: memref<128x32xf32, #tpu.memory_space<vmem>>, %arg1: memref<128x32xf32, #tpu.memory_space<vmem>>, %arg2: memref<232x128xf32, #tpu.memory_space<vmem>>, %arg3: memref<128x32xf32, #tpu.memory_space<vmem>>) attributes {dimension_semantics = [], scalar_prefetch = 0 : i64, scratch_operands = 0 : i64, tpu.core_type = #tpu.core_type<tc>} {
    %c0 = arith.constant 0 : index
    %c0_0 = arith.constant 0 : index
    %0 = vector.load %arg2[%c0, %c0_0] : memref<232x128xf32, #tpu.memory_space<vmem>>, vector<32x32xf32>
    %c0_1 = arith.constant 0 : index
    %c32 = arith.constant 32 : index
    %1 = vector.load %arg2[%c0_1, %c32] : memref<232x128xf32, #tpu.memory_space<vmem>>, vector<32x64xf32>
    %c0_2 = arith.constant 0 : index
    %c96 = arith.constant 96 : index
    %2 = vector.load %arg2[%c0_2, %c96] : memref<232x128xf32, #tpu.memory_space<vmem>>, vector<32x32xf32>
    %c32_3 = arith.constant 32 : index
    %c0_4 = arith.constant 0 : index
    %3 = vector.load %arg2[%c32_3, %c0_4] : memref<232x128xf32, #tpu.memory_space<vmem>>, vector<32x128xf32>
    %c64 = arith.constant 64 : index
    %c0_5 = arith.constant 0 : index
    %4 = vector.load %arg2[%c64, %c0_5] : memref<232x128xf32, #tpu.memory_space<vmem>>, vector<32x128xf32>
    %c96_6 = arith.constant 96 : index
    %c0_7 = arith.constant 0 : index
    %5 = vector.load %arg2[%c96_6, %c0_7] : memref<232x128xf32, #tpu.memory_space<vmem>>, vector<1x32xf32>
    %c96_8 = arith.constant 96 : index
    %c32_9 = arith.constant 32 : index
    %6 = vector.load %arg2[%c96_8, %c32_9] : memref<232x128xf32, #tpu.memory_space<vmem>>, vector<1x32xf32>
    %c96_10 = arith.constant 96 : index
    %c64_11 = arith.constant 64 : index
    %7 = vector.load %arg2[%c96_10, %c64_11] : memref<232x128xf32, #tpu.memory_space<vmem>>, vector<1x32xf32>
    %c96_12 = arith.constant 96 : index
    %c96_13 = arith.constant 96 : index
    %8 = vector.load %arg2[%c96_12, %c96_13] : memref<232x128xf32, #tpu.memory_space<vmem>>, vector<1x32xf32>
    %c97 = arith.constant 97 : index
    %c0_14 = arith.constant 0 : index
    %9 = vector.load %arg2[%c97, %c0_14] : memref<232x128xf32, #tpu.memory_space<vmem>>, vector<1x32xf32>
    %c97_15 = arith.constant 97 : index
    %c32_16 = arith.constant 32 : index
    %10 = vector.load %arg2[%c97_15, %c32_16] : memref<232x128xf32, #tpu.memory_space<vmem>>, vector<1x64xf32>
    %c97_17 = arith.constant 97 : index
    %c96_18 = arith.constant 96 : index
    %11 = vector.load %arg2[%c97_17, %c96_18] : memref<232x128xf32, #tpu.memory_space<vmem>>, vector<1x32xf32>
    %c98 = arith.constant 98 : index
    %c0_19 = arith.constant 0 : index
    %12 = vector.load %arg2[%c98, %c0_19] : memref<232x128xf32, #tpu.memory_space<vmem>>, vector<1x128xf32>
    %c99 = arith.constant 99 : index
    %c0_20 = arith.constant 0 : index
    %13 = vector.load %arg2[%c99, %c0_20] : memref<232x128xf32, #tpu.memory_space<vmem>>, vector<1x32xf32>
    %c0_21 = arith.constant 0 : index
    %c0_22 = arith.constant 0 : index
    %14 = vector.load %arg0[%c0_21, %c0_22] : memref<128x32xf32, #tpu.memory_space<vmem>>, vector<128x32xf32>
    %c0_23 = arith.constant 0 : index
    %c0_24 = arith.constant 0 : index
    %15 = vector.load %arg1[%c0_23, %c0_24] : memref<128x32xf32, #tpu.memory_space<vmem>>, vector<128x32xf32>
    %16 = tpu.iota {dimensions = array<i32: 0>} : vector<64x128xi32>
    %17 = tpu.iota {dimensions = array<i32: 1>} : vector<64x128xi32>
    %c2_i32 = arith.constant 2 : i32
    %18 = vector.broadcast %c2_i32 : i32 to vector<64x128xi32>
    %19 = arith.muli %18, %16 : vector<64x128xi32>
    %20 = arith.cmpi eq, %17, %19 : vector<64x128xi32>
    %cst = arith.constant 1.000000e+00 : f32
    %cst_25 = arith.constant 0.000000e+00 : f32
    %21 = vector.broadcast %cst : f32 to vector<64x128xf32>
    %22 = vector.broadcast %cst_25 : f32 to vector<64x128xf32>
    %23 = arith.select %20, %21, %22 : vector<64x128xi1>, vector<64x128xf32>
    %cst_26 = arith.constant dense<0.000000e+00> : vector<64x32xf32>
    %24 = tpu.matmul %23, %14, %cst_26 {dimension_numbers = #tpu.dot_dimension_numbers<[1], [0], [0], [1], [0, 0, 1, 1], [], []>} : vector<64x128xf32>, vector<128x32xf32>, vector<64x32xf32> -> vector<64x32xf32>
    %cst_27 = arith.constant dense<0.000000e+00> : vector<64x32xf32>
    %25 = tpu.matmul %23, %15, %cst_27 {dimension_numbers = #tpu.dot_dimension_numbers<[1], [0], [0], [1], [0, 0, 1, 1], [], []>} : vector<64x128xf32>, vector<128x32xf32>, vector<64x32xf32> -> vector<64x32xf32>
    %cst_28 = arith.constant dense<0.000000e+00> : vector<64xf32>
    %26 = vector.multi_reduction <add>, %24, %cst_28 [1] : vector<64x32xf32> to vector<64xf32>
    %27 = vector.shape_cast %26 : vector<64xf32> to vector<64x1xf32>
    %cst_29 = arith.constant 3.200000e+01 : f32
    %28 = vector.broadcast %cst_29 : f32 to vector<64x1xf32>
    %29 = arith.divf %27, %28 : vector<64x1xf32>
    %30 = vector.broadcast %29 : vector<64x1xf32> to vector<64x32xf32>
    %31 = arith.subf %24, %30 : vector<64x32xf32>
    %32 = arith.mulf %31, %31 : vector<64x32xf32>
    %cst_30 = arith.constant dense<0.000000e+00> : vector<64xf32>
    %33 = vector.multi_reduction <add>, %32, %cst_30 [1] : vector<64x32xf32> to vector<64xf32>
    %34 = vector.shape_cast %33 : vector<64xf32> to vector<64x1xf32>
    %cst_31 = arith.constant 3.200000e+01 : f32
    %35 = vector.broadcast %cst_31 : f32 to vector<64x1xf32>
    %36 = arith.divf %34, %35 : vector<64x1xf32>
    %cst_32 = arith.constant 9.99999974E-6 : f32
    %37 = vector.broadcast %cst_32 : f32 to vector<64x1xf32>
    %38 = arith.addf %36, %37 : vector<64x1xf32>
    %39 = math.rsqrt %38 : vector<64x1xf32>
    %40 = vector.broadcast %39 : vector<64x1xf32> to vector<64x32xf32>
    %41 = arith.mulf %31, %40 : vector<64x32xf32>
    %42 = vector.broadcast %5 : vector<1x32xf32> to vector<64x32xf32>
    %43 = arith.mulf %41, %42 : vector<64x32xf32>
    %44 = vector.broadcast %6 : vector<1x32xf32> to vector<64x32xf32>
    %45 = arith.addf %43, %44 : vector<64x32xf32>
    %cst_33 = arith.constant dense<0.000000e+00> : vector<64xf32>
    %46 = vector.multi_reduction <add>, %25, %cst_33 [1] : vector<64x32xf32> to vector<64xf32>
    %47 = vector.shape_cast %46 : vector<64xf32> to vector<64x1xf32>
    %cst_34 = arith.constant 3.200000e+01 : f32
    %48 = vector.broadcast %cst_34 : f32 to vector<64x1xf32>
    %49 = arith.divf %47, %48 : vector<64x1xf32>
    %50 = vector.broadcast %49 : vector<64x1xf32> to vector<64x32xf32>
    %51 = arith.subf %25, %50 : vector<64x32xf32>
    %52 = arith.mulf %51, %51 : vector<64x32xf32>
    %cst_35 = arith.constant dense<0.000000e+00> : vector<64xf32>
    %53 = vector.multi_reduction <add>, %52, %cst_35 [1] : vector<64x32xf32> to vector<64xf32>
    %54 = vector.shape_cast %53 : vector<64xf32> to vector<64x1xf32>
    %cst_36 = arith.constant 3.200000e+01 : f32
    %55 = vector.broadcast %cst_36 : f32 to vector<64x1xf32>
    %56 = arith.divf %54, %55 : vector<64x1xf32>
    %cst_37 = arith.constant 9.99999974E-6 : f32
    %57 = vector.broadcast %cst_37 : f32 to vector<64x1xf32>
    %58 = arith.addf %56, %57 : vector<64x1xf32>
    %59 = math.rsqrt %58 : vector<64x1xf32>
    %60 = vector.broadcast %59 : vector<64x1xf32> to vector<64x32xf32>
    %61 = arith.mulf %51, %60 : vector<64x32xf32>
    %62 = vector.broadcast %5 : vector<1x32xf32> to vector<64x32xf32>
    %63 = arith.mulf %61, %62 : vector<64x32xf32>
    %64 = vector.broadcast %6 : vector<1x32xf32> to vector<64x32xf32>
    %65 = arith.addf %63, %64 : vector<64x32xf32>
    %cst_38 = arith.constant dense<0.000000e+00> : vector<64x32xf32>
    %66 = tpu.matmul %45, %0, %cst_38 {dimension_numbers = #tpu.dot_dimension_numbers<[1], [0], [0], [1], [0, 0, 1, 1], [], []>} : vector<64x32xf32>, vector<32x32xf32>, vector<64x32xf32> -> vector<64x32xf32>
    %67 = vector.broadcast %9 : vector<1x32xf32> to vector<64x32xf32>
    %68 = arith.addf %66, %67 : vector<64x32xf32>
    %cst_39 = arith.constant dense<0.000000e+00> : vector<64x64xf32>
    %69 = tpu.matmul %65, %1, %cst_39 {dimension_numbers = #tpu.dot_dimension_numbers<[1], [0], [0], [1], [0, 0, 1, 1], [], []>} : vector<64x32xf32>, vector<32x64xf32>, vector<64x64xf32> -> vector<64x64xf32>
    %70 = vector.broadcast %10 : vector<1x64xf32> to vector<64x64xf32>
    %71 = arith.addf %69, %70 : vector<64x64xf32>
    %72 = vector.extract_strided_slice %71 {offsets = [0, 0], sizes = [64, 32], strides = [1, 1]} : vector<64x64xf32> to vector<64x32xf32>
    %73 = vector.extract_strided_slice %71 {offsets = [0, 32], sizes = [64, 32], strides = [1, 1]} : vector<64x64xf32> to vector<64x32xf32>
    %c104 = arith.constant 104 : index
    %c0_40 = arith.constant 0 : index
    %74 = vector.load %arg2[%c104, %c0_40] : memref<232x128xf32, #tpu.memory_space<vmem>>, vector<64x64xf32>
    %75 = vector.extract_strided_slice %68 {offsets = [0, 0], sizes = [64, 8], strides = [1, 1]} : vector<64x32xf32> to vector<64x8xf32>
    %76 = vector.extract_strided_slice %72 {offsets = [0, 0], sizes = [64, 8], strides = [1, 1]} : vector<64x32xf32> to vector<64x8xf32>
    %77 = vector.extract_strided_slice %73 {offsets = [0, 0], sizes = [64, 8], strides = [1, 1]} : vector<64x32xf32> to vector<64x8xf32>
    "tpu.trace_start"() <{level = 10 : i32, message = "nd,md->nm"}> : () -> ()
    %cst_41 = arith.constant dense<0.000000e+00> : vector<64x64xf32>
    %78 = tpu.matmul %75, %76, %cst_41 {dimension_numbers = #tpu.dot_dimension_numbers<[1], [1], [0], [0], [0, 0, 1, 0], [], []>} : vector<64x8xf32>, vector<64x8xf32>, vector<64x64xf32> -> vector<64x64xf32>
    "tpu.trace_stop"() : () -> ()
    %79 = arith.addf %78, %74 : vector<64x64xf32>
    %cst_42 = arith.constant dense<0xFF800000> : vector<64xf32>
    %80 = vector.multi_reduction <maximumf>, %79, %cst_42 [1] : vector<64x64xf32> to vector<64xf32>
    %81 = vector.shape_cast %80 : vector<64xf32> to vector<64x1xf32>
    %82 = vector.broadcast %81 : vector<64x1xf32> to vector<64x64xf32>
    %83 = arith.subf %79, %82 : vector<64x64xf32>
    %84 = math.exp %83 : vector<64x64xf32>
    %cst_43 = arith.constant dense<0.000000e+00> : vector<64xf32>
    %85 = vector.multi_reduction <add>, %84, %cst_43 [1] : vector<64x64xf32> to vector<64xf32>
    %86 = vector.shape_cast %85 : vector<64xf32> to vector<64x1xf32>
    %87 = tpu.reciprocal %86 {approx = true} : vector<64x1xf32> -> vector<64x1xf32>
    %cst_44 = arith.constant dense<0.000000e+00> : vector<64x8xf32>
    %88 = tpu.matmul %84, %77, %cst_44 {dimension_numbers = #tpu.dot_dimension_numbers<[1], [0], [0], [1], [0, 0, 1, 1], [], []>} : vector<64x64xf32>, vector<64x8xf32>, vector<64x8xf32> -> vector<64x8xf32>
    %89 = vector.broadcast %87 : vector<64x1xf32> to vector<64x8xf32>
    %90 = arith.mulf %88, %89 : vector<64x8xf32>
    %c104_45 = arith.constant 104 : index
    %c64_46 = arith.constant 64 : index
    %91 = vector.load %arg2[%c104_45, %c64_46] : memref<232x128xf32, #tpu.memory_space<vmem>>, vector<64x64xf32>
    %92 = vector.extract_strided_slice %68 {offsets = [0, 8], sizes = [64, 8], strides = [1, 1]} : vector<64x32xf32> to vector<64x8xf32>
    %93 = vector.extract_strided_slice %72 {offsets = [0, 8], sizes = [64, 8], strides = [1, 1]} : vector<64x32xf32> to vector<64x8xf32>
    %94 = vector.extract_strided_slice %73 {offsets = [0, 8], sizes = [64, 8], strides = [1, 1]} : vector<64x32xf32> to vector<64x8xf32>
    "tpu.trace_start"() <{level = 10 : i32, message = "nd,md->nm"}> : () -> ()
    %cst_47 = arith.constant dense<0.000000e+00> : vector<64x64xf32>
    %95 = tpu.matmul %92, %93, %cst_47 {dimension_numbers = #tpu.dot_dimension_numbers<[1], [1], [0], [0], [0, 0, 1, 0], [], []>} : vector<64x8xf32>, vector<64x8xf32>, vector<64x64xf32> -> vector<64x64xf32>
    "tpu.trace_stop"() : () -> ()
    %96 = arith.addf %95, %91 : vector<64x64xf32>
    %cst_48 = arith.constant dense<0xFF800000> : vector<64xf32>
    %97 = vector.multi_reduction <maximumf>, %96, %cst_48 [1] : vector<64x64xf32> to vector<64xf32>
    %98 = vector.shape_cast %97 : vector<64xf32> to vector<64x1xf32>
    %99 = vector.broadcast %98 : vector<64x1xf32> to vector<64x64xf32>
    %100 = arith.subf %96, %99 : vector<64x64xf32>
    %101 = math.exp %100 : vector<64x64xf32>
    %cst_49 = arith.constant dense<0.000000e+00> : vector<64xf32>
    %102 = vector.multi_reduction <add>, %101, %cst_49 [1] : vector<64x64xf32> to vector<64xf32>
    %103 = vector.shape_cast %102 : vector<64xf32> to vector<64x1xf32>
    %104 = tpu.reciprocal %103 {approx = true} : vector<64x1xf32> -> vector<64x1xf32>
    %cst_50 = arith.constant dense<0.000000e+00> : vector<64x8xf32>
    %105 = tpu.matmul %101, %94, %cst_50 {dimension_numbers = #tpu.dot_dimension_numbers<[1], [0], [0], [1], [0, 0, 1, 1], [], []>} : vector<64x64xf32>, vector<64x8xf32>, vector<64x8xf32> -> vector<64x8xf32>
    %106 = vector.broadcast %104 : vector<64x1xf32> to vector<64x8xf32>
    %107 = arith.mulf %105, %106 : vector<64x8xf32>
    %c168 = arith.constant 168 : index
    %c0_51 = arith.constant 0 : index
    %108 = vector.load %arg2[%c168, %c0_51] : memref<232x128xf32, #tpu.memory_space<vmem>>, vector<64x64xf32>
    %109 = vector.extract_strided_slice %68 {offsets = [0, 16], sizes = [64, 8], strides = [1, 1]} : vector<64x32xf32> to vector<64x8xf32>
    %110 = vector.extract_strided_slice %72 {offsets = [0, 16], sizes = [64, 8], strides = [1, 1]} : vector<64x32xf32> to vector<64x8xf32>
    %111 = vector.extract_strided_slice %73 {offsets = [0, 16], sizes = [64, 8], strides = [1, 1]} : vector<64x32xf32> to vector<64x8xf32>
    "tpu.trace_start"() <{level = 10 : i32, message = "nd,md->nm"}> : () -> ()
    %cst_52 = arith.constant dense<0.000000e+00> : vector<64x64xf32>
    %112 = tpu.matmul %109, %110, %cst_52 {dimension_numbers = #tpu.dot_dimension_numbers<[1], [1], [0], [0], [0, 0, 1, 0], [], []>} : vector<64x8xf32>, vector<64x8xf32>, vector<64x64xf32> -> vector<64x64xf32>
    "tpu.trace_stop"() : () -> ()
    %113 = arith.addf %112, %108 : vector<64x64xf32>
    %cst_53 = arith.constant dense<0xFF800000> : vector<64xf32>
    %114 = vector.multi_reduction <maximumf>, %113, %cst_53 [1] : vector<64x64xf32> to vector<64xf32>
    %115 = vector.shape_cast %114 : vector<64xf32> to vector<64x1xf32>
    %116 = vector.broadcast %115 : vector<64x1xf32> to vector<64x64xf32>
    %117 = arith.subf %113, %116 : vector<64x64xf32>
    %118 = math.exp %117 : vector<64x64xf32>
    %cst_54 = arith.constant dense<0.000000e+00> : vector<64xf32>
    %119 = vector.multi_reduction <add>, %118, %cst_54 [1] : vector<64x64xf32> to vector<64xf32>
    %120 = vector.shape_cast %119 : vector<64xf32> to vector<64x1xf32>
    %121 = tpu.reciprocal %120 {approx = true} : vector<64x1xf32> -> vector<64x1xf32>
    %cst_55 = arith.constant dense<0.000000e+00> : vector<64x8xf32>
    %122 = tpu.matmul %118, %111, %cst_55 {dimension_numbers = #tpu.dot_dimension_numbers<[1], [0], [0], [1], [0, 0, 1, 1], [], []>} : vector<64x64xf32>, vector<64x8xf32>, vector<64x8xf32> -> vector<64x8xf32>
    %123 = vector.broadcast %121 : vector<64x1xf32> to vector<64x8xf32>
    %124 = arith.mulf %122, %123 : vector<64x8xf32>
    %c168_56 = arith.constant 168 : index
    %c64_57 = arith.constant 64 : index
    %125 = vector.load %arg2[%c168_56, %c64_57] : memref<232x128xf32, #tpu.memory_space<vmem>>, vector<64x64xf32>
    %126 = vector.extract_strided_slice %68 {offsets = [0, 24], sizes = [64, 8], strides = [1, 1]} : vector<64x32xf32> to vector<64x8xf32>
    %127 = vector.extract_strided_slice %72 {offsets = [0, 24], sizes = [64, 8], strides = [1, 1]} : vector<64x32xf32> to vector<64x8xf32>
    %128 = vector.extract_strided_slice %73 {offsets = [0, 24], sizes = [64, 8], strides = [1, 1]} : vector<64x32xf32> to vector<64x8xf32>
    "tpu.trace_start"() <{level = 10 : i32, message = "nd,md->nm"}> : () -> ()
    %cst_58 = arith.constant dense<0.000000e+00> : vector<64x64xf32>
    %129 = tpu.matmul %126, %127, %cst_58 {dimension_numbers = #tpu.dot_dimension_numbers<[1], [1], [0], [0], [0, 0, 1, 0], [], []>} : vector<64x8xf32>, vector<64x8xf32>, vector<64x64xf32> -> vector<64x64xf32>
    "tpu.trace_stop"() : () -> ()
    %130 = arith.addf %129, %125 : vector<64x64xf32>
    %cst_59 = arith.constant dense<0xFF800000> : vector<64xf32>
    %131 = vector.multi_reduction <maximumf>, %130, %cst_59 [1] : vector<64x64xf32> to vector<64xf32>
    %132 = vector.shape_cast %131 : vector<64xf32> to vector<64x1xf32>
    %133 = vector.broadcast %132 : vector<64x1xf32> to vector<64x64xf32>
    %134 = arith.subf %130, %133 : vector<64x64xf32>
    %135 = math.exp %134 : vector<64x64xf32>
    %cst_60 = arith.constant dense<0.000000e+00> : vector<64xf32>
    %136 = vector.multi_reduction <add>, %135, %cst_60 [1] : vector<64x64xf32> to vector<64xf32>
    %137 = vector.shape_cast %136 : vector<64xf32> to vector<64x1xf32>
    %138 = tpu.reciprocal %137 {approx = true} : vector<64x1xf32> -> vector<64x1xf32>
    %cst_61 = arith.constant dense<0.000000e+00> : vector<64x8xf32>
    %139 = tpu.matmul %135, %128, %cst_61 {dimension_numbers = #tpu.dot_dimension_numbers<[1], [0], [0], [1], [0, 0, 1, 1], [], []>} : vector<64x64xf32>, vector<64x8xf32>, vector<64x8xf32> -> vector<64x8xf32>
    %140 = vector.broadcast %138 : vector<64x1xf32> to vector<64x8xf32>
    %141 = arith.mulf %139, %140 : vector<64x8xf32>
    %142 = tpu.concatenate %90, %107, %124, %141 in 1 : vector<64x8xf32>, vector<64x8xf32>, vector<64x8xf32>, vector<64x8xf32> -> vector<64x32xf32>
    %cst_62 = arith.constant dense<0.000000e+00> : vector<64x32xf32>
    %143 = tpu.matmul %142, %2, %cst_62 {dimension_numbers = #tpu.dot_dimension_numbers<[1], [0], [0], [1], [0, 0, 1, 1], [], []>} : vector<64x32xf32>, vector<32x32xf32>, vector<64x32xf32> -> vector<64x32xf32>
    %144 = vector.broadcast %11 : vector<1x32xf32> to vector<64x32xf32>
    %145 = arith.addf %143, %144 : vector<64x32xf32>
    %146 = tpu.iota {dimensions = array<i32: 0>} : vector<128x64xi32>
    %147 = tpu.iota {dimensions = array<i32: 1>} : vector<128x64xi32>
    %c2_i32_63 = arith.constant 2 : i32
    %148 = vector.broadcast %c2_i32_63 : i32 to vector<128x64xi32>
    %149 = arith.muli %148, %147 : vector<128x64xi32>
    %150 = arith.subi %146, %149 : vector<128x64xi32>
    %c0_i32 = arith.constant 0 : i32
    %151 = vector.broadcast %c0_i32 : i32 to vector<128x64xi32>
    %152 = arith.cmpi sge, %150, %151 : vector<128x64xi32>
    %c1_i32 = arith.constant 1 : i32
    %153 = vector.broadcast %c1_i32 : i32 to vector<128x64xi32>
    %154 = arith.cmpi sle, %150, %153 : vector<128x64xi32>
    %155 = arith.andi %152, %154 : vector<128x64xi1>
    %cst_64 = arith.constant 1.000000e+00 : f32
    %cst_65 = arith.constant 0.000000e+00 : f32
    %156 = vector.broadcast %cst_64 : f32 to vector<128x64xf32>
    %157 = vector.broadcast %cst_65 : f32 to vector<128x64xf32>
    %158 = arith.select %155, %156, %157 : vector<128x64xi1>, vector<128x64xf32>
    %cst_66 = arith.constant dense<0.000000e+00> : vector<128x32xf32>
    %159 = tpu.matmul %158, %145, %cst_66 {dimension_numbers = #tpu.dot_dimension_numbers<[1], [0], [0], [1], [0, 0, 1, 1], [], []>} : vector<128x64xf32>, vector<64x32xf32>, vector<128x32xf32> -> vector<128x32xf32>
    %160 = arith.addf %14, %159 : vector<128x32xf32>
    %cst_67 = arith.constant dense<0.000000e+00> : vector<128xf32>
    %161 = vector.multi_reduction <add>, %160, %cst_67 [1] : vector<128x32xf32> to vector<128xf32>
    %162 = vector.shape_cast %161 : vector<128xf32> to vector<128x1xf32>
    %cst_68 = arith.constant 3.200000e+01 : f32
    %163 = vector.broadcast %cst_68 : f32 to vector<128x1xf32>
    %164 = arith.divf %162, %163 : vector<128x1xf32>
    %165 = vector.broadcast %164 : vector<128x1xf32> to vector<128x32xf32>
    %166 = arith.subf %160, %165 : vector<128x32xf32>
    %167 = arith.mulf %166, %166 : vector<128x32xf32>
    %cst_69 = arith.constant dense<0.000000e+00> : vector<128xf32>
    %168 = vector.multi_reduction <add>, %167, %cst_69 [1] : vector<128x32xf32> to vector<128xf32>
    %169 = vector.shape_cast %168 : vector<128xf32> to vector<128x1xf32>
    %cst_70 = arith.constant 3.200000e+01 : f32
    %170 = vector.broadcast %cst_70 : f32 to vector<128x1xf32>
    %171 = arith.divf %169, %170 : vector<128x1xf32>
    %cst_71 = arith.constant 9.99999974E-6 : f32
    %172 = vector.broadcast %cst_71 : f32 to vector<128x1xf32>
    %173 = arith.addf %171, %172 : vector<128x1xf32>
    %174 = math.rsqrt %173 : vector<128x1xf32>
    %175 = vector.broadcast %174 : vector<128x1xf32> to vector<128x32xf32>
    %176 = arith.mulf %166, %175 : vector<128x32xf32>
    %177 = vector.broadcast %7 : vector<1x32xf32> to vector<128x32xf32>
    %178 = arith.mulf %176, %177 : vector<128x32xf32>
    %179 = vector.broadcast %8 : vector<1x32xf32> to vector<128x32xf32>
    %180 = arith.addf %178, %179 : vector<128x32xf32>
    %cst_72 = arith.constant dense<0.000000e+00> : vector<128x128xf32>
    %181 = tpu.matmul %180, %3, %cst_72 {dimension_numbers = #tpu.dot_dimension_numbers<[1], [0], [0], [1], [0, 0, 1, 1], [], []>} : vector<128x32xf32>, vector<32x128xf32>, vector<128x128xf32> -> vector<128x128xf32>
    %182 = vector.broadcast %12 : vector<1x128xf32> to vector<128x128xf32>
    %183 = arith.addf %181, %182 : vector<128x128xf32>
    %cst_73 = arith.constant 5.000000e-01 : f32
    %184 = vector.broadcast %cst_73 : f32 to vector<128x128xf32>
    %185 = arith.mulf %184, %183 : vector<128x128xf32>
    %cst_74 = arith.constant 0.707106769 : f32
    %186 = vector.broadcast %cst_74 : f32 to vector<128x128xf32>
    %187 = arith.mulf %183, %186 : vector<128x128xf32>
    %188 = math.erf %187 : vector<128x128xf32>
    %cst_75 = arith.constant 1.000000e+00 : f32
    %189 = vector.broadcast %cst_75 : f32 to vector<128x128xf32>
    %190 = arith.addf %189, %188 : vector<128x128xf32>
    %191 = arith.mulf %185, %190 : vector<128x128xf32>
    "tpu.trace_start"() <{level = 10 : i32, message = "nh,ch->nc"}> : () -> ()
    %cst_76 = arith.constant dense<0.000000e+00> : vector<128x32xf32>
    %192 = tpu.matmul %191, %4, %cst_76 {dimension_numbers = #tpu.dot_dimension_numbers<[1], [1], [0], [0], [0, 0, 1, 0], [], []>} : vector<128x128xf32>, vector<32x128xf32>, vector<128x32xf32> -> vector<128x32xf32>
    "tpu.trace_stop"() : () -> ()
    %193 = vector.broadcast %13 : vector<1x32xf32> to vector<128x32xf32>
    %194 = arith.addf %192, %193 : vector<128x32xf32>
    %195 = arith.addf %160, %194 : vector<128x32xf32>
    %c0_77 = arith.constant 0 : index
    %c0_78 = arith.constant 0 : index
    %196 = vector.load %arg3[%c0_77, %c0_78] : memref<128x32xf32, #tpu.memory_space<vmem>>, vector<128x32xf32>
    tpu.vector_store %arg3[%c0_77, %c0_78], %195 {strides = array<i32>} : memref<128x32xf32, #tpu.memory_space<vmem>>, vector<128x32xf32>,
    return
  }
}

</mosaic_0001>

<bundles_post_ra>
// kernel: _lambda_.1
= control target key start
LH: loop header
LB: loop body
LE: loop exit
PB: predicated region body
PF: predicated region fallthrough
CT: control target
= control target key end

     0   :  { %v62_v0 = vlaneseq  ;;  %v5465_v23 = vmov 1.0   ;;  %vm307_vm8 = vcmask 261120   ;;  %s5466_s25 = smov 96   ;;  %vm847_vm9 = vcmask 64512   ;;  %s5467_s7 = smov 120   ;;  %s7163_s1 = inlined_call_operand.vmem [shape: f32[128,32], index: 1, kind: input, shape index: {}]   ;;  %s7164_s0 = inlined_call_operand.vmem [shape: f32[128,32], index: 0, kind: input, shape index: {}]   ;;  %s7165_s2 = inlined_call_operand.vmem [shape: f32[232,128], index: 2, kind: input, shape index: {}]   ;;  %s7166_s3 = inlined_call_operand.vmem [shape: f32[128,32], index: 3, kind: output, shape index: {}]  }
   0x1   :  { %v46_v1 = vld [vmem:[%s7163_s1] sm:$0xff]  ;;  %v47_v2 = vld [vmem:[%s7163_s1 + $0x8] sm:$0xff]  ;;  %v48_v3 = vld [vmem:[%s7163_s1 + $0x10] sm:$0xff]  ;;  %vm1001_vm11 = vcmask 523264   ;;  %s5468_s23 = smov 64   ;;  %s5469_s24 = smov 88  }
   0x2   :  { %v4789_v4 = vpack.c.bf16 %v47_v2, %v46_v1  ;;  %v49_v5 = vld [vmem:[%s7163_s1 + $0x18] sm:$0xff]  ;;  %v50_v6 = vld [vmem:[%s7163_s1 + $0x20] sm:$0xff]  ;;  %v5514_v7 = vshrl.u32 %v62_v0, 7  ;;  %v5516_v8 = vand.u32 127, %v62_v0  ;;  %v51_v10 = vld [vmem:[%s7163_s1 + $0x28] sm:$0xff]  ;;  %s5471_s26 = smov 80  }
   0x3   :  { %v4793_v9 = vpack.c.bf16 %v49_v5, %v48_v3  ;;  %v30_v11 = vld [vmem:[%s7164_s0] sm:$0xff]  ;;  %v31_v12 = vld [vmem:[%s7164_s0 + $0x8] sm:$0xff]  ;;  %v32_v14 = vld [vmem:[%s7164_s0 + $0x10] sm:$0xff]  ;;  %v4797_v19 = vpack.c.bf16 %v51_v10, %v50_v6  ;;  %s5472_s14 = smov 104   ;;  %s5473_s17 = smov 72   ;;  %vm2665_vm12 = vcmask 130048  }
   0x4   :  { %7177 = vst [vmem:[#allocation2_spill] sm:$0xff] %v5514_v7  ;;  %7178 = vst [vmem:[#allocation3_spill] sm:$0xff] %v5516_v8  ;;  %4790 = vmatprep.subr.bf16.mxu1 %v4789_v4  ;;  %v4757_v13 = vpack.c.bf16 %v31_v12, %v30_v11  ;;  %v33_v15 = vld [vmem:[%s7164_s0 + $0x18] sm:$0xff]  ;;  %v73_v16 = vmul.u32 2, %v5514_v7  ;;  %v34_v18 = vld [vmem:[%s7164_s0 + $0x20] sm:$0xff]  ;;  %v5598_v49 = vadd.s32 8, %v5514_v7 }
   0x5   :  { %4792 = vmatpush3.bf16.msra.mxu1 %v4789_v4  ;;  %v4761_v17 = vpack.c.bf16 %v33_v15, %v32_v14  ;;  %v35_v20 = vld [vmem:[%s7164_s0 + $0x28] sm:$0xff]  ;;  %v52_v21 = vld [vmem:[%s7163_s1 + $0x30] sm:$0xff]  ;;  %v53_v22 = vld [vmem:[%s7163_s1 + $0x38] sm:$0xff]  ;;  %v5607_v53 = vadd.s32 16, %v5514_v7  ;;  %v5611_v56 = vadd.s32 24, %v5514_v7  ;;  %v5615_v58 = vadd.s32 32, %v5514_v7 }
   0x6   :  { %4794 = vmatprep.subr.bf16.mxu1 %v4793_v9  ;;  %4758 = vmatprep.subr.bf16.mxu0 %v4757_v13  ;;  %vm81_vm0 = vcmp.eq.s32.totalorder %v5516_v8, %v73_v16  ;;  %v4765_v24 = vpack.c.bf16 %v35_v20, %v34_v18  ;;  %v36_v25 = vld [vmem:[%s7164_s0 + $0x30] sm:$0xff]  ;;  %v37_v26 = vld [vmem:[%s7164_s0 + $0x38] sm:$0xff]  ;;  %v4801_v27 = vpack.c.bf16 %v53_v22, %v52_v21  ;;  %v54_v28 = vld [vmem:[%s7163_s1 + $0x40] sm:$0xff]  ;;  %v74_v55 = vmul.u32 2, %v5598_v49  ;;  %s5475_s27 = smov 8   ;;  %s5476_s28 = smov 16  }
   0x7   :  { %4760 = vmatpush3.bf16.msra.mxu0 %v4757_v13  ;;  %4357 = vmatprep.mubr.msk.f32.mxu1 %vm81_vm0, %v5465_v23  ;;  %v55_v29 = vld [vmem:[%s7163_s1 + $0x48] sm:$0xff]  ;;  %v4769_v30 = vpack.c.bf16 %v37_v26, %v36_v25  ;;  %v38_v31 = vld [vmem:[%s7164_s0 + $0x40] sm:$0xff]  ;;  %v56_v34 = vld [vmem:[%s7163_s1 + $0x50] sm:$0xff]  ;;  %7179 = vst [vmem:[#allocation4_spill] sm:$0xff] %v5598_v49  ;;  %v75_v57 = vmul.u32 2, %v5607_v53  ;;  %v76_v59 = vmul.u32 2, %v5611_v56 }
   0x8   :  { %4762 = vmatprep.subr.bf16.mxu0 %v4761_v17  ;;  %4313 = vmatprep.mubr.msk.f32.mxu0 %vm81_vm0, %v5465_v23  ;;  %v39_v32 = vld [vmem:[%s7164_s0 + $0x48] sm:$0xff]  ;;  %v4805_v33 = vpack.c.bf16 %v55_v29, %v54_v28  ;;  %v57_v35 = vld [vmem:[%s7163_s1 + $0x58] sm:$0xff]  ;;  %v40_v37 = vld [vmem:[%s7164_s0 + $0x50] sm:$0xff]  ;;  %7180 = vst [vmem:[#allocation5_spill] sm:$0xff] %v5607_v53  ;;  %vm82_vm1 = vcmp.eq.s32.totalorder %v5516_v8, %v74_v55  ;;  %v5620_v60 = vadd.s32 40, %v5514_v7  ;;  %v77_v61 = vmul.u32 2, %v5615_v58 }
   0x9   :  { %4796 = vmatpush3.bf16.msra.mxu1 %v4793_v9  ;;  %v4773_v36 = vpack.c.bf16 %v39_v32, %v38_v31  ;;  %v41_v38 = vld [vmem:[%s7164_s0 + $0x58] sm:$0xff]  ;;  %v4809_v39 = vpack.c.bf16 %v57_v35, %v56_v34  ;;  %v58_v40 = vld [vmem:[%s7163_s1 + $0x60] sm:$0xff]  ;;  %v59_v41 = vld [vmem:[%s7163_s1 + $0x68] sm:$0xff]  ;;  %7181 = vst [vmem:[#allocation6_spill] sm:$0xff] %v5611_v56  ;;  %vm83_vm2 = vcmp.eq.s32.totalorder %v5516_v8, %v75_v57  ;;  %v5625_v62 = vadd.s32 48, %v5514_v7  ;;  %s5477_s29 = smov 24  }
   0xa   :  { %4798 = vmatprep.subr.bf16.mxu1 %v4797_v19  ;;  %v4777_v42 = vpack.c.bf16 %v41_v38, %v40_v37  ;;  %v42_v43 = vld [vmem:[%s7164_s0 + $0x60] sm:$0xff]  ;;  %v43_v44 = vld [vmem:[%s7164_s0 + $0x68] sm:$0xff]  ;;  %v4813_v45 = vpack.c.bf16 %v59_v41, %v58_v40  ;;  %v60_v46 = vld [vmem:[%s7163_s1 + $0x70] sm:$0xff]  ;;  %7182 = vst [vmem:[#allocation7_spill] sm:$0xff] %v5615_v58  ;;  %vm84_vm3 = vcmp.eq.s32.totalorder %v5516_v8, %v76_v59  ;;  %v78_v63 = vmul.u32 2, %v5620_v60 }
   0xb   :  { %4764 = vmatpush3.bf16.msra.mxu0 %v4761_v17  ;;  %v61_v47 = vld [vmem:[%s7163_s1 + $0x78] sm:$0xff]  ;;  %v4781_v48 = vpack.c.bf16 %v43_v44, %v42_v43  ;;  %v44_v50 = vld [vmem:[%s7164_s0 + $0x70] sm:$0xff]  ;;  %7183 = vst [vmem:[#allocation8_spill] sm:$0xff] %v5620_v60  ;;  %7184 = vst [vmem:[#allocation9_spill] sm:$0xff] %v5625_v62  ;;  %v5632_v0 = vadd.s32 56, %v5514_v7  ;;  %vm85_vm4 = vcmp.eq.s32.totalorder %v5516_v8, %v77_v61  ;;  %v79_v1 = vmul.u32 2, %v5625_v62 }
   0xc   :  { %4766 = vmatprep.subr.bf16.mxu0 %v4765_v24  ;;  %v45_v51 = vld [vmem:[%s7164_s0 + $0x78] sm:$0xff]  ;;  %v4817_v52 = vpack.c.bf16 %v61_v47, %v60_v46  ;;  %vm86_vm5 = vcmp.eq.s32.totalorder %v5516_v8, %v78_v63  ;;  %v5710_v37 = vld [vmem:[%s7165_s2 + $0x8] sm:$0xff]  ;;  %vm5902_vm10 = vmpackc.low %vm847_vm9, %vm847_vm9  ;;  %s5474_s1 = smov 32   ;;  %vm2674_vm13 = vcmask 195584  }
   0xd   :  { %4800 = vmatpush3.bf16.msra.mxu1 %v4797_v19  ;;  %v4785_v54 = vpack.c.bf16 %v45_v51, %v44_v50  ;;  %7185 = vst [vmem:[#allocation10_spill] sm:$0xff] %v5632_v0  ;;  %v80_v2 = vmul.u32 2, %v5632_v0  ;;  %vm87_vm6 = vcmp.eq.s32.totalorder %v5516_v8, %v79_v1  ;;  %v1700_v7 = vld [vmem:[%s7165_s2 + $0xe0] sm:$0xff] }
   0xe   :  { %4802 = vmatprep.subr.bf16.mxu1 %v4801_v27 }
   0xf   :  { %4768 = vmatpush3.bf16.msra.mxu0 %v4765_v24  ;;  %vm88_vm7 = vcmp.eq.s32.totalorder %v5516_v8, %v80_v2 }
  0x10   :  { %4770 = vmatprep.subr.bf16.mxu0 %v4769_v30 }
  0x11   :  { %4804 = vmatpush3.bf16.msra.mxu1 %v4801_v27 }
  0x12   :  { %4806 = vmatprep.subr.bf16.mxu1 %v4805_v33 }
  0x13   :  { %4772 = vmatpush3.bf16.msra.mxu0 %v4769_v30 }
  0x14   :  { %4774 = vmatprep.subr.bf16.mxu0 %v4773_v36 }
  0x15   :  { %4808 = vmatpush3.bf16.msra.mxu1 %v4805_v33 }
  0x16   :  { %4810 = vmatprep.subr.bf16.mxu1 %v4809_v39 }
  0x17   :  { %4776 = vmatpush3.bf16.msra.mxu0 %v4773_v36  ;;  %v5705_v36 = vld [vmem:[%s7165_s2] sm:$0xff] }
  0x18   :  { %4778 = vmatprep.subr.bf16.mxu0 %v4777_v42  ;;  %v5059_v38 = vpack.i.bf16 %v5710_v37, %v5705_v36 }
  0x19   :  { %4812 = vmatpush3.bf16.msra.mxu1 %v4809_v39 }
  0x1a   :  { %4814 = vmatprep.subr.bf16.mxu1 %v4813_v45 }
  0x1b   :  { %4780 = vmatpush3.bf16.msra.mxu0 %v4777_v42 }
  0x1c   :  { %4782 = vmatprep.subr.bf16.mxu0 %v4781_v48 }
  0x1d   :  { %4816 = vmatpush3.bf16.msra.mxu1 %v4813_v45 }
  0x1e   :  { %4818 = vmatprep.subr.bf16.mxu1 %v4817_v52 }
  0x1f   :  { %4784 = vmatpush3.bf16.msra.mxu0 %v4781_v48 }
  0x20   :  { %4786 = vmatprep.subr.bf16.mxu0 %v4785_v54 }
  0x21   :  { %4820 = vmatpush3.bf16.msra.mxu1 %v4817_v52 }
  0x23   :  { %4788 = vmatpush3.bf16.msra.mxu0 %v4785_v54 }
  0x24   :  { %4358 = vmatmul.mubr.msk.f32.vlgmr.msra.gmra.mrb[0].mxu1 %vm82_vm1, %v5465_v23 }
  0x25   :  { %4360 = vmatprep.mubr.msk.f32.mxu1 %vm83_vm2, %v5465_v23 }
  0x26   :  { %4314 = vmatmul.mubr.msk.f32.vlgmr.msra.gmra.mrb[0].mxu0 %vm82_vm1, %v5465_v23 }
  0x27   :  { %4316 = vmatprep.mubr.msk.f32.mxu0 %vm83_vm2, %v5465_v23 }
  0x28   :  { %4361 = vmatmul.mubr.msk.f32.gmra.mrb[2].mxu1 %vm84_vm3, %v5465_v23 }
  0x29   :  { %4363 = vmatprep.mubr.msk.f32.mxu1 %vm85_vm4, %v5465_v23 }
  0x2a   :  { %4317 = vmatmul.mubr.msk.f32.gmra.mrb[2].mxu0 %vm84_vm3, %v5465_v23 }
  0x2b   :  { %4319 = vmatprep.mubr.msk.f32.mxu0 %vm85_vm4, %v5465_v23 }
  0x2c   :  { %4364 = vmatmul.mubr.msk.f32.gmra.mrb[4].mxu1 %vm86_vm5, %v5465_v23 }
  0x2d   :  { %4366 = vmatprep.mubr.msk.f32.mxu1 %vm87_vm6, %v5465_v23 }
  0x2e   :  { %4320 = vmatmul.mubr.msk.f32.gmra.mrb[4].mxu0 %vm86_vm5, %v5465_v23 }
  0x2f   :  { %4322 = vmatprep.mubr.msk.f32.mxu0 %vm87_vm6, %v5465_v23 }
  0x30   :  { %4367 = vmatmul.mubr.msk.f32.gmra.mrb[6].mxu1 %vm88_vm7, %v5465_v23 }
  0x32   :  { %4323 = vmatmul.mubr.msk.f32.gmra.mrb[6].mxu0 %vm88_vm7, %v5465_v23 }
  0xf7   :  { %v4359_v3 = vpop.f32.mrb[0].mxu1 }
  0xf8   :  { %v268_v4 = vpop.f32.mrb[1].mxu1  ;;  %v440_v5 = vsel %vm307_vm8, %v4359_v3, 0.0 }
  0xf9   :  { %441 = vadd.xlane.f32.xlu0 %v440_v5  ;;  %v5653_v6 = vpop.f32.mrb[0].mxu0  ;;  %v437_v12 = vsel %vm307_vm8, %v268_v4, 0.0 }
  0xfa   :  { %v5655_v9 = vpop.f32.mrb[1].mxu0  ;;  %v311_v31 = vsel %vm307_vm8, %v5653_v6, 0.0 }
  0xfb   :  { %v5657_v10 = vpop.f32.mrb[2].mxu1  ;;  %v308_v22 = vsel %vm307_vm8, %v5655_v9, 0.0 }
  0xfc   :  { %v278_v11 = vpop.f32.mrb[3].mxu1  ;;  %v446_v18 = vsel %vm307_vm8, %v5657_v10, 0.0 }
  0xfd   :  { %438 = vadd.xlane.f32.xlu0 %v437_v12  ;;  %v443_v13 = vsel %vm307_vm8, %v278_v11, 0.0  ;;  %v5661_v14 = vpop.f32.mrb[2].mxu0 }
  0xfe   :  { %444 = vadd.xlane.f32.xlu1 %v443_v13  ;;  %v5663_v15 = vpop.f32.mrb[3].mxu0  ;;  %v317_v33 = vsel %vm307_vm8, %v5661_v14, 0.0 }
  0xff   :  { %v5665_v16 = vpop.f32.mrb[4].mxu1  ;;  %v314_v29 = vsel %vm307_vm8, %v5663_v15, 0.0 }
 0x100   :  { %v288_v17 = vpop.f32.mrb[5].mxu1  ;;  %v452_v25 = vsel %vm307_vm8, %v5665_v16, 0.0 }
 0x101   :  { %v449_v19 = vsel %vm307_vm8, %v288_v17, 0.0  ;;  %v5670_v20 = vpop.f32.mrb[4].mxu0 }
 0x102   :  { %447 = vadd.xlane.f32.xlu1 %v446_v18  ;;  %450 = vadd.xlane.f32.xlu0 %v449_v19  ;;  %v5672_v21 = vpop.f32.mrb[5].mxu0  ;;  %v323_v34 = vsel %vm307_vm8, %v5670_v20, 0.0 }
 0x103   :  { %v5676_v23 = vpop.f32.mrb[6].mxu1  ;;  %v320_v30 = vsel %vm307_vm8, %v5672_v21, 0.0 }
 0x104   :  { %v5678_v24 = vpop.f32.mrb[7].mxu1  ;;  %v458_v28 = vsel %vm307_vm8, %v5676_v23, 0.0 }
 0x105   :  { %v5682_v26 = vpop.f32.mrb[6].mxu0  ;;  %v455_v32 = vsel %vm307_vm8, %v5678_v24, 0.0 }
 0x106   :  { %453 = vadd.xlane.f32.xlu1 %v452_v25  ;;  %309 = vadd.xlane.f32.xlu0 %v308_v22  ;;  %v5684_v27 = vpop.f32.mrb[7].mxu0  ;;  %v329_v35 = vsel %vm307_vm8, %v5682_v26, 0.0 }
 0x107   :  { %v326_v39 = vsel %vm307_vm8, %v5684_v27, 0.0 }
 0x10a   :  { %459 = vadd.xlane.f32.xlu1 %v458_v28  ;;  %315 = vadd.xlane.f32.xlu0 %v314_v29 }
 0x10e   :  { %312 = vadd.xlane.f32.xlu1 %v311_v31  ;;  %321 = vadd.xlane.f32.xlu0 %v320_v30 }
 0x112   :  { %318 = vadd.xlane.f32.xlu1 %v317_v33  ;;  %456 = vadd.xlane.f32.xlu0 %v455_v32 }
 0x116   :  { %324 = vadd.xlane.f32.xlu1 %v323_v34 }
 0x11a   :  { %330 = vadd.xlane.f32.xlu1 %v329_v35 }
 0x128   :  { %5060 = vrot.lane.b32.xlu0 %v5059_v38, %s5466_s25 }
 0x147   :  { %327 = vadd.xlane.f32.xlu0 %v326_v39 }
 0x186   :  { %v442_v40 = vpop.xlane.xlu0 %441 }
 0x187   :  { %v462_v41 = vmul.f32 0.03125, %v442_v40 }
 0x189   :  { %v5717_v42 = vsub.f32 %v4359_v3, %v462_v41 }
 0x18a   :  { %v439_v43 = vpop.xlane.xlu0 %438 }
 0x18b   :  { %v461_v44 = vmul.f32 0.03125, %v439_v43  ;;  %v445_v45 = vpop.xlane.xlu1 %444  ;;  %v478_v46 = vmul.f32 %v5717_v42, %v5717_v42 }
 0x18c   :  { %v463_v47 = vmul.f32 0.03125, %v445_v45 }
 0x18d   :  { %v5721_v48 = vsub.f32 %v268_v4, %v461_v44  ;;  %v488_v50 = vsel %vm307_vm8, %v478_v46, 0.0  ;;  %v16_v44 = vld [vmem:[%s7165_s2 + $0x10] sm:$0xff]  ;;  %v5771_v46 = vld [vmem:[%s7165_s2 + $0x60] ss:$0 sm:$0xff] }
 0x18e   :  { %v5724_v51 = vsub.f32 %v278_v11, %v463_v47  ;;  %489 = vadd.xlane.f32.xlu1 %v488_v50 }
 0x18f   :  { %v448_v52 = vpop.xlane.xlu1 %447  ;;  %v451_v54 = vpop.xlane.xlu0 %450  ;;  %v477_v55 = vmul.f32 %v5721_v48, %v5721_v48 }
 0x190   :  { %v464_v57 = vmul.f32 0.03125, %v448_v52  ;;  %v465_v59 = vmul.f32 0.03125, %v451_v54  ;;  %v479_v63 = vmul.f32 %v5724_v51, %v5724_v51 }
 0x191   :  { %v485_v61 = vsel %vm307_vm8, %v477_v55, 0.0 }
 0x192   :  { %v5732_v1 = vsub.f32 %v5657_v10, %v464_v57  ;;  %v5734_v2 = vsub.f32 %v288_v17, %v465_v59  ;;  %486 = vadd.xlane.f32.xlu0 %v485_v61  ;;  %v491_v12 = vsel %vm307_vm8, %v479_v63, 0.0 }
 0x193   :  { %v454_v3 = vpop.xlane.xlu1 %453  ;;  %v310_v4 = vpop.xlane.xlu0 %309 }
 0x194   :  { %v466_v5 = vmul.f32 0.03125, %v454_v3  ;;  %v480_v11 = vmul.f32 %v5732_v1, %v5732_v1  ;;  %v481_v13 = vmul.f32 %v5734_v2, %v5734_v2  ;;  %v333_v50 = vmul.f32 0.03125, %v310_v4 }
 0x196   :  { %v5742_v18 = vsub.f32 %v5665_v16, %v466_v5  ;;  %492 = vadd.xlane.f32.xlu0 %v491_v12  ;;  %v494_v10 = vsel %vm307_vm8, %v480_v11, 0.0  ;;  %v497_v28 = vsel %vm307_vm8, %v481_v13, 0.0  ;;  %v5776_v52 = vsub.f32 %v5655_v9, %v333_v50 }
 0x197   :  { %v460_v17 = vpop.xlane.xlu1 %459  ;;  %v316_v19 = vpop.xlane.xlu0 %315  ;;  %495 = vadd.xlane.f32.xlu1 %v494_v10 }
 0x198   :  { %v468_v22 = vmul.f32 0.03125, %v460_v17  ;;  %v482_v25 = vmul.f32 %v5742_v18, %v5742_v18  ;;  %v335_v54 = vmul.f32 0.03125, %v316_v19  ;;  %v349_v63 = vmul.f32 %v5776_v52, %v5776_v52 }
 0x19a   :  { %v5749_v29 = vsub.f32 %v5676_v23, %v468_v22  ;;  %498 = vadd.xlane.f32.xlu0 %v497_v28  ;;  %v500_v30 = vsel %vm307_vm8, %v482_v25, 0.0  ;;  %v5779_v61 = vsub.f32 %v5663_v15, %v335_v54  ;;  %v357_v9 = vsel %vm307_vm8, %v349_v63, 0.0 }
 0x19b   :  { %v322_v16 = vpop.xlane.xlu0 %321  ;;  %501 = vadd.xlane.f32.xlu1 %v500_v30  ;;  %v313_v47 = vpop.xlane.xlu1 %312 }
 0x19c   :  { %v484_v31 = vmul.f32 %v5749_v29, %v5749_v29  ;;  %v334_v57 = vmul.f32 0.03125, %v313_v47  ;;  %v337_v59 = vmul.f32 0.03125, %v322_v16  ;;  %v351_v12 = vmul.f32 %v5779_v61, %v5779_v61 }
 0x19e   :  { %v506_v32 = vsel %vm307_vm8, %v484_v31, 0.0  ;;  %v5784_v3 = vsub.f32 %v5653_v6, %v334_v57  ;;  %v5787_v5 = vsub.f32 %v5672_v21, %v337_v59  ;;  %v363_v22 = vsel %vm307_vm8, %v351_v12, 0.0 }
 0x19f   :  { %v457_v33 = vpop.xlane.xlu0 %456  ;;  %507 = vadd.xlane.f32.xlu1 %v506_v32  ;;  %v319_v55 = vpop.xlane.xlu1 %318 }
 0x1a0   :  { %v467_v34 = vmul.f32 0.03125, %v457_v33  ;;  %v336_v11 = vmul.f32 0.03125, %v319_v55  ;;  %v353_v10 = vmul.f32 %v5787_v5, %v5787_v5  ;;  %v350_v6 = vmul.f32 %v5784_v3, %v5784_v3 }
 0x1a2   :  { %v5756_v35 = vsub.f32 %v5678_v24, %v467_v34  ;;  %v17_v24 = vld [vmem:[%s7165_s2 + $0x18] sm:$0xff]  ;;  %v5797_v17 = vsub.f32 %v5661_v14, %v336_v11  ;;  %v369_v28 = vsel %vm307_vm8, %v353_v10, 0.0  ;;  %v360_v30 = vsel %vm307_vm8, %v350_v6, 0.0 }
 0x1a3   :  { %v5061_v38 = vpop.permute.xlu0 %5060  ;;  %v5064_v45 = vpack.i.bf16 %v17_v24, %v16_v44  ;;  %v325_v4 = vpop.xlane.xlu1 %324 }
 0x1a4   :  { %v483_v23 = vmul.f32 %v5756_v35, %v5756_v35  ;;  %v5063_v39 = vunpack.i.h.bf16 %v5061_v38  ;;  %v5062_v40 = vunpack.i.l.bf16 %v5061_v38  ;;  %v338_v21 = vmul.f32 0.03125, %v325_v4 }
 0x1a5   :  { %v352_v14 = vmul.f32 %v5797_v17, %v5797_v17 }
 0x1a6   :  { %v503_v41 = vsel %vm307_vm8, %v483_v23, 0.0  ;;  %v4829_v43 = vpack.c.bf16 %v5063_v39, %v5062_v40  ;;  %v5806_v16 = vsub.f32 %v5670_v20, %v338_v21  ;;  %v4825_v40 = vpack.c.bf16 %v17_v24, %v16_v44 }
 0x1a7   :  { %504 = vadd.xlane.f32.xlu0 %v503_v41  ;;  %v331_v25 = vpop.xlane.xlu1 %330  ;;  %v366_v33 = vsel %vm307_vm8, %v352_v14, 0.0  ;;  %v5828_v41 = vld [vmem:[%s7165_s2 + $0x61] ss:$0 sm:$0xff] }
 0x1a8   :  { %4830 = vmatprep.subr.bf16.mxu1 %v4829_v43  ;;  %v340_v31 = vmul.f32 0.03125, %v331_v25  ;;  %v354_v20 = vmul.f32 %v5806_v16, %v5806_v16 }
 0x1a9   :  { %4832 = vmatpush3.bf16.msra.mxu1 %v4829_v43 }
 0x1aa   :  { %v372_v38 = vsel %vm307_vm8, %v354_v20, 0.0 }
 0x1b0   :  { %5065 = vrot.lane.b32.xlu1 %v5064_v45, %s5466_s25 }
 0x1bd   :  { %426 = vrot.lane.b32.xlu0 %v5771_v46, %s5466_s25 }
 0x1d4   :  { %358 = vadd.xlane.f32.xlu1 %v357_v9  ;;  %v328_v13 = vpop.xlane.xlu0 %327 }
 0x1d5   :  { %v339_v15 = vmul.f32 0.03125, %v328_v13 }
 0x1d7   :  { %v5800_v19 = vsub.f32 %v5684_v27, %v339_v15  ;;  %v5813_v27 = vsub.f32 %v5682_v26, %v340_v31  ;;  %v4821_v26 = vpack.c.bf16 %v5710_v37, %v5705_v36 }
 0x1d8   :  { %364 = vadd.xlane.f32.xlu1 %v363_v22 }
 0x1d9   :  { %v355_v32 = vmul.f32 %v5800_v19, %v5800_v19  ;;  %v356_v23 = vmul.f32 %v5813_v27, %v5813_v27  ;;  %4822 = vmatprep.subr.bf16.mxu0 %v4821_v26 }
 0x1da   :  { %4824 = vmatpush3.bf16.msra.mxu0 %v4821_v26 }
 0x1db   :  { %v375_v34 = vsel %vm307_vm8, %v355_v32, 0.0  ;;  %v378_v39 = vsel %vm307_vm8, %v356_v23, 0.0  ;;  %4826 = vmatprep.subr.bf16.mxu0 %v4825_v40 }
 0x1dc   :  { %370 = vadd.xlane.f32.xlu1 %v369_v28  ;;  %361 = vadd.xlane.f32.xlu0 %v360_v30 }
 0x1de   :  { %4828 = vmatpush3.bf16.msra.mxu0 %v4825_v40 }
 0x1e0   :  { %367 = vadd.xlane.f32.xlu0 %v366_v33  ;;  %376 = vadd.xlane.f32.xlu1 %v375_v34 }
 0x1e4   :  { %373 = vadd.xlane.f32.xlu0 %v372_v38 }
 0x1e8   :  { %379 = vadd.xlane.f32.xlu0 %v378_v39 }
 0x1f1   :  { %707 = vrot.lane.b32.xlu1 %v5828_v41, %s5466_s25 }
 0x21b   :  { %v490_v43 = vpop.xlane.xlu1 %489 }
 0x21c   :  { %v510_v45 = vmul.f32 0.03125, %v490_v43 }
 0x21e   :  { %v518_v54 = vadd.f32 1e-05, %v510_v45 }
 0x21f   :  { %v487_v47 = vpop.xlane.xlu0 %486 }
 0x220   :  { %v509_v50 = vmul.f32 0.03125, %v487_v47  ;;  %5219 = vrsqrt.f32 %v518_v54 }
 0x222   :  { %v517_v55 = vadd.f32 1e-05, %v509_v50 }
 0x223   :  { %v493_v36 = vpop.xlane.xlu0 %492 }
 0x224   :  { %v511_v37 = vmul.f32 0.03125, %v493_v36  ;;  %v496_v57 = vpop.xlane.xlu1 %495  ;;  %5221 = vrsqrt.f32 %v517_v55 }
 0x225   :  { %v512_v44 = vmul.f32 0.03125, %v496_v57 }
 0x226   :  { %v519_v24 = vadd.f32 1e-05, %v511_v37 }
 0x227   :  { %v520_v59 = vadd.f32 1e-05, %v512_v44  ;;  %v499_v63 = vpop.xlane.xlu0 %498 }
 0x228   :  { %5223 = vrsqrt.f32 %v519_v24  ;;  %v513_v4 = vmul.f32 0.03125, %v499_v63  ;;  %v502_v11 = vpop.xlane.xlu1 %501 }
 0x229   :  { %5225 = vrsqrt.f32 %v520_v59  ;;  %v514_v9 = vmul.f32 0.03125, %v502_v11 }
 0x22a   :  { %v521_v12 = vadd.f32 1e-05, %v513_v4  ;;  %v5220_v6 = vpop.eup %5219 }
 0x22b   :  { %v522_v13 = vadd.f32 1e-05, %v514_v9  ;;  %v534_v32 = vmul.f32 %v5220_v6, %v5717_v42 }
 0x22c   :  { %5227 = vrsqrt.f32 %v521_v12  ;;  %v508_v15 = vpop.xlane.xlu1 %507 }
 0x22d   :  { %5229 = vrsqrt.f32 %v522_v13  ;;  %v516_v10 = vmul.f32 0.03125, %v508_v15  ;;  %v542_v43 = vmul.f32 %v5771_v46, %v534_v32 }
 0x22e   :  { %v5222_v21 = vpop.eup %5221 }
 0x22f   :  { %v524_v22 = vadd.f32 1e-05, %v516_v10  ;;  %v533_v34 = vmul.f32 %v5222_v21, %v5721_v48 }
 0x230   :  { %v5066_v25 = vpop.permute.xlu1 %5065 }
 0x231   :  { %v5068_v28 = vunpack.i.h.bf16 %v5066_v25  ;;  %v5067_v30 = vunpack.i.l.bf16 %v5066_v25  ;;  %5231 = vrsqrt.f32 %v524_v22  ;;  %v541_v47 = vmul.f32 %v5771_v46, %v533_v34 }
 0x232   :  { %v5224_v31 = vpop.eup %5223 }
 0x233   :  { %v5226_v14 = vpop.eup %5225  ;;  %v4833_v33 = vpack.c.bf16 %v5068_v28, %v5067_v30  ;;  %v535_v23 = vmul.f32 %v5224_v31, %v5724_v51 }
 0x234   :  { %v505_v20 = vpop.xlane.xlu0 %504  ;;  %v536_v26 = vmul.f32 %v5226_v14, %v5732_v1 }
 0x235   :  { %v515_v38 = vmul.f32 0.03125, %v505_v20  ;;  %4834 = vmatprep.subr.bf16.mxu1 %v4833_v33  ;;  %v543_v51 = vmul.f32 %v5771_v46, %v535_v23 }
 0x236   :  { %v5228_v39 = vpop.eup %5227  ;;  %4836 = vmatpush3.bf16.msra.mxu1 %v4833_v33  ;;  %v544_v55 = vmul.f32 %v5771_v46, %v536_v26 }
 0x237   :  { %v5230_v40 = vpop.eup %5229  ;;  %v523_v45 = vadd.f32 1e-05, %v515_v38  ;;  %v537_v42 = vmul.f32 %v5228_v39, %v5734_v2 }
 0x238   :  { %v5839_v50 = vpop.permute.xlu0 %426  ;;  %v538_v1 = vmul.f32 %v5230_v40, %v5742_v18 }
 0x239   :  { %5233 = vrsqrt.f32 %v523_v45  ;;  %v549_v48 = vadd.f32 %v541_v47, %v5839_v50  ;;  %v550_v54 = vadd.f32 %v542_v43, %v5839_v50  ;;  %v551_v36 = vadd.f32 %v543_v51, %v5839_v50 }
 0x23a   :  { %v545_v37 = vmul.f32 %v5771_v46, %v537_v42  ;;  %v552_v57 = vadd.f32 %v544_v55, %v5839_v50  ;;  %v546_v44 = vmul.f32 %v5771_v46, %v538_v1 }
 0x23b   :  { %4397 = vmatprep.mubr.msk.f32.mxu1 %vm307_vm8, %v549_v48  ;;  %v5232_v2 = vpop.eup %5231 }
 0x23c   :  { %4398 = vmatmul.mubr.msk.f32.vlgmr.msra.gmra.mrb[8].mxu1 %vm307_vm8, %v550_v54  ;;  %v553_v24 = vadd.f32 %v545_v37, %v5839_v50  ;;  %v540_v18 = vmul.f32 %v5232_v2, %v5749_v29  ;;  %v554_v59 = vadd.f32 %v546_v44, %v5839_v50 }
 0x23d   :  { %4400 = vmatprep.mubr.msk.f32.mxu1 %vm307_vm8, %v551_v36 }
 0x23e   :  { %v548_v11 = vmul.f32 %v5771_v46, %v540_v18 }
 0x240   :  { %4401 = vmatmul.mubr.msk.f32.gmra.mrb[10].mxu1 %vm307_vm8, %v552_v57  ;;  %v556_v13 = vadd.f32 %v548_v11, %v5839_v50 }
 0x241   :  { %4403 = vmatprep.mubr.msk.f32.mxu1 %vm307_vm8, %v553_v24 }
 0x243   :  { %v5234_v63 = vpop.eup %5233 }
 0x244   :  { %4404 = vmatmul.mubr.msk.f32.gmra.mrb[12].mxu1 %vm307_vm8, %v554_v59  ;;  %v539_v4 = vmul.f32 %v5234_v63, %v5756_v35 }
 0x246   :  { %v547_v9 = vmul.f32 %v5771_v46, %v539_v4 }
 0x248   :  { %v555_v12 = vadd.f32 %v547_v9, %v5839_v50 }
 0x24a   :  { %4406 = vmatprep.mubr.msk.f32.mxu1 %vm307_vm8, %v555_v12 }
 0x24b   :  { %4407 = vmatmul.mubr.msk.f32.gmra.mrb[14].mxu1 %vm307_vm8, %v556_v13 }
 0x261   :  { %v359_v29 = vpop.xlane.xlu1 %358 }
 0x262   :  { %v381_v15 = vmul.f32 0.03125, %v359_v29 }
 0x264   :  { %v389_v10 = vadd.f32 1e-05, %v381_v15 }
 0x265   :  { %v365_v6 = vpop.xlane.xlu1 %364 }
 0x266   :  { %5235 = vrsqrt.f32 %v389_v10  ;;  %v383_v21 = vmul.f32 0.03125, %v365_v6 }
 0x268   :  { %v391_v22 = vadd.f32 1e-05, %v383_v21 }
 0x269   :  { %v371_v35 = vpop.xlane.xlu1 %370  ;;  %v362_v25 = vpop.xlane.xlu0 %361 }
 0x26a   :  { %5237 = vrsqrt.f32 %v391_v22  ;;  %v385_v28 = vmul.f32 0.03125, %v371_v35  ;;  %v382_v30 = vmul.f32 0.03125, %v362_v25 }
 0x26c   :  { %v393_v31 = vadd.f32 1e-05, %v385_v28  ;;  %v390_v14 = vadd.f32 1e-05, %v382_v30 }
 0x26d   :  { %v377_v32 = vpop.xlane.xlu1 %376  ;;  %v368_v33 = vpop.xlane.xlu0 %367 }
 0x26e   :  { %5239 = vrsqrt.f32 %v393_v31  ;;  %v387_v34 = vmul.f32 0.03125, %v377_v32  ;;  %v384_v20 = vmul.f32 0.03125, %v368_v33 }
 0x26f   :  { %5241 = vrsqrt.f32 %v390_v14 }
 0x270   :  { %v5236_v38 = vpop.eup %5235  ;;  %v395_v23 = vadd.f32 1e-05, %v387_v34  ;;  %v392_v39 = vadd.f32 1e-05, %v384_v20 }
 0x271   :  { %v374_v26 = vpop.xlane.xlu0 %373  ;;  %v405_v40 = vmul.f32 %v5236_v38, %v5776_v52  ;;  %v708_v22 = vpop.permute.xlu1 %707 }
 0x272   :  { %5243 = vrsqrt.f32 %v395_v23  ;;  %v386_v43 = vmul.f32 0.03125, %v374_v26 }
 0x273   :  { %5245 = vrsqrt.f32 %v392_v39  ;;  %v417_v45 = vmul.f32 %v5771_v46, %v405_v40 }
 0x274   :  { %v5238_v47 = vpop.eup %5237  ;;  %v394_v42 = vadd.f32 1e-05, %v386_v43 }
 0x275   :  { %v380_v48 = vpop.xlane.xlu0 %379  ;;  %v429_v54 = vadd.f32 %v5839_v50, %v417_v45  ;;  %v407_v55 = vmul.f32 %v5238_v47, %v5779_v61 }
 0x276   :  { %5247 = vrsqrt.f32 %v394_v42  ;;  %v388_v51 = vmul.f32 0.03125, %v380_v48 }
 0x277   :  { %4377 = vmatprep.mubr.msk.f32.mxu0 %vm307_vm8, %v429_v54  ;;  %v419_v2 = vmul.f32 %v5771_v46, %v407_v55 }
 0x278   :  { %v5240_v1 = vpop.eup %5239  ;;  %v396_v36 = vadd.f32 1e-05, %v388_v51 }
 0x279   :  { %v5242_v37 = vpop.eup %5241  ;;  %v409_v57 = vmul.f32 %v5240_v1, %v5787_v5  ;;  %v431_v61 = vadd.f32 %v5839_v50, %v419_v2 }
 0x27a   :  { %v406_v52 = vmul.f32 %v5242_v37, %v5784_v3  ;;  %5249 = vrsqrt.f32 %v396_v36 }
 0x27b   :  { %v421_v4 = vmul.f32 %v5771_v46, %v409_v57 }
 0x27c   :  { %v5244_v44 = vpop.eup %5243  ;;  %v418_v24 = vmul.f32 %v5771_v46, %v406_v52 }
 0x27d   :  { %v5246_v18 = vpop.eup %5245  ;;  %v411_v11 = vmul.f32 %v5244_v44, %v5800_v19  ;;  %v433_v13 = vadd.f32 %v5839_v50, %v421_v4 }
 0x27e   :  { %v430_v59 = vadd.f32 %v5839_v50, %v418_v24  ;;  %v408_v63 = vmul.f32 %v5246_v18, %v5797_v17 }
 0x27f   :  { %v423_v29 = vmul.f32 %v5771_v46, %v411_v11 }
 0x280   :  { %v5248_v3 = vpop.eup %5247  ;;  %4378 = vmatmul.mubr.msk.f32.vlgmr.msra.gmra.mrb[8].mxu0 %vm307_vm8, %v430_v59  ;;  %v420_v9 = vmul.f32 %v5771_v46, %v408_v63 }
 0x281   :  { %4380 = vmatprep.mubr.msk.f32.mxu0 %vm307_vm8, %v431_v61  ;;  %v410_v5 = vmul.f32 %v5248_v3, %v5806_v16  ;;  %v435_v6 = vadd.f32 %v5839_v50, %v423_v29 }
 0x282   :  { %v432_v12 = vadd.f32 %v5839_v50, %v420_v9 }
 0x283   :  { %v422_v17 = vmul.f32 %v5771_v46, %v410_v5 }
 0x284   :  { %v5250_v15 = vpop.eup %5249  ;;  %4381 = vmatmul.mubr.msk.f32.gmra.mrb[10].mxu0 %vm307_vm8, %v432_v12 }
 0x285   :  { %4383 = vmatprep.mubr.msk.f32.mxu0 %vm307_vm8, %v433_v13  ;;  %v434_v19 = vadd.f32 %v5839_v50, %v422_v17  ;;  %v412_v10 = vmul.f32 %v5250_v15, %v5813_v27 }
 0x287   :  { %v424_v16 = vmul.f32 %v5771_v46, %v412_v10 }
 0x288   :  { %4384 = vmatmul.mubr.msk.f32.gmra.mrb[12].mxu0 %vm307_vm8, %v434_v19 }
 0x289   :  { %4386 = vmatprep.mubr.msk.f32.mxu0 %vm307_vm8, %v435_v6  ;;  %v436_v21 = vadd.f32 %v5839_v50, %v424_v16 }
 0x28c   :  { %4387 = vmatmul.mubr.msk.f32.gmra.mrb[14].mxu0 %vm307_vm8, %v436_v21 }
 0x30f   :  { %v4399_v35 = vpop.f32.mrb[8].mxu1 }
 0x310   :  { %v806_v25 = vadd.f32 %v4399_v35, %v708_v22  ;;  %v800_v28 = vpop.f32.mrb[9].mxu1 }
 0x311   :  { %v801_v30 = vadd.f32 %v800_v28, %v708_v22 }
 0x313   :  { %v4402_v31 = vpop.f32.mrb[10].mxu1  ;;  %v5898_v27 = vpack.i.bf16 %v806_v25, %v801_v30  ;;  %v4837_v14 = vpack.c.bf16 %v806_v25, %v801_v30 }
 0x314   :  { %v816_v32 = vadd.f32 %v4402_v31, %v708_v22  ;;  %v810_v50 = vpop.f32.mrb[11].mxu1 }
 0x315   :  { %v811_v33 = vadd.f32 %v810_v50, %v708_v22  ;;  %5075 = vrot.lane.b32.xlu1 %v5898_v27, %s5467_s7  ;;  %5070 = vrot.lane.b32.xlu0 %v5898_v27, %s5466_s25 }
 0x316   :  { %4839 = vmatprep.subr.msk.bf16.mxu0 %vm5902_vm10, %v4837_v14 }
 0x317   :  { %4842 = vmatpush3.bf16.xpose.msk.msra.mxu0 %vm5902_vm10, %v4837_v14  ;;  %v4405_v34 = vpop.f32.mrb[12].mxu1  ;;  %v5914_v20 = vpack.i.bf16 %v816_v32, %v811_v33  ;;  %v4843_v38 = vpack.c.bf16 %v816_v32, %v811_v33  ;;  %v840_v32 = vld [vmem:[%s7165_s2 + $0x70] sm:$0xff]  ;;  %v839_v33 = vld [vmem:[%s7165_s2 + $0x68] sm:$0xff] }
 0x318   :  { %v826_v23 = vadd.f32 %v4405_v34, %v708_v22  ;;  %v820_v39 = vpop.f32.mrb[13].mxu1 }
 0x319   :  { %v821_v26 = vadd.f32 %v820_v39, %v708_v22  ;;  %5080 = vrot.lane.b32.xlu1 %v5914_v20, %s5466_s25  ;;  %4845 = vmatprep.subr.msk.bf16.mxu0 %vm5902_vm10, %v4843_v38 }
 0x31b   :  { %v5920_v40 = vpack.i.bf16 %v826_v23, %v821_v26  ;;  %v4849_v43 = vpack.c.bf16 %v826_v23, %v821_v26  ;;  %v841_v26 = vld [vmem:[%s7165_s2 + $0x78] sm:$0xff] }
 0x31d   :  { %5085 = vrot.lane.b32.xlu1 %v5920_v40, %s5466_s25 }
 0x31e   :  { %v4408_v45 = vpop.f32.mrb[14].mxu1 }
 0x31f   :  { %v836_v47 = vadd.f32 %v4408_v45, %v708_v22  ;;  %4848 = vmatpush3.bf16.xpose.msk.msra.mxu0 %vm5902_vm10, %v4843_v38  ;;  %v830_v42 = vpop.f32.mrb[15].mxu1 }
 0x320   :  { %v831_v48 = vadd.f32 %v830_v42, %v708_v22  ;;  %4851 = vmatprep.subr.msk.bf16.mxu0 %vm5902_vm10, %v4849_v43 }
 0x322   :  { %v5928_v54 = vpack.i.bf16 %v836_v47, %v831_v48  ;;  %v4855_v51 = vpack.c.bf16 %v836_v47, %v831_v48  ;;  %v844_v48 = vld [vmem:[%s7165_s2 + $0x90] sm:$0xff] }
 0x324   :  { %5090 = vrot.lane.b32.xlu1 %v5928_v54, %s5466_s25  ;;  %s5470_s25 = smov 112  }
 0x327   :  { %4854 = vmatpush3.bf16.xpose.msk.msra.mxu0 %vm5902_vm10, %v4849_v43  ;;  %v842_v43 = vld [vmem:[%s7165_s2 + $0x80] sm:$0xff] }
 0x328   :  { %4857 = vmatprep.subr.msk.bf16.mxu0 %vm5902_vm10, %v4855_v51 }
 0x32f   :  { %4860 = vmatpush3.bf16.xpose.msk.msra.mxu0 %vm5902_vm10, %v4855_v51 }
 0x353   :  { %v4379_v55 = vpop.f32.mrb[8].mxu0 }
 0x354   :  { %v651_v1 = vpop.f32.mrb[9].mxu0  ;;  %v5942_v37 = vadd.f32 %v4379_v55, %v5828_v41 }
 0x355   :  { %v5939_v36 = vadd.f32 %v5828_v41, %v651_v1 }
 0x357   :  { %v4382_v52 = vpop.f32.mrb[10].mxu0  ;;  %4425 = vmatprep.mubr.msk.f32.mxu0 %vm847_vm9, %v5939_v36 }
 0x358   :  { %v661_v2 = vpop.f32.mrb[11].mxu0  ;;  %4426 = vmatmul.mubr.msk.f32.vlgmr.msra.gmra.mrb[16].mxu0 %vm847_vm9, %v5942_v37  ;;  %v5952_v44 = vadd.f32 %v4382_v52, %v5828_v41  ;;  %v843_v52 = vld [vmem:[%s7165_s2 + $0x88] sm:$0xff] }
 0x359   :  { %v5949_v57 = vadd.f32 %v5828_v41, %v661_v2 }
 0x35b   :  { %v4385_v24 = vpop.f32.mrb[12].mxu0  ;;  %4428 = vmatprep.mubr.msk.f32.mxu0 %vm847_vm9, %v5949_v57 }
 0x35c   :  { %v671_v18 = vpop.f32.mrb[13].mxu0  ;;  %4429 = vmatmul.mubr.msk.f32.gmra.mrb[18].mxu0 %vm847_vm9, %v5952_v44  ;;  %v5962_v63 = vadd.f32 %v4385_v24, %v5828_v41 }
 0x35d   :  { %v5959_v59 = vadd.f32 %v5828_v41, %v671_v18 }
 0x35f   :  { %v4388_v61 = vpop.f32.mrb[14].mxu0  ;;  %4431 = vmatprep.mubr.msk.f32.mxu0 %vm847_vm9, %v5959_v59 }
 0x360   :  { %v681_v4 = vpop.f32.mrb[15].mxu0  ;;  %4432 = vmatmul.mubr.msk.f32.gmra.mrb[20].mxu0 %vm847_vm9, %v5962_v63  ;;  %v5972_v3 = vadd.f32 %v4388_v61, %v5828_v41 }
 0x361   :  { %v5969_v11 = vadd.f32 %v5828_v41, %v681_v4 }
 0x363   :  { %4434 = vmatprep.mubr.msk.f32.mxu0 %vm847_vm9, %v5969_v11 }
 0x364   :  { %4435 = vmatmul.mubr.msk.f32.gmra.mrb[22].mxu0 %vm847_vm9, %v5972_v3 }
 0x387   :  { %v5076_v9 = vpop.permute.xlu1 %5075  ;;  %v5071_v5 = vpop.permute.xlu0 %5070 }
 0x388   :  { %v5073_v12 = vunpack.i.h.bf16 %v5071_v5  ;;  %v5072_v13 = vunpack.i.l.bf16 %v5071_v5  ;;  %v5078_v35 = vunpack.i.h.bf16 %v5076_v9  ;;  %v5077_v25 = vunpack.i.l.bf16 %v5076_v9  ;;  %v846_v5 = vld [vmem:[%s7165_s2 + $0xa0] sm:$0xff] }
 0x38a   :  { %v4861_v17 = vpack.c.bf16 %v5073_v12, %v5072_v13  ;;  %v5978_v14 = vpack.c.bf16 %v5078_v35, %v5077_v25 }
 0x38b   :  { %v5081_v29 = vpop.permute.xlu1 %5080 }
 0x38c   :  { %v5083_v15 = vunpack.i.h.bf16 %v5081_v29  ;;  %v5082_v19 = vunpack.i.l.bf16 %v5081_v29  ;;  %4862 = vmatprep.subr.bf16.mxu1 %v4861_v17 }
 0x38d   :  { %4864 = vmatpush3.bf16.msra.mxu1 %v4861_v17 }
 0x38e   :  { %v4865_v10 = vpack.c.bf16 %v5083_v15, %v5082_v19  ;;  %v845_v15 = vld [vmem:[%s7165_s2 + $0x98] sm:$0xff] }
 0x38f   :  { %v5086_v6 = vpop.permute.xlu1 %5085 }
 0x390   :  { %v5088_v41 = vunpack.i.h.bf16 %v5086_v6  ;;  %v5087_v16 = vunpack.i.l.bf16 %v5086_v6  ;;  %4866 = vmatprep.subr.bf16.mxu1 %v4865_v10 }
 0x391   :  { %4868 = vmatpush3.bf16.msra.mxu1 %v4865_v10 }
 0x392   :  { %v4869_v21 = vpack.c.bf16 %v5088_v41, %v5087_v16 }
 0x394   :  { %4870 = vmatprep.subr.bf16.mxu1 %v4869_v21 }
 0x395   :  { %4872 = vmatpush3.bf16.msra.mxu1 %v4869_v21 }
 0x396   :  { %v5091_v22 = vpop.permute.xlu1 %5090 }
 0x397   :  { %v5093_v28 = vunpack.i.h.bf16 %v5091_v22  ;;  %v5092_v30 = vunpack.i.l.bf16 %v5091_v22 }
 0x399   :  { %v4873_v31 = vpack.c.bf16 %v5093_v28, %v5092_v30 }
 0x39b   :  { %4874 = vmatprep.subr.bf16.mxu1 %v4873_v31 }
 0x39c   :  { %4876 = vmatpush3.bf16.msra.mxu1 %v4873_v31 }
 0x39d   :  { %4879 = vmatprep.subr.msk.bf16.mxu1 %vm5902_vm10, %v5978_v14 }
 0x42b   :  { %v4427_v50 = vpop.f32.mrb[16].mxu0 }
 0x42c   :  { %v5989_v34 = vadd.f32 %v4427_v50, %v840_v32  ;;  %v962_v38 = vpop.f32.mrb[17].mxu0 }
 0x42d   :  { %v5991_v23 = vadd.f32 %v962_v38, %v839_v33 }
 0x42e   :  { %v1005_v39 = vsel %vm1001_vm11, %v5989_v34, -inf }
 0x42f   :  { %1006 = vmax.xlane.f32.xlu0 %v1005_v39  ;;  %v4430_v45 = vpop.f32.mrb[18].mxu0  ;;  %v1002_v55 = vsel %vm1001_vm11, %v5991_v23, -inf }
 0x430   :  { %v972_v47 = vpop.f32.mrb[19].mxu0  ;;  %v6004_v51 = vadd.f32 %v4430_v45, %v842_v43 }
 0x431   :  { %v973_v42 = vadd.f32 %v972_v47, %v841_v26 }
 0x432   :  { %v1011_v4 = vsel %vm1001_vm11, %v6004_v51, -inf }
 0x433   :  { %v4433_v1 = vpop.f32.mrb[20].mxu0  ;;  %1003 = vmax.xlane.f32.xlu0 %v1002_v55  ;;  %v1008_v2 = vsel %vm1001_vm11, %v973_v42, -inf }
 0x434   :  { %v6012_v24 = vadd.f32 %v4433_v1, %v844_v48  ;;  %v982_v18 = vpop.f32.mrb[21].mxu0  ;;  %1009 = vmax.xlane.f32.xlu1 %v1008_v2 }
 0x435   :  { %v6014_v61 = vadd.f32 %v982_v18, %v843_v52 }
 0x436   :  { %v1017_v9 = vsel %vm1001_vm11, %v6012_v24, -inf }
 0x437   :  { %1012 = vmax.xlane.f32.xlu0 %v1011_v4  ;;  %v4436_v12 = vpop.f32.mrb[22].mxu0  ;;  %v1014_v29 = vsel %vm1001_vm11, %v6014_v61, -inf }
 0x438   :  { %1018 = vmax.xlane.f32.xlu1 %v1017_v9  ;;  %v992_v13 = vpop.f32.mrb[23].mxu0  ;;  %v6023_v17 = vadd.f32 %v4436_v12, %v846_v5 }
 0x439   :  { %v6030_v19 = vadd.f32 %v992_v13, %v845_v15 }
 0x43a   :  { %v1023_v10 = vsel %vm1001_vm11, %v6023_v17, -inf }
 0x43b   :  { %1015 = vmax.xlane.f32.xlu0 %v1014_v29  ;;  %v1020_v6 = vsel %vm1001_vm11, %v6030_v19, -inf }
 0x43f   :  { %1024 = vmax.xlane.f32.xlu0 %v1023_v10 }
 0x443   :  { %1021 = vmax.xlane.f32.xlu0 %v1020_v6 }
 0x449   :  { %5100 = vrot.lane.b32.xlu1 %v5920_v40, %s5467_s7 }
 0x44d   :  { %5105 = vrot.lane.b32.xlu1 %v5928_v54, %s5467_s7 }
 0x451   :  { %1251 = vrot.lane.b32.xlu1 %v5939_v36, %s5467_s7 }
 0x455   :  { %1253 = vrot.lane.b32.xlu1 %v5942_v37, %s5467_s7 }
 0x459   :  { %1257 = vrot.lane.b32.xlu1 %v5952_v44, %s5467_s7  ;;  %5095 = vrot.lane.b32.xlu0 %v5914_v20, %s5467_s7 }
 0x45d   :  { %1261 = vrot.lane.b32.xlu1 %v5962_v63, %s5467_s7  ;;  %1255 = vrot.lane.b32.xlu0 %v5949_v57, %s5467_s7 }
 0x461   :  { %1265 = vrot.lane.b32.xlu1 %v5972_v3, %s5467_s7  ;;  %1259 = vrot.lane.b32.xlu0 %v5959_v59, %s5467_s7 }
 0x465   :  { %1293 = vrot.lane.b32.xlu1 %v840_v32, %s5468_s23  ;;  %1263 = vrot.lane.b32.xlu0 %v5969_v11, %s5467_s7 }
 0x469   :  { %1297 = vrot.lane.b32.xlu1 %v842_v43, %s5468_s23  ;;  %1291 = vrot.lane.b32.xlu0 %v839_v33, %s5468_s23 }
 0x46d   :  { %1301 = vrot.lane.b32.xlu1 %v844_v48, %s5468_s23  ;;  %1295 = vrot.lane.b32.xlu0 %v841_v26, %s5468_s23 }
 0x471   :  { %1305 = vrot.lane.b32.xlu1 %v846_v5, %s5468_s23  ;;  %1299 = vrot.lane.b32.xlu0 %v843_v52, %s5468_s23 }
 0x475   :  { %5115 = vrot.lane.b32.xlu1 %v5914_v20, %s5469_s24  ;;  %1303 = vrot.lane.b32.xlu0 %v845_v15, %s5468_s23 }
 0x479   :  { %5125 = vrot.lane.b32.xlu1 %v5928_v54, %s5469_s24  ;;  %5110 = vrot.lane.b32.xlu0 %v5898_v27, %s5469_s24 }
 0x47d   :  { %5120 = vrot.lane.b32.xlu0 %v5920_v40, %s5469_s24 }
 0x4bc   :  { %v1007_v41 = vpop.xlane.xlu0 %1006 }
 0x4bd   :  { %v1027_v16 = vsub.f32 %v5989_v34, %v1007_v41 }
 0x4bf   :  { %v1036_v21 = vmul.f32 1.442695, %v1027_v16 }
 0x4c0   :  { %v1004_v22 = vpop.xlane.xlu0 %1003 }
 0x4c1   :  { %v1026_v35 = vsub.f32 %v5991_v23, %v1004_v22  ;;  %v1010_v25 = vpop.xlane.xlu1 %1009  ;;  %5251 = vpow2.f32 %v1036_v21 }
 0x4c2   :  { %v1028_v28 = vsub.f32 %v973_v42, %v1010_v25 }
 0x4c3   :  { %v1034_v30 = vmul.f32 1.442695, %v1026_v35 }
 0x4c4   :  { %v1038_v31 = vmul.f32 1.442695, %v1028_v28  ;;  %v1013_v32 = vpop.xlane.xlu0 %1012 }
 0x4c5   :  { %5253 = vpow2.f32 %v1034_v30  ;;  %v1029_v50 = vsub.f32 %v6004_v51, %v1013_v32  ;;  %v1019_v33 = vpop.xlane.xlu1 %1018 }
 0x4c6   :  { %5255 = vpow2.f32 %v1038_v31  ;;  %v1031_v38 = vsub.f32 %v6012_v24, %v1019_v33 }
 0x4c7   :  { %v1040_v39 = vmul.f32 1.442695, %v1029_v50 }
 0x4c8   :  { %v1016_v26 = vpop.xlane.xlu0 %1015  ;;  %v1044_v23 = vmul.f32 1.442695, %v1031_v38 }
 0x4c9   :  { %5257 = vpow2.f32 %v1040_v39  ;;  %v1030_v34 = vsub.f32 %v6014_v61, %v1016_v26  ;;  %v5101_v43 = vpop.permute.xlu1 %5100 }
 0x4ca   :  { %v5103_v9 = vunpack.i.h.bf16 %v5101_v43  ;;  %v5102_v12 = vunpack.i.l.bf16 %v5101_v43 }
 0x4cb   :  { %v1042_v45 = vmul.f32 1.442695, %v1030_v34  ;;  %v6075_v48 = vpop.eup %5251 }
 0x4cc   :  { %v1025_v47 = vpop.xlane.xlu0 %1024  ;;  %v4889_v6 = vpack.c.bf16 %v5103_v9, %v5102_v12 }
 0x4cd   :  { %5259 = vpow2.f32 %v1042_v45  ;;  %v5106_v42 = vpop.permute.xlu1 %5105  ;;  %v1033_v51 = vsub.f32 %v6023_v17, %v1025_v47 }
 0x4ce   :  { %5261 = vpow2.f32 %v1044_v23  ;;  %v5108_v21 = vunpack.i.h.bf16 %v5106_v42  ;;  %v5107_v22 = vunpack.i.l.bf16 %v5106_v42 }
 0x4cf   :  { %v6078_v55 = vpop.eup %5253  ;;  %v1048_v18 = vmul.f32 1.442695, %v1033_v51 }
 0x4d0   :  { %v6080_v1 = vpop.eup %5255  ;;  %4453 = vmatprep.mubr.msk.f32.mxu1 %vm1001_vm11, %v6078_v55  ;;  %v1022_v52 = vpop.xlane.xlu0 %1021  ;;  %v4895_v31 = vpack.c.bf16 %v5108_v21, %v5107_v22 }
 0x4d1   :  { %v1032_v2 = vsub.f32 %v6030_v19, %v1022_v52  ;;  %v1252_v24 = vpop.permute.xlu1 %1251  ;;  %4454 = vmatmul.mubr.msk.f32.vlgmr.msra.gmra.mrb[16].mxu1 %vm1001_vm11, %v6075_v48 }
 0x4d2   :  { %4882 = vmatpush3.bf16.xpose.msk.msra.mxu1 %vm5902_vm10, %v5978_v14  ;;  %4456 = vmatprep.mubr.msk.f32.mxu1 %vm1001_vm11, %v6080_v1 }
 0x4d3   :  { %v6092_v61 = vpop.eup %5257  ;;  %v1046_v4 = vmul.f32 1.442695, %v1032_v2 }
 0x4d4   :  { %v5096_v5 = vpop.permute.xlu0 %5095 }
 0x4d5   :  { %5263 = vpow2.f32 %v1046_v4  ;;  %v5098_v13 = vunpack.i.h.bf16 %v5096_v5  ;;  %v5097_v17 = vunpack.i.l.bf16 %v5096_v5  ;;  %v1254_v29 = vpop.permute.xlu1 %1253  ;;  %4457 = vmatmul.mubr.msk.f32.gmra.mrb[18].mxu1 %vm1001_vm11, %v6092_v61 }
 0x4d6   :  { %5265 = vpow2.f32 %v1048_v18 }
 0x4d7   :  { %v6096_v15 = vpop.eup %5259  ;;  %v4883_v14 = vpack.c.bf16 %v5098_v13, %v5097_v17 }
 0x4d8   :  { %v6098_v19 = vpop.eup %5261  ;;  %v1256_v10 = vpop.permute.xlu0 %1255  ;;  %4459 = vmatprep.mubr.msk.f32.mxu1 %vm1001_vm11, %v6096_v15 }
 0x4d9   :  { %v1258_v41 = vpop.permute.xlu1 %1257  ;;  %4460 = vmatmul.mubr.msk.f32.gmra.mrb[20].mxu1 %vm1001_vm11, %v6098_v19  ;;  %4885 = vmatprep.subr.msk.bf16.mxu1 %vm5902_vm10, %v4883_v14 }
 0x4da   :  { %4888 = vmatpush3.bf16.xpose.msk.msra.mxu1 %vm5902_vm10, %v4883_v14 }
 0x4db   :  { %4891 = vmatprep.subr.msk.bf16.mxu1 %vm5902_vm10, %v4889_v6 }
 0x4dc   :  { %v1260_v16 = vpop.permute.xlu0 %1259 }
 0x4dd   :  { %v1262_v35 = vpop.permute.xlu1 %1261 }
 0x4df   :  { %v6110_v25 = vpop.eup %5263 }
 0x4e0   :  { %v6112_v28 = vpop.eup %5265  ;;  %v1264_v30 = vpop.permute.xlu0 %1263  ;;  %4462 = vmatprep.mubr.msk.f32.mxu1 %vm1001_vm11, %v6110_v25 }
 0x4e1   :  { %v1266_v32 = vpop.permute.xlu1 %1265  ;;  %4463 = vmatmul.mubr.msk.f32.gmra.mrb[22].mxu1 %vm1001_vm11, %v6112_v28 }
 0x4e2   :  { %4894 = vmatpush3.bf16.xpose.msk.msra.mxu1 %vm5902_vm10, %v4889_v6  ;;  %4481 = vmatprep.mubr.msk.f32.mxu1 %vm847_vm9, %v1252_v24 }
 0x4e3   :  { %4897 = vmatprep.subr.msk.bf16.mxu1 %vm5902_vm10, %v4895_v31 }
 0x4e4   :  { %v1292_v50 = vpop.permute.xlu0 %1291 }
 0x4e5   :  { %v1294_v33 = vpop.permute.xlu1 %1293 }
 0x4e8   :  { %v1296_v38 = vpop.permute.xlu0 %1295 }
 0x4e9   :  { %v6123_v39 = vpop.permute.xlu1 %1297 }
 0x4ea   :  { %4900 = vmatpush3.bf16.xpose.msk.msra.mxu1 %vm5902_vm10, %v4895_v31 }
 0x4ec   :  { %v1300_v26 = vpop.permute.xlu0 %1299 }
 0x4ed   :  { %v1302_v34 = vpop.permute.xlu1 %1301 }
 0x4f0   :  { %v6127_v43 = vpop.permute.xlu0 %1303 }
 0x4f1   :  { %v1306_v23 = vpop.permute.xlu1 %1305  ;;  %4482 = vmatmul.mubr.msk.f32.vlgmr.msra.gmra.mrb[24].mxu1 %vm847_vm9, %v1254_v29 }
 0x4f2   :  { %4484 = vmatprep.mubr.msk.f32.mxu1 %vm847_vm9, %v1256_v10 }
 0x4f4   :  { %v5111_v45 = vpop.permute.xlu0 %5110 }
 0x4f5   :  { %v5113_v47 = vunpack.i.h.bf16 %v5111_v45  ;;  %v5112_v42 = vunpack.i.l.bf16 %v5111_v45  ;;  %v5116_v51 = vpop.permute.xlu1 %5115  ;;  %4485 = vmatmul.mubr.msk.f32.gmra.mrb[26].mxu1 %vm847_vm9, %v1258_v41 }
 0x4f6   :  { %v5118_v52 = vunpack.i.h.bf16 %v5116_v51  ;;  %v5117_v2 = vunpack.i.l.bf16 %v5116_v51  ;;  %4487 = vmatprep.mubr.msk.f32.mxu1 %vm847_vm9, %v1260_v16 }
 0x4f7   :  { %v4901_v24 = vpack.c.bf16 %v5113_v47, %v5112_v42 }
 0x4f8   :  { %v5121_v18 = vpop.permute.xlu0 %5120  ;;  %v4905_v4 = vpack.c.bf16 %v5118_v52, %v5117_v2 }
 0x4f9   :  { %v5123_v9 = vunpack.i.h.bf16 %v5121_v18  ;;  %v5122_v5 = vunpack.i.l.bf16 %v5121_v18  ;;  %4488 = vmatmul.mubr.msk.f32.gmra.mrb[28].mxu1 %vm847_vm9, %v1262_v35  ;;  %4902 = vmatprep.subr.bf16.mxu0 %v4901_v24  ;;  %v5126_v12 = vpop.permute.xlu1 %5125 }
 0x4fa   :  { %4490 = vmatprep.mubr.msk.f32.mxu1 %vm847_vm9, %v1264_v30  ;;  %4904 = vmatpush3.bf16.msra.mxu0 %v4901_v24  ;;  %v5128_v13 = vunpack.i.h.bf16 %v5126_v12  ;;  %v5127_v17 = vunpack.i.l.bf16 %v5126_v12 }
 0x4fb   :  { %4906 = vmatprep.subr.bf16.mxu0 %v4905_v4  ;;  %v4909_v29 = vpack.c.bf16 %v5123_v9, %v5122_v5 }
 0x4fc   :  { %v4913_v14 = vpack.c.bf16 %v5128_v13, %v5127_v17 }
 0x4fd   :  { %4491 = vmatmul.mubr.msk.f32.gmra.mrb[30].mxu1 %vm847_vm9, %v1266_v32 }
 0x4fe   :  { %4908 = vmatpush3.bf16.msra.mxu0 %v4905_v4 }
 0x4ff   :  { %4910 = vmatprep.subr.bf16.mxu0 %v4909_v29 }
 0x502   :  { %4912 = vmatpush3.bf16.msra.mxu0 %v4909_v29 }
 0x503   :  { %4914 = vmatprep.subr.bf16.mxu0 %v4913_v14 }
 0x506   :  { %4916 = vmatpush3.bf16.msra.mxu0 %v4913_v14 }
 0x5a4   :  { %v6136_v10 = vpop.f32.mrb[16].mxu1 }
 0x5a5   :  { %v6138_v6 = vpop.f32.mrb[17].mxu1 }
 0x5a8   :  { %v6140_v41 = vpop.f32.mrb[18].mxu1 }
 0x5a9   :  { %v6142_v16 = vpop.f32.mrb[19].mxu1 }
 0x5aa   :  { %7188 = vst [vmem:[#allocation11_spill] sm:$0xff] %v6142_v16 }
 0x5ac   :  { %v6144_v21 = vpop.f32.mrb[20].mxu1 }
 0x5ad   :  { %7189 = vst [vmem:[#allocation12_spill] sm:$0xff] %v6144_v21  ;;  %v6146_v22 = vpop.f32.mrb[21].mxu1 }
 0x5ae   :  { %7190 = vst [vmem:[#allocation13_spill] sm:$0xff] %v6146_v22 }
 0x5b4   :  { %v6148_v35 = vpop.f32.mrb[22].mxu1 }
 0x5b5   :  { %7191 = vst [vmem:[#allocation14_spill] sm:$0xff] %v6148_v35  ;;  %v6150_v30 = vpop.f32.mrb[23].mxu1 }
 0x5b6   :  { %7192 = vst [vmem:[#allocation15_spill] sm:$0xff] %v6150_v30 }
 0x5c4   :  { %v4483_v31 = vpop.f32.mrb[24].mxu1 }
 0x5c5   :  { %v1419_v32 = vadd.f32 %v4483_v31, %v1294_v33  ;;  %v1413_v45 = vpop.f32.mrb[25].mxu1 }
 0x5c6   :  { %v1414_v47 = vadd.f32 %v1413_v45, %v1292_v50 }
 0x5c7   :  { %v1455_v42 = vsel %vm1001_vm11, %v1419_v32, -inf }
 0x5c8   :  { %1456 = vmax.xlane.f32.xlu1 %v1455_v42  ;;  %v4486_v51 = vpop.f32.mrb[26].mxu1  ;;  %v1452_v52 = vsel %vm1001_vm11, %v1414_v47, -inf }
 0x5c9   :  { %v1423_v2 = vpop.f32.mrb[27].mxu1  ;;  %1453 = vmax.xlane.f32.xlu0 %v1452_v52 }
 0x5ca   :  { %v1424_v24 = vadd.f32 %v1423_v2, %v1296_v38 }
 0x5cc   :  { %v4489_v18 = vpop.f32.mrb[28].mxu1  ;;  %v1458_v4 = vsel %vm1001_vm11, %v1424_v24, -inf }
 0x5cd   :  { %v6155_v9 = vadd.f32 %v4489_v18, %v1302_v34  ;;  %v1433_v5 = vpop.f32.mrb[29].mxu1  ;;  %1459 = vmax.xlane.f32.xlu0 %v1458_v4 }
 0x5ce   :  { %v6159_v50 = vadd.f32 %v1433_v5, %v1300_v26 }
 0x5cf   :  { %v1467_v33 = vsel %vm1001_vm11, %v6155_v9, -inf }
 0x5d0   :  { %v4492_v12 = vpop.f32.mrb[30].mxu1  ;;  %v1464_v38 = vsel %vm1001_vm11, %v6159_v50, -inf }
 0x5d1   :  { %v1443_v13 = vpop.f32.mrb[31].mxu1  ;;  %1468 = vmax.xlane.f32.xlu0 %v1467_v33  ;;  %v6161_v17 = vadd.f32 %v4492_v12, %v1306_v23  ;;  %v6176_v23 = vadd.f32 %v4486_v51, %v6123_v39 }
 0x5d2   :  { %v6166_v29 = vadd.f32 %v1443_v13, %v6127_v43 }
 0x5d3   :  { %v1473_v34 = vsel %vm1001_vm11, %v6161_v17, -inf  ;;  %v1461_v43 = vsel %vm1001_vm11, %v6176_v23, -inf }
 0x5d4   :  { %v1470_v26 = vsel %vm1001_vm11, %v6166_v29, -inf }
 0x5d5   :  { %1465 = vmax.xlane.f32.xlu0 %v1464_v38 }
 0x5d9   :  { %5130 = vrot.lane.b32.xlu1 %v5898_v27, %s5470_s25  ;;  %1474 = vmax.xlane.f32.xlu0 %v1473_v34 }
 0x5dd   :  { %1471 = vmax.xlane.f32.xlu0 %v1470_v26 }
 0x5f3   :  { %5135 = vrot.lane.b32.xlu0 %v5914_v20, %s5470_s25 }
 0x5f7   :  { %1705 = vrot.lane.b32.xlu0 %v5949_v57, %s5470_s25 }
 0x5fb   :  { %1709 = vrot.lane.b32.xlu0 %v5959_v59, %s5470_s25 }
 0x5fd   :  { %1462 = vmax.xlane.f32.xlu1 %v1461_v43 }
 0x5ff   :  { %1713 = vrot.lane.b32.xlu0 %v5969_v11, %s5470_s25 }
 0x603   :  { %5150 = vrot.lane.b32.xlu0 %v5898_v27, %s5471_s26 }
 0x607   :  { %5160 = vrot.lane.b32.xlu0 %v5920_v40, %s5471_s26 }
 0x60e   :  { %5140 = vrot.lane.b32.xlu1 %v5920_v40, %s5470_s25 }
 0x612   :  { %5145 = vrot.lane.b32.xlu1 %v5928_v54, %s5470_s25 }
 0x616   :  { %1701 = vrot.lane.b32.xlu1 %v5939_v36, %s5470_s25 }
 0x61a   :  { %1703 = vrot.lane.b32.xlu1 %v5942_v37, %s5470_s25 }
 0x61e   :  { %1707 = vrot.lane.b32.xlu1 %v5952_v44, %s5470_s25 }
 0x622   :  { %1711 = vrot.lane.b32.xlu1 %v5962_v63, %s5470_s25 }
 0x626   :  { %1715 = vrot.lane.b32.xlu1 %v5972_v3, %s5470_s25 }
 0x62a   :  { %5155 = vrot.lane.b32.xlu1 %v5914_v20, %s5471_s26 }
 0x62e   :  { %5165 = vrot.lane.b32.xlu1 %v5928_v54, %s5471_s26 }
 0x655   :  { %v1457_v39 = vpop.xlane.xlu1 %1456 }
 0x656   :  { %v1477_v14 = vsub.f32 %v1419_v32, %v1457_v39  ;;  %v1454_v31 = vpop.xlane.xlu0 %1453 }
 0x657   :  { %v1476_v45 = vsub.f32 %v1414_v47, %v1454_v31 }
 0x658   :  { %v1486_v42 = vmul.f32 1.442695, %v1477_v14 }
 0x659   :  { %v1484_v51 = vmul.f32 1.442695, %v1476_v45  ;;  %v5131_v52 = vpop.permute.xlu1 %5130 }
 0x65a   :  { %v5133_v2 = vunpack.i.h.bf16 %v5131_v52  ;;  %v5132_v18 = vunpack.i.l.bf16 %v5131_v52  ;;  %v1460_v4 = vpop.xlane.xlu0 %1459 }
 0x65b   :  { %5267 = vpow2.f32 %v1484_v51  ;;  %v1478_v5 = vsub.f32 %v1424_v24, %v1460_v4 }
 0x65c   :  { %5269 = vpow2.f32 %v1486_v42  ;;  %v4917_v33 = vpack.c.bf16 %v5133_v2, %v5132_v18 }
 0x65d   :  { %v1488_v12 = vmul.f32 1.442695, %v1478_v5 }
 0x65e   :  { %4919 = vmatprep.subr.msk.bf16.mxu0 %vm5902_vm10, %v4917_v33  ;;  %v1469_v13 = vpop.xlane.xlu0 %1468 }
 0x65f   :  { %5271 = vpow2.f32 %v1488_v12 }
 0x662   :  { %v1466_v38 = vpop.xlane.xlu0 %1465 }
 0x663   :  { %v1480_v5 = vsub.f32 %v6159_v50, %v1466_v38 }
 0x665   :  { %v6195_v32 = vpop.eup %5267 }
 0x666   :  { %v6197_v47 = vpop.eup %5269  ;;  %4509 = vmatprep.mubr.msk.f32.mxu0 %vm1001_vm11, %v6195_v32  ;;  %v1475_v34 = vpop.xlane.xlu0 %1474 }
 0x667   :  { %4510 = vmatmul.mubr.msk.f32.vlgmr.msra.gmra.mrb[24].mxu0 %vm1001_vm11, %v6197_v47  ;;  %v1483_v62 = vsub.f32 %v6161_v17, %v1475_v34 }
 0x668   :  { %4922 = vmatpush3.bf16.xpose.msk.msra.mxu0 %vm5902_vm10, %v4917_v33  ;;  %v1481_v33 = vsub.f32 %v6155_v9, %v1469_v13 }
 0x669   :  { %v6205_v24 = vpop.eup %5271  ;;  %v1498_v9 = vmul.f32 1.442695, %v1483_v62 }
 0x66a   :  { %4512 = vmatprep.mubr.msk.f32.mxu0 %vm1001_vm11, %v6205_v24  ;;  %v1472_v26 = vpop.xlane.xlu0 %1471  ;;  %v1494_v0 = vmul.f32 1.442695, %v1481_v33 }
 0x66e   :  { %v5136_v43 = vpop.permute.xlu0 %5135 }
 0x66f   :  { %v5138_v39 = vunpack.i.h.bf16 %v5136_v43  ;;  %v5137_v14 = vunpack.i.l.bf16 %v5136_v43 }
 0x671   :  { %v4923_v31 = vpack.c.bf16 %v5138_v39, %v5137_v14  ;;  %v1492_v39 = vmul.f32 1.442695, %v1480_v5  ;;  %v1482_v14 = vsub.f32 %v6166_v29, %v1472_v26 }
 0x672   :  { %v1706_v45 = vpop.permute.xlu0 %1705 }
 0x673   :  { %4925 = vmatprep.subr.msk.bf16.mxu0 %vm5902_vm10, %v4923_v31 }
 0x674   :  { %4928 = vmatpush3.bf16.xpose.msk.msra.mxu0 %vm5902_vm10, %v4923_v31 }
 0x676   :  { %v1710_v42 = vpop.permute.xlu0 %1709 }
 0x67a   :  { %v6213_v51 = vpop.permute.xlu0 %1713 }
 0x67e   :  { %v5151_v52 = vpop.permute.xlu0 %5150 }
 0x67f   :  { %v5153_v2 = vunpack.i.h.bf16 %v5151_v52  ;;  %v5152_v18 = vunpack.i.l.bf16 %v5151_v52 }
 0x681   :  { %v4941_v4 = vpack.c.bf16 %v5153_v2, %v5152_v18  ;;  %v1496_v18 = vmul.f32 1.442695, %v1482_v14 }
 0x683   :  { %4942 = vmatprep.subr.bf16.mxu1 %v4941_v4 }
 0x684   :  { %4944 = vmatpush3.bf16.msra.mxu1 %v4941_v4 }
 0x68a   :  { %v1463_v12 = vpop.xlane.xlu1 %1462 }
 0x68b   :  { %v1479_v43 = vsub.f32 %v6176_v23, %v1463_v12 }
 0x68d   :  { %v1490_v31 = vmul.f32 1.442695, %v1479_v43  ;;  %v5161_v43 = vpop.permute.xlu0 %5160 }
 0x68e   :  { %v5141_v56 = vpop.permute.xlu1 %5140  ;;  %v5163_v14 = vunpack.i.h.bf16 %v5161_v43 }
 0x68f   :  { %5273 = vpow2.f32 %v1490_v31  ;;  %v5143_v52 = vunpack.i.h.bf16 %v5141_v56  ;;  %v5142_v2 = vunpack.i.l.bf16 %v5141_v56  ;;  %v5162_v31 = vunpack.i.l.bf16 %v5161_v43  ;;  %v1693_v43 = vld [vmem:[%s7165_s2 + $0xa8] sm:$0xff] }
 0x690   :  { %5275 = vpow2.f32 %v1492_v39 }
 0x691   :  { %v4929_v4 = vpack.c.bf16 %v5143_v52, %v5142_v2  ;;  %5277 = vpow2.f32 %v1494_v0 }
 0x692   :  { %v5146_v50 = vpop.permute.xlu1 %5145  ;;  %5279 = vpow2.f32 %v1496_v18 }
 0x693   :  { %v5148_v13 = vunpack.i.h.bf16 %v5146_v50  ;;  %v5147_v38 = vunpack.i.l.bf16 %v5146_v50  ;;  %4931 = vmatprep.subr.msk.bf16.mxu0 %vm5902_vm10, %v4929_v4  ;;  %5281 = vpow2.f32 %v1498_v9 }
 0x694   :  { %4934 = vmatpush3.bf16.xpose.msk.msra.mxu0 %vm5902_vm10, %v4929_v4 }
 0x695   :  { %v4935_v29 = vpack.c.bf16 %v5148_v13, %v5147_v38 }
 0x696   :  { %v1702_v17 = vpop.permute.xlu1 %1701 }
 0x697   :  { %4937 = vmatprep.subr.msk.bf16.mxu0 %vm5902_vm10, %v4935_v29 }
 0x699   :  { %v6226_v56 = vpop.eup %5273 }
 0x69a   :  { %v6228_v23 = vpop.eup %5275  ;;  %v1704_v62 = vpop.permute.xlu1 %1703  ;;  %4513 = vmatmul.mubr.msk.f32.gmra.mrb[26].mxu0 %vm1001_vm11, %v6226_v56 }
 0x69b   :  { %4515 = vmatprep.mubr.msk.f32.mxu0 %vm1001_vm11, %v6228_v23  ;;  %v6236_v0 = vpop.eup %5277 }
 0x69c   :  { %4940 = vmatpush3.bf16.xpose.msk.msra.mxu0 %vm5902_vm10, %v4935_v29  ;;  %v6238_v34 = vpop.eup %5279 }
 0x69d   :  { %v6244_v5 = vpop.eup %5281 }
 0x69e   :  { %v1708_v26 = vpop.permute.xlu1 %1707  ;;  %4516 = vmatmul.mubr.msk.f32.gmra.mrb[28].mxu0 %vm1001_vm11, %v6236_v0 }
 0x69f   :  { %4518 = vmatprep.mubr.msk.f32.mxu0 %vm1001_vm11, %v6238_v34 }
 0x6a2   :  { %v1712_v33 = vpop.permute.xlu1 %1711  ;;  %4519 = vmatmul.mubr.msk.f32.gmra.mrb[30].mxu0 %vm1001_vm11, %v6244_v5 }
 0x6a3   :  { %4537 = vmatprep.mubr.msk.f32.mxu0 %vm847_vm9, %v1702_v17 }
 0x6a6   :  { %v1716_v12 = vpop.permute.xlu1 %1715  ;;  %4538 = vmatmul.mubr.msk.f32.vlgmr.msra.gmra.mrb[32].mxu0 %vm847_vm9, %v1704_v62 }
 0x6a7   :  { %4540 = vmatprep.mubr.msk.f32.mxu0 %vm847_vm9, %v1706_v45  ;;  %v4949_v45 = vpack.c.bf16 %v5163_v14, %v5162_v31 }
 0x6aa   :  { %v5156_v39 = vpop.permute.xlu1 %5155  ;;  %4541 = vmatmul.mubr.msk.f32.gmra.mrb[34].mxu0 %vm847_vm9, %v1708_v26 }
 0x6ab   :  { %v5158_v52 = vunpack.i.h.bf16 %v5156_v39  ;;  %v5157_v2 = vunpack.i.l.bf16 %v5156_v39  ;;  %4543 = vmatprep.mubr.msk.f32.mxu0 %vm847_vm9, %v1710_v42 }
 0x6ad   :  { %v4945_v18 = vpack.c.bf16 %v5158_v52, %v5157_v2 }
 0x6ae   :  { %v5166_v4 = vpop.permute.xlu1 %5165  ;;  %4544 = vmatmul.mubr.msk.f32.gmra.mrb[36].mxu0 %vm847_vm9, %v1712_v33 }
 0x6af   :  { %v5168_v50 = vunpack.i.h.bf16 %v5166_v4  ;;  %v5167_v9 = vunpack.i.l.bf16 %v5166_v4  ;;  %4546 = vmatprep.mubr.msk.f32.mxu0 %vm847_vm9, %v6213_v51  ;;  %4946 = vmatprep.subr.bf16.mxu1 %v4945_v18 }
 0x6b0   :  { %4948 = vmatpush3.bf16.msra.mxu1 %v4945_v18  ;;  %v1695_v18 = vld [vmem:[%s7165_s2 + $0xb8] sm:$0xff] }
 0x6b1   :  { %4950 = vmatprep.subr.bf16.mxu1 %v4949_v45  ;;  %v4953_v13 = vpack.c.bf16 %v5168_v50, %v5167_v9 }
 0x6b2   :  { %4547 = vmatmul.mubr.msk.f32.gmra.mrb[38].mxu0 %vm847_vm9, %v1716_v12  ;;  %v1694_v12 = vld [vmem:[%s7165_s2 + $0xb0] sm:$0xff] }
 0x6b4   :  { %4952 = vmatpush3.bf16.msra.mxu1 %v4949_v45 }
 0x6b5   :  { %4954 = vmatprep.subr.bf16.mxu1 %v4953_v13 }
 0x6b8   :  { %4956 = vmatpush3.bf16.msra.mxu1 %v4953_v13  ;;  %v1698_v13 = vld [vmem:[%s7165_s2 + $0xd0] sm:$0xff] }
 0x73a   :  { %v6257_v42 = vpop.f32.mrb[24].mxu0 }
 0x73b   :  { %v6259_v38 = vpop.f32.mrb[25].mxu0 }
 0x76d   :  { %v6261_v29 = vpop.f32.mrb[26].mxu0 }
 0x76e   :  { %v6263_v17 = vpop.f32.mrb[27].mxu0 }
 0x771   :  { %v6265_v62 = vpop.f32.mrb[28].mxu0 }
 0x772   :  { %v6267_v51 = vpop.f32.mrb[29].mxu0 }
 0x775   :  { %v6269_v26 = vpop.f32.mrb[30].mxu0 }
 0x776   :  { %v6271_v33 = vpop.f32.mrb[31].mxu0 }
 0x779   :  { %v4539_v39 = vpop.f32.mrb[32].mxu0 }
 0x77a   :  { %v6279_v14 = vadd.f32 %v4539_v39, %v1694_v12  ;;  %v1831_v31 = vpop.f32.mrb[33].mxu0 }
 0x77b   :  { %v6281_v52 = vadd.f32 %v1831_v31, %v1693_v43 }
 0x77c   :  { %v1873_v2 = vsel %vm1001_vm11, %v6279_v14, -inf }
 0x77d   :  { %1874 = vmax.xlane.f32.xlu1 %v1873_v2  ;;  %v4542_v4 = vpop.f32.mrb[34].mxu0  ;;  %v1870_v50 = vsel %vm1001_vm11, %v6281_v52, -inf  ;;  %v1697_v2 = vld [vmem:[%s7165_s2 + $0xc8] sm:$0xff] }
 0x77e   :  { %v1841_v9 = vpop.f32.mrb[35].mxu0  ;;  %1871 = vmax.xlane.f32.xlu0 %v1870_v50 }
 0x77f   :  { %v6290_v45 = vadd.f32 %v1841_v9, %v1695_v18 }
 0x781   :  { %v4545_v39 = vpop.f32.mrb[36].mxu0  ;;  %v1876_v31 = vsel %vm1001_vm11, %v6290_v45, -inf }
 0x782   :  { %v6297_v53 = vadd.f32 %v4545_v39, %v1698_v13  ;;  %v1851_v58 = vpop.f32.mrb[37].mxu0  ;;  %1877 = vmax.xlane.f32.xlu0 %v1876_v31  ;;  %v1699_v31 = vld [vmem:[%s7165_s2 + $0xd8] sm:$0xff] }
 0x783   :  { %v6304_v9 = vadd.f32 %v1851_v58, %v1697_v2 }
 0x784   :  { %v1885_v50 = vsel %vm1001_vm11, %v6297_v53, -inf }
 0x785   :  { %v4548_v60 = vpop.f32.mrb[38].mxu0  ;;  %v1882_v8 = vsel %vm1001_vm11, %v6304_v9, -inf }
 0x786   :  { %v1861_v49 = vpop.f32.mrb[39].mxu0  ;;  %1886 = vmax.xlane.f32.xlu0 %v1885_v50  ;;  %v6309_v39 = vadd.f32 %v4548_v60, %v1700_v7  ;;  %v1696_v50 = vld [vmem:[%s7165_s2 + $0xc0] sm:$0xff] }
 0x787   :  { %v6316_v30 = vadd.f32 %v1861_v49, %v1699_v31 }
 0x788   :  { %v1891_v58 = vsel %vm1001_vm11, %v6309_v39, -inf }
 0x789   :  { %v1888_v60 = vsel %vm1001_vm11, %v6316_v30, -inf }
 0x78a   :  { %1883 = vmax.xlane.f32.xlu0 %v1882_v8  ;;  %v1847_v8 = vadd.f32 %v4542_v4, %v1696_v50 }
 0x78c   :  { %v1879_v49 = vsel %vm1001_vm11, %v1847_v8, -inf }
 0x78e   :  { %5170 = vrot.lane.b32.xlu1 %v5898_v27, %s5472_s14  ;;  %1892 = vmax.xlane.f32.xlu0 %v1891_v58 }
 0x792   :  { %1889 = vmax.xlane.f32.xlu0 %v1888_v60 }
 0x7a8   :  { %5175 = vrot.lane.b32.xlu0 %v5914_v20, %s5472_s14 }
 0x7ac   :  { %2123 = vrot.lane.b32.xlu0 %v5949_v57, %s5472_s14 }
 0x7b0   :  { %2127 = vrot.lane.b32.xlu0 %v5959_v59, %s5472_s14 }
 0x7b2   :  { %1880 = vmax.xlane.f32.xlu1 %v1879_v49 }
 0x7b4   :  { %2131 = vrot.lane.b32.xlu0 %v5969_v11, %s5472_s14 }
 0x7b8   :  { %2159 = vrot.lane.b32.xlu0 %v1693_v43, %s5468_s23 }
 0x7bc   :  { %2163 = vrot.lane.b32.xlu0 %v1695_v18, %s5468_s23 }
 0x7c0   :  { %2167 = vrot.lane.b32.xlu0 %v1697_v2, %s5468_s23 }
 0x7c3   :  { %5180 = vrot.lane.b32.xlu1 %v5920_v40, %s5472_s14 }
 0x7c4   :  { %2171 = vrot.lane.b32.xlu0 %v1699_v31, %s5468_s23 }
 0x7c7   :  { %5185 = vrot.lane.b32.xlu1 %v5928_v54, %s5472_s14 }
 0x7cb   :  { %2119 = vrot.lane.b32.xlu1 %v5939_v36, %s5472_s14 }
 0x7cf   :  { %2121 = vrot.lane.b32.xlu1 %v5942_v37, %s5472_s14 }
 0x7d3   :  { %2125 = vrot.lane.b32.xlu1 %v5952_v44, %s5472_s14 }
 0x7d7   :  { %2129 = vrot.lane.b32.xlu1 %v5962_v63, %s5472_s14 }
 0x7db   :  { %2133 = vrot.lane.b32.xlu1 %v5972_v3, %s5472_s14 }
 0x7df   :  { %2161 = vrot.lane.b32.xlu1 %v1694_v12, %s5468_s23 }
 0x7e3   :  { %2165 = vrot.lane.b32.xlu1 %v1696_v50, %s5468_s23 }
 0x7e7   :  { %2169 = vrot.lane.b32.xlu1 %v1698_v13, %s5468_s23 }
 0x7eb   :  { %2173 = vrot.lane.b32.xlu1 %v1700_v7, %s5468_s23 }
 0x7ef   :  { %5190 = vrot.lane.b32.xlu1 %v5898_v27, %s5473_s17 }
 0x80a   :  { %v1875_v36 = vpop.xlane.xlu1 %1874 }
 0x80b   :  { %v1895_v37 = vsub.f32 %v6279_v14, %v1875_v36  ;;  %v1872_v57 = vpop.xlane.xlu0 %1871 }
 0x80c   :  { %v1894_v44 = vsub.f32 %v6281_v52, %v1872_v57 }
 0x80d   :  { %v1904_v59 = vmul.f32 1.442695, %v1895_v37 }
 0x80e   :  { %v1902_v63 = vmul.f32 1.442695, %v1894_v44  ;;  %v5171_v11 = vpop.permute.xlu1 %5170 }
 0x80f   :  { %v5173_v3 = vunpack.i.h.bf16 %v5171_v11  ;;  %v5172_v12 = vunpack.i.l.bf16 %v5171_v11  ;;  %v1878_v43 = vpop.xlane.xlu0 %1877 }
 0x810   :  { %5283 = vpow2.f32 %v1902_v63  ;;  %v1896_v18 = vsub.f32 %v6290_v45, %v1878_v43 }
 0x811   :  { %5285 = vpow2.f32 %v1904_v59  ;;  %v4957_v7 = vpack.c.bf16 %v5173_v3, %v5172_v12 }
 0x812   :  { %v1906_v4 = vmul.f32 1.442695, %v1896_v18 }
 0x813   :  { %4959 = vmatprep.subr.msk.bf16.mxu1 %vm5902_vm10, %v4957_v7  ;;  %v1887_v27 = vpop.xlane.xlu0 %1886 }
 0x814   :  { %5287 = vpow2.f32 %v1906_v4  ;;  %v1899_v37 = vsub.f32 %v6297_v53, %v1887_v27 }
 0x816   :  { %v1912_v3 = vmul.f32 1.442695, %v1899_v37 }
 0x817   :  { %v1884_v14 = vpop.xlane.xlu0 %1883 }
 0x818   :  { %v1898_v36 = vsub.f32 %v6304_v9, %v1884_v14 }
 0x81a   :  { %v6353_v13 = vpop.eup %5283  ;;  %v1910_v59 = vmul.f32 1.442695, %v1898_v36 }
 0x81b   :  { %v6355_v52 = vpop.eup %5285  ;;  %4565 = vmatprep.mubr.msk.f32.mxu1 %vm1001_vm11, %v6353_v13  ;;  %v1893_v2 = vpop.xlane.xlu0 %1892 }
 0x81c   :  { %4566 = vmatmul.mubr.msk.f32.vlgmr.msra.gmra.mrb[32].mxu1 %vm1001_vm11, %v6355_v52  ;;  %v1901_v43 = vsub.f32 %v6309_v39, %v1893_v2 }
 0x81d   :  { %4962 = vmatpush3.bf16.xpose.msk.msra.mxu1 %vm5902_vm10, %v4957_v7 }
 0x81e   :  { %v6363_v45 = vpop.eup %5287  ;;  %v1916_v9 = vmul.f32 1.442695, %v1901_v43 }
 0x81f   :  { %4568 = vmatprep.mubr.msk.f32.mxu1 %vm1001_vm11, %v6363_v45  ;;  %v1890_v31 = vpop.xlane.xlu0 %1889 }
 0x820   :  { %v1900_v63 = vsub.f32 %v6316_v30, %v1890_v31 }
 0x822   :  { %v1914_v4 = vmul.f32 1.442695, %v1900_v63 }
 0x823   :  { %v5176_v58 = vpop.permute.xlu0 %5175 }
 0x824   :  { %v5178_v60 = vunpack.i.h.bf16 %v5176_v58  ;;  %v5177_v50 = vunpack.i.l.bf16 %v5176_v58 }
 0x826   :  { %v4963_v49 = vpack.c.bf16 %v5178_v60, %v5177_v50 }
 0x827   :  { %v2124_v37 = vpop.permute.xlu0 %2123 }
 0x828   :  { %4965 = vmatprep.subr.msk.bf16.mxu1 %vm5902_vm10, %v4963_v49 }
 0x829   :  { %4968 = vmatpush3.bf16.xpose.msk.msra.mxu1 %vm5902_vm10, %v4963_v49 }
 0x83f   :  { %v1881_v57 = vpop.xlane.xlu1 %1880 }
 0x840   :  { %v1897_v44 = vsub.f32 %v1847_v8, %v1881_v57 }
 0x842   :  { %v1908_v11 = vmul.f32 1.442695, %v1897_v44  ;;  %v2128_v44 = vpop.permute.xlu0 %2127 }
 0x843   :  { %v5181_v12 = vpop.permute.xlu1 %5180 }
 0x844   :  { %5289 = vpow2.f32 %v1908_v11  ;;  %v5183_v18 = vunpack.i.h.bf16 %v5181_v12  ;;  %v5182_v7 = vunpack.i.l.bf16 %v5181_v12 }
 0x845   :  { %5291 = vpow2.f32 %v1910_v59 }
 0x846   :  { %v4969_v58 = vpack.c.bf16 %v5183_v18, %v5182_v7  ;;  %5293 = vpow2.f32 %v1912_v3  ;;  %v2132_v63 = vpop.permute.xlu0 %2131 }
 0x847   :  { %v5186_v60 = vpop.permute.xlu1 %5185  ;;  %5295 = vpow2.f32 %v1914_v4 }
 0x848   :  { %v5188_v53 = vunpack.i.h.bf16 %v5186_v60  ;;  %v5187_v27 = vunpack.i.l.bf16 %v5186_v60  ;;  %4971 = vmatprep.subr.msk.bf16.mxu1 %vm5902_vm10, %v4969_v58  ;;  %5297 = vpow2.f32 %v1916_v9 }
 0x849   :  { %4974 = vmatpush3.bf16.xpose.msk.msra.mxu1 %vm5902_vm10, %v4969_v58 }
 0x84a   :  { %v4975_v30 = vpack.c.bf16 %v5188_v53, %v5187_v27 }
 0x84b   :  { %v2120_v39 = vpop.permute.xlu1 %2119 }
 0x84c   :  { %4977 = vmatprep.subr.msk.bf16.mxu1 %vm5902_vm10, %v4975_v30 }
 0x84e   :  { %v6381_v8 = vpop.eup %5289 }
 0x84f   :  { %v6383_v14 = vpop.eup %5291  ;;  %v2122_v2 = vpop.permute.xlu1 %2121  ;;  %4569 = vmatmul.mubr.msk.f32.gmra.mrb[34].mxu1 %vm1001_vm11, %v6381_v8 }
 0x850   :  { %4571 = vmatprep.mubr.msk.f32.mxu1 %vm1001_vm11, %v6383_v14  ;;  %v6391_v31 = vpop.eup %5293 }
 0x851   :  { %4980 = vmatpush3.bf16.xpose.msk.msra.mxu1 %vm5902_vm10, %v4975_v30  ;;  %v6393_v50 = vpop.eup %5295 }
 0x852   :  { %v6399_v36 = vpop.eup %5297 }
 0x853   :  { %v2126_v49 = vpop.permute.xlu1 %2125  ;;  %4572 = vmatmul.mubr.msk.f32.gmra.mrb[36].mxu1 %vm1001_vm11, %v6391_v31 }
 0x854   :  { %4574 = vmatprep.mubr.msk.f32.mxu1 %vm1001_vm11, %v6393_v50 }
 0x857   :  { %v2130_v57 = vpop.permute.xlu1 %2129  ;;  %4575 = vmatmul.mubr.msk.f32.gmra.mrb[38].mxu1 %vm1001_vm11, %v6399_v36 }
 0x858   :  { %4593 = vmatprep.mubr.msk.f32.mxu1 %vm847_vm9, %v2120_v39 }
 0x85b   :  { %v2134_v46 = vpop.permute.xlu1 %2133  ;;  %4594 = vmatmul.mubr.msk.f32.vlgmr.msra.gmra.mrb[40].mxu1 %vm847_vm9, %v2122_v2 }
 0x85c   :  { %4596 = vmatprep.mubr.msk.f32.mxu1 %vm847_vm9, %v2124_v37 }
 0x85f   :  { %v2162_v59 = vpop.permute.xlu1 %2161  ;;  %4597 = vmatmul.mubr.msk.f32.gmra.mrb[42].mxu1 %vm847_vm9, %v2126_v49  ;;  %v2160_v49 = vpop.permute.xlu0 %2159 }
 0x860   :  { %4599 = vmatprep.mubr.msk.f32.mxu1 %vm847_vm9, %v2128_v44 }
 0x863   :  { %v2166_v11 = vpop.permute.xlu1 %2165  ;;  %4600 = vmatmul.mubr.msk.f32.gmra.mrb[44].mxu1 %vm847_vm9, %v2130_v57 }
 0x864   :  { %4602 = vmatprep.mubr.msk.f32.mxu1 %vm847_vm9, %v2132_v63 }
 0x867   :  { %v2170_v3 = vpop.permute.xlu1 %2169  ;;  %4603 = vmatmul.mubr.msk.f32.gmra.mrb[46].mxu1 %vm847_vm9, %v2134_v46 }
 0x86b   :  { %v2174_v12 = vpop.permute.xlu1 %2173 }
 0x86f   :  { %v5191_v43 = vpop.permute.xlu1 %5190 }
 0x870   :  { %v5193_v18 = vunpack.i.h.bf16 %v5191_v43  ;;  %v5192_v7 = vunpack.i.l.bf16 %v5191_v43  ;;  %v2164_v43 = vpop.permute.xlu0 %2163 }
 0x872   :  { %v4981_v4 = vpack.c.bf16 %v5193_v18, %v5192_v7 }
 0x874   :  { %4982 = vmatprep.subr.bf16.mxu0 %v4981_v4  ;;  %v2168_v35 = vpop.permute.xlu0 %2167 }
 0x875   :  { %4984 = vmatpush3.bf16.msra.mxu0 %v4981_v4 }
 0x8ef   :  { %v6411_v58 = vpop.f32.mrb[32].mxu1 }
 0x8f0   :  { %v6413_v60 = vpop.f32.mrb[33].mxu1 }
 0x922   :  { %v6415_v9 = vpop.f32.mrb[34].mxu1 }
 0x923   :  { %v6417_v53 = vpop.f32.mrb[35].mxu1 }
 0x926   :  { %v6419_v27 = vpop.f32.mrb[36].mxu1 }
 0x927   :  { %v6421_v30 = vpop.f32.mrb[37].mxu1 }
 0x92a   :  { %v6423_v39 = vpop.f32.mrb[38].mxu1 }
 0x92b   :  { %v6425_v2 = vpop.f32.mrb[39].mxu1 }
 0x92e   :  { %v4595_v37 = vpop.f32.mrb[40].mxu1 }
 0x92f   :  { %v6427_v57 = vadd.f32 %v4595_v37, %v2162_v59  ;;  %v2281_v46 = vpop.f32.mrb[41].mxu1 }
 0x930   :  { %v6429_v44 = vadd.f32 %v2281_v46, %v2160_v49 }
 0x931   :  { %v2323_v63 = vsel %vm1001_vm11, %v6427_v57, -inf }
 0x932   :  { %2324 = vmax.xlane.f32.xlu1 %v2323_v63  ;;  %v4598_v18 = vpop.f32.mrb[42].mxu1  ;;  %v2320_v7 = vsel %vm1001_vm11, %v6429_v44, -inf }
 0x933   :  { %v6435_v4 = vadd.f32 %v4598_v18, %v2166_v11  ;;  %v2291_v22 = vpop.f32.mrb[43].mxu1  ;;  %2321 = vmax.xlane.f32.xlu0 %v2320_v7 }
 0x934   :  { %v6439_v37 = vadd.f32 %v2291_v22, %v2164_v43  ;;  %v2172_v43 = vpop.permute.xlu0 %2171 }
 0x935   :  { %v2329_v59 = vsel %vm1001_vm11, %v6435_v4, -inf }
 0x936   :  { %v4601_v49 = vpop.f32.mrb[44].mxu1  ;;  %v2326_v18 = vsel %vm1001_vm11, %v6439_v37, -inf }
 0x937   :  { %v6441_v46 = vadd.f32 %v4601_v49, %v2170_v3  ;;  %v2301_v16 = vpop.f32.mrb[45].mxu1  ;;  %2330 = vmax.xlane.f32.xlu0 %v2329_v59  ;;  %v1921_v49 = vsel %vm1001_vm11, %v6355_v52, 0.0  ;;  %v1924_v52 = vsel %vm1001_vm11, %v6363_v45, 0.0  ;;  %v1053_v45 = vsel %vm1001_vm11, %v6075_v48, 0.0 }
 0x938   :  { %v6445_v21 = vadd.f32 %v2301_v16, %v2168_v35 }
 0x939   :  { %v2335_v63 = vsel %vm1001_vm11, %v6441_v46, -inf }
 0x93a   :  { %2336 = vmax.xlane.f32.xlu1 %v2335_v63  ;;  %v4604_v11 = vpop.f32.mrb[46].mxu1  ;;  %v2332_v3 = vsel %vm1001_vm11, %v6445_v21, -inf  ;;  %v1509_v63 = vsel %vm1001_vm11, %v6226_v56, 0.0  ;;  %v1506_v56 = vsel %vm1001_vm11, %v6205_v24, 0.0  ;;  %v1939_v24 = vsel %vm1001_vm11, %v6399_v36, 0.0 }
 0x93b   :  { %v2311_v7 = vpop.f32.mrb[47].mxu1  ;;  %2327 = vmax.xlane.f32.xlu0 %v2326_v18  ;;  %v6449_v22 = vadd.f32 %v4604_v11, %v2174_v12  ;;  %v1500_v12 = vsel %vm1001_vm11, %v6195_v32, 0.0  ;;  %v1515_v32 = vsel %vm1001_vm11, %v6236_v0, 0.0  ;;  %v1512_v0 = vsel %vm1001_vm11, %v6228_v23, 0.0 }
 0x93c   :  { %v6453_v59 = vadd.f32 %v2311_v7, %v2172_v43  ;;  %v1936_v23 = vsel %vm1001_vm11, %v6393_v50, 0.0 }
 0x93d   :  { %v2341_v16 = vsel %vm1001_vm11, %v6449_v22, -inf }
 0x93e   :  { %v2338_v35 = vsel %vm1001_vm11, %v6453_v59, -inf }
 0x93f   :  { %2333 = vmax.xlane.f32.xlu0 %v2332_v3 }
 0x943   :  { %2342 = vmax.xlane.f32.xlu0 %v2341_v16 }
 0x947   :  { %2339 = vmax.xlane.f32.xlu0 %v2338_v35 }
 0x94b   :  { %5200 = vrot.lane.b32.xlu1 %v5920_v40, %s5473_s17  ;;  %v1503_v40 = vsel %vm1001_vm11, %v6197_v47, 0.0  ;;  %v1933_v47 = vsel %vm1001_vm11, %v6391_v31, 0.0  ;;  %v1050_v31 = vsel %vm1001_vm11, %v6078_v55, 0.0 }
 0x94f   :  { %5205 = vrot.lane.b32.xlu1 %v5928_v54, %s5473_s17  ;;  %v1927_v54 = vsel %vm1001_vm11, %v6381_v8, 0.0  ;;  %v1930_v8 = vsel %vm1001_vm11, %v6383_v14, 0.0 }
 0x95d   :  { %5195 = vrot.lane.b32.xlu0 %v5914_v20, %s5473_s17  ;;  %v1918_v20 = vsel %vm1001_vm11, %v6353_v13, 0.0  ;;  %v1521_v13 = vsel %vm1001_vm11, %v6244_v5, 0.0  ;;  %v1518_v5 = vsel %vm1001_vm11, %v6238_v34, 0.0 }
 0x973   :  { %1501 = vadd.xlane.f32.xlu1 %v1500_v12 }
 0x977   :  { %1922 = vadd.xlane.f32.xlu1 %v1921_v49 }
 0x97b   :  { %1510 = vadd.xlane.f32.xlu1 %v1509_v63 }
 0x97c   :  { %1504 = vadd.xlane.f32.xlu0 %v1503_v40 }
 0x97f   :  { %1928 = vadd.xlane.f32.xlu1 %v1927_v54 }
 0x980   :  { %1919 = vadd.xlane.f32.xlu0 %v1918_v20 }
 0x983   :  { %1516 = vadd.xlane.f32.xlu1 %v1515_v32 }
 0x984   :  { %1507 = vadd.xlane.f32.xlu0 %v1506_v56 }
 0x987   :  { %1934 = vadd.xlane.f32.xlu1 %v1933_v47 }
 0x988   :  { %1925 = vadd.xlane.f32.xlu0 %v1924_v52 }
 0x98b   :  { %1522 = vadd.xlane.f32.xlu1 %v1521_v13 }
 0x98c   :  { %1513 = vadd.xlane.f32.xlu0 %v1512_v0 }
 0x98f   :  { %1940 = vadd.xlane.f32.xlu1 %v1939_v24 }
 0x990   :  { %1931 = vadd.xlane.f32.xlu0 %v1930_v8 }
 0x993   :  { %1054 = vadd.xlane.f32.xlu1 %v1053_v45 }
 0x994   :  { %1519 = vadd.xlane.f32.xlu0 %v1518_v5 }
 0x998   :  { %1937 = vadd.xlane.f32.xlu0 %v1936_v23 }
 0x99c   :  { %1051 = vadd.xlane.f32.xlu0 %v1050_v31 }
 0x9bf   :  { %v2325_v36 = vpop.xlane.xlu1 %2324 }
 0x9c0   :  { %v2345_v14 = vsub.f32 %v6427_v57, %v2325_v36  ;;  %v2322_v11 = vpop.xlane.xlu0 %2321 }
 0x9c1   :  { %v2344_v18 = vsub.f32 %v6429_v44, %v2322_v11 }
 0x9c2   :  { %v2354_v48 = vmul.f32 1.442695, %v2345_v14 }
 0x9c3   :  { %v2352_v7 = vmul.f32 1.442695, %v2344_v18 }
 0x9c4   :  { %5299 = vpow2.f32 %v2354_v48  ;;  %v2331_v3 = vpop.xlane.xlu0 %2330 }
 0x9c5   :  { %5301 = vpow2.f32 %v2352_v7  ;;  %v2347_v34 = vsub.f32 %v6435_v4, %v2331_v3 }
 0x9c7   :  { %v2358_v43 = vmul.f32 1.442695, %v2347_v34  ;;  %v2337_v50 = vpop.xlane.xlu1 %2336 }
 0x9c8   :  { %v2349_v16 = vsub.f32 %v6441_v46, %v2337_v50  ;;  %v2328_v35 = vpop.xlane.xlu0 %2327 }
 0x9c9   :  { %5303 = vpow2.f32 %v2358_v43  ;;  %v2346_v55 = vsub.f32 %v6439_v37, %v2328_v35 }
 0x9ca   :  { %v2362_v12 = vmul.f32 1.442695, %v2349_v16 }
 0x9cb   :  { %v2356_v57 = vmul.f32 1.442695, %v2346_v55  ;;  %v5201_v47 = vpop.permute.xlu1 %5200  ;;  %v1059_v55 = vsel %vm1001_vm11, %v6092_v61, 0.0  ;;  %v1071_v61 = vsel %vm1001_vm11, %v6112_v28, 0.0 }
 0x9cc   :  { %5305 = vpow2.f32 %v2362_v12  ;;  %v2334_v49 = vpop.xlane.xlu0 %2333  ;;  %v5203_v5 = vunpack.i.h.bf16 %v5201_v47  ;;  %v5202_v31 = vunpack.i.l.bf16 %v5201_v47 }
 0x9cd   :  { %5307 = vpow2.f32 %v2356_v57  ;;  %v2348_v44 = vsub.f32 %v6445_v21, %v2334_v49  ;;  %v1065_v57 = vsel %vm1001_vm11, %v6098_v19, 0.0  ;;  %v1056_v49 = vsel %vm1001_vm11, %v6080_v1, 0.0  ;;  %v5444_v19 = vld [vmem:[%s7165_s2 + $0x18] sm:$0xff] }
 0x9ce   :  { %v5300_v63 = vpop.eup %5299  ;;  %v4989_v7 = vpack.c.bf16 %v5203_v5, %v5202_v31  ;;  %v1068_v1 = vsel %vm1001_vm11, %v6110_v25, 0.0 }
 0x9cf   :  { %v5302_v40 = vpop.eup %5301  ;;  %v2360_v54 = vmul.f32 1.442695, %v2348_v44  ;;  %v2371_v4 = vsel %vm1001_vm11, %v5300_v63, 0.0  ;;  %v5206_v11 = vpop.permute.xlu1 %5205  ;;  %v1062_v44 = vsel %vm1001_vm11, %v6096_v15, 0.0  ;;  %v5443_v15 = vld [vmem:[%s7165_s2 + $0x10] sm:$0xff] }
 0x9d0   :  { %2372 = vadd.xlane.f32.xlu1 %v2371_v4  ;;  %4621 = vmatprep.mubr.msk.f32.mxu0 %vm1001_vm11, %v5302_v40  ;;  %v2343_v46 = vpop.xlane.xlu0 %2342  ;;  %v2368_v20 = vsel %vm1001_vm11, %v5302_v40, 0.0  ;;  %v5208_v3 = vunpack.i.h.bf16 %v5206_v11  ;;  %v5207_v34 = vunpack.i.l.bf16 %v5206_v11  ;;  %v5214_v28 = vpack.i.bf16 %v5444_v19, %v5443_v15  ;;  %v5446_v40 = vld [vmem:[%s7165_s2 + $0x8] sm:$0xff] }
 0x9d1   :  { %5309 = vpow2.f32 %v2360_v54  ;;  %v2351_v37 = vsub.f32 %v6449_v22, %v2343_v46  ;;  %2369 = vadd.xlane.f32.xlu0 %v2368_v20 }
 0x9d2   :  { %v4993_v16 = vpack.c.bf16 %v5208_v3, %v5207_v34 }
 0x9d3   :  { %v5304_v32 = vpop.eup %5303  ;;  %v2366_v56 = vmul.f32 1.442695, %v2351_v37 }
 0x9d4   :  { %v2340_v52 = vpop.xlane.xlu0 %2339  ;;  %v2377_v21 = vsel %vm1001_vm11, %v5304_v32, 0.0 }
 0x9d5   :  { %5311 = vpow2.f32 %v2366_v56  ;;  %v2350_v13 = vsub.f32 %v6453_v59, %v2340_v52  ;;  %2378 = vadd.xlane.f32.xlu1 %v2377_v21 }
 0x9d6   :  { %v5306_v0 = vpop.eup %5305 }
 0x9d7   :  { %v5308_v24 = vpop.eup %5307  ;;  %v2364_v8 = vmul.f32 1.442695, %v2350_v13  ;;  %v2383_v45 = vsel %vm1001_vm11, %v5306_v0, 0.0 }
 0x9d8   :  { %v5196_v23 = vpop.permute.xlu0 %5195  ;;  %v2374_v22 = vsel %vm1001_vm11, %v5308_v24, 0.0 }
 0x9d9   :  { %5313 = vpow2.f32 %v2364_v8  ;;  %v5198_v36 = vunpack.i.h.bf16 %v5196_v23  ;;  %v5197_v14 = vunpack.i.l.bf16 %v5196_v23  ;;  %2384 = vadd.xlane.f32.xlu1 %v2383_v45  ;;  %2375 = vadd.xlane.f32.xlu0 %v2374_v22 }
 0x9db   :  { %v5310_v18 = vpop.eup %5309  ;;  %v4985_v48 = vpack.c.bf16 %v5198_v36, %v5197_v14 }
 0x9dc   :  { %v2380_v59 = vsel %vm1001_vm11, %v5310_v18, 0.0 }
 0x9dd   :  { %2381 = vadd.xlane.f32.xlu0 %v2380_v59  ;;  %4986 = vmatprep.subr.bf16.mxu0 %v4985_v48 }
 0x9de   :  { %4988 = vmatpush3.bf16.msra.mxu0 %v4985_v48 }
 0x9df   :  { %v5312_v43 = vpop.eup %5311  ;;  %4990 = vmatprep.subr.bf16.mxu0 %v4989_v7 }
 0x9e0   :  { %v2389_v50 = vsel %vm1001_vm11, %v5312_v43, 0.0 }
 0x9e1   :  { %2390 = vadd.xlane.f32.xlu1 %v2389_v50 }
 0x9e2   :  { %4992 = vmatpush3.bf16.msra.mxu0 %v4989_v7 }
 0x9e3   :  { %v5314_v35 = vpop.eup %5313  ;;  %4994 = vmatprep.subr.bf16.mxu0 %v4993_v16 }
 0x9e4   :  { %v2386_v12 = vsel %vm1001_vm11, %v5314_v35, 0.0 }
 0x9e5   :  { %1060 = vadd.xlane.f32.xlu1 %v1059_v55  ;;  %2387 = vadd.xlane.f32.xlu0 %v2386_v12 }
 0x9e6   :  { %4996 = vmatpush3.bf16.msra.mxu0 %v4993_v16 }
 0x9e9   :  { %1066 = vadd.xlane.f32.xlu1 %v1065_v57  ;;  %1057 = vadd.xlane.f32.xlu0 %v1056_v49 }
 0x9ea   :  { %4622 = vmatmul.mubr.msk.f32.vlgmr.msra.gmra.mrb[40].mxu0 %vm1001_vm11, %v5300_v63  ;;  %v5445_v63 = vld [vmem:[%s7165_s2] sm:$0xff] }
 0x9eb   :  { %4624 = vmatprep.mubr.msk.f32.mxu0 %vm1001_vm11, %v5308_v24  ;;  %v5209_v54 = vpack.i.bf16 %v5446_v40, %v5445_v63 }
 0x9ed   :  { %1072 = vadd.xlane.f32.xlu1 %v1071_v61  ;;  %1063 = vadd.xlane.f32.xlu0 %v1062_v44 }
 0x9ee   :  { %4625 = vmatmul.mubr.msk.f32.gmra.mrb[42].mxu0 %vm1001_vm11, %v5304_v32 }
 0x9ef   :  { %4627 = vmatprep.mubr.msk.f32.mxu0 %vm1001_vm11, %v5310_v18 }
 0x9f1   :  { %1069 = vadd.xlane.f32.xlu0 %v1068_v1 }
 0x9f2   :  { %4628 = vmatmul.mubr.msk.f32.gmra.mrb[44].mxu0 %vm1001_vm11, %v5306_v0 }
 0x9f3   :  { %4630 = vmatprep.mubr.msk.f32.mxu0 %vm1001_vm11, %v5314_v35 }
 0x9f6   :  { %4631 = vmatmul.mubr.msk.f32.gmra.mrb[46].mxu0 %vm1001_vm11, %v5312_v43 }
 0x9fe   :  { %5215 = vrot.lane.b32.xlu1 %v5214_v28, %s5474_s1 }
 0xa00   :  { %v1502_v25 = vpop.xlane.xlu1 %1501 }
 0xa01   :  { %5315 = vrcp.f32 %v1502_v25 }
 0xa04   :  { %v1923_v4 = vpop.xlane.xlu1 %1922 }
 0xa07   :  { %5210 = vrot.lane.b32.xlu0 %v5209_v54, %s5474_s1 }
 0xa08   :  { %v1511_v46 = vpop.xlane.xlu1 %1510 }
 0xa09   :  { %v1505_v20 = vpop.xlane.xlu0 %1504 }
 0xa0a   :  { %5317 = vrcp.f32 %v1505_v20 }
 0xa0b   :  { %v5316_v37 = vpop.eup %5315  ;;  %5319 = vrcp.f32 %v1923_v4 }
 0xa0c   :  { %v1929_v32 = vpop.xlane.xlu1 %1928  ;;  %v1685_v56 = vmul.f32 %v5316_v37, %v6259_v38 }
 0xa0d   :  { %v1920_v47 = vpop.xlane.xlu0 %1919 }
 0xa0e   :  { %5321 = vrcp.f32 %v1920_v47  ;;  %2569 = vrot.lane.b32.xlu1 %v1685_v56, %s5475_s27 }
 0xa0f   :  { %5323 = vrcp.f32 %v1511_v46 }
 0xa10   :  { %v1517_v52 = vpop.xlane.xlu1 %1516 }
 0xa11   :  { %v1508_v21 = vpop.xlane.xlu0 %1507 }
 0xa12   :  { %5325 = vrcp.f32 %v1508_v21 }
 0xa13   :  { %5327 = vrcp.f32 %v1929_v32 }
 0xa14   :  { %v5318_v13 = vpop.eup %5317  ;;  %v1935_v0 = vpop.xlane.xlu1 %1934 }
 0xa15   :  { %v1926_v24 = vpop.xlane.xlu0 %1925  ;;  %v1686_v8 = vmul.f32 %v5318_v13, %v6257_v42  ;;  %v5320_v45 = vpop.eup %5319 }
 0xa16   :  { %5329 = vrcp.f32 %v1926_v24  ;;  %v2104_v22 = vmul.f32 %v5320_v45, %v6411_v58 }
 0xa17   :  { %2571 = vrot.lane.b32.xlu1 %v1686_v8, %s5475_s27  ;;  %5331 = vrcp.f32 %v1517_v52  ;;  %v7193_v8 = vld [vmem:[#allocation12_spill] sm:$0xff] }
 0xa18   :  { %v5322_v38 = vpop.eup %5321  ;;  %v1523_v5 = vpop.xlane.xlu1 %1522 }
 0xa19   :  { %v1514_v23 = vpop.xlane.xlu0 %1513  ;;  %v2103_v31 = vmul.f32 %v5322_v38, %v6413_v60  ;;  %v5324_v36 = vpop.eup %5323 }
 0xa1a   :  { %5333 = vrcp.f32 %v1514_v23  ;;  %v1688_v18 = vmul.f32 %v5324_v36, %v6261_v29  ;;  %v7194_v23 = vld [vmem:[#allocation11_spill] sm:$0xff] }
 0xa1b   :  { %2603 = vrot.lane.b32.xlu1 %v2104_v22, %s5476_s28  ;;  %2601 = vrot.lane.b32.xlu0 %v2103_v31, %s5476_s28  ;;  %5335 = vrcp.f32 %v1935_v0 }
 0xa1c   :  { %v5326_v42 = vpop.eup %5325  ;;  %v1941_v14 = vpop.xlane.xlu1 %1940 }
 0xa1d   :  { %v1932_v11 = vpop.xlane.xlu0 %1931  ;;  %v1687_v48 = vmul.f32 %v5326_v42, %v6263_v17  ;;  %v5328_v59 = vpop.eup %5327 }
 0xa1e   :  { %5337 = vrcp.f32 %v1932_v11  ;;  %v2106_v3 = vmul.f32 %v5328_v59, %v6415_v9 }
 0xa1f   :  { %2575 = vrot.lane.b32.xlu1 %v1688_v18, %s5475_s27  ;;  %2573 = vrot.lane.b32.xlu0 %v1687_v48, %s5475_s27  ;;  %5339 = vrcp.f32 %v1523_v5  ;;  %v7196_v18 = vld [vmem:[#allocation13_spill] sm:$0xff] }
 0xa20   :  { %v5330_v58 = vpop.eup %5329  ;;  %v1055_v60 = vpop.xlane.xlu1 %1054 }
 0xa21   :  { %5341 = vrcp.f32 %v1055_v60  ;;  %v1520_v7 = vpop.xlane.xlu0 %1519  ;;  %v2105_v34 = vmul.f32 %v5330_v58, %v6417_v53  ;;  %v5332_v43 = vpop.eup %5331  ;;  %v7197_v58 = vld [vmem:[#allocation15_spill] sm:$0xff] }
 0xa22   :  { %5343 = vrcp.f32 %v1520_v7  ;;  %v1690_v50 = vmul.f32 %v5332_v43, %v6265_v62 }
 0xa23   :  { %2607 = vrot.lane.b32.xlu1 %v2106_v3, %s5476_s28  ;;  %2605 = vrot.lane.b32.xlu0 %v2105_v34, %s5476_s28  ;;  %5345 = vrcp.f32 %v1941_v14  ;;  %v7195_v14 = vld [vmem:[#allocation14_spill] sm:$0xff] }
 0xa24   :  { %v5334_v29 = vpop.eup %5333 }
 0xa25   :  { %v1938_v17 = vpop.xlane.xlu0 %1937  ;;  %v1689_v16 = vmul.f32 %v5334_v29, %v6267_v51  ;;  %v5336_v35 = vpop.eup %5335 }
 0xa26   :  { %5347 = vrcp.f32 %v1938_v17  ;;  %v2108_v55 = vmul.f32 %v5336_v35, %v6419_v27 }
 0xa27   :  { %2579 = vrot.lane.b32.xlu1 %v1690_v50, %s5475_s27  ;;  %2577 = vrot.lane.b32.xlu0 %v1689_v16, %s5475_s27 }
 0xa28   :  { %v5338_v9 = vpop.eup %5337 }
 0xa29   :  { %v1052_v53 = vpop.xlane.xlu0 %1051  ;;  %v2107_v12 = vmul.f32 %v5338_v9, %v6421_v30  ;;  %v5340_v57 = vpop.eup %5339 }
 0xa2a   :  { %5349 = vrcp.f32 %v1052_v53  ;;  %v1692_v61 = vmul.f32 %v5340_v57, %v6269_v26 }
 0xa2b   :  { %v5342_v49 = vpop.eup %5341  ;;  %2611 = vrot.lane.b32.xlu1 %v2108_v55, %s5476_s28  ;;  %2609 = vrot.lane.b32.xlu0 %v2107_v12, %s5476_s28 }
 0xa2c   :  { %v5344_v62 = vpop.eup %5343  ;;  %v6576_v51 = vmul.f32 %v5342_v49, %v6136_v10 }
 0xa2d   :  { %v1691_v44 = vmul.f32 %v5344_v62, %v6271_v33  ;;  %v5346_v1 = vpop.eup %5345 }
 0xa2e   :  { %v2110_v30 = vmul.f32 %v5346_v1, %v6423_v39 }
 0xa2f   :  { %2583 = vrot.lane.b32.xlu1 %v1692_v61, %s5475_s27  ;;  %2581 = vrot.lane.b32.xlu0 %v1691_v44, %s5475_s27 }
 0xa30   :  { %v5348_v27 = vpop.eup %5347 }
 0xa31   :  { %v2109_v15 = vmul.f32 %v5348_v27, %v6425_v2 }
 0xa33   :  { %2615 = vrot.lane.b32.xlu1 %v2110_v30, %s5476_s28  ;;  %2613 = vrot.lane.b32.xlu0 %v2109_v15, %s5476_s28 }
 0xa34   :  { %v5350_v10 = vpop.eup %5349 }
 0xa35   :  { %v6587_v19 = vmul.f32 %v5350_v10, %v6138_v6 }
 0xa5d   :  { %v2373_v26 = vpop.xlane.xlu1 %2372 }
 0xa5e   :  { %v2370_v33 = vpop.xlane.xlu0 %2369 }
 0xa62   :  { %v2379_v28 = vpop.xlane.xlu1 %2378 }
 0xa66   :  { %v2376_v25 = vpop.xlane.xlu0 %2375  ;;  %v2385_v63 = vpop.xlane.xlu1 %2384 }
 0xa6a   :  { %v2382_v40 = vpop.xlane.xlu0 %2381 }
 0xa6e   :  { %v2391_v54 = vpop.xlane.xlu1 %2390 }
 0xa72   :  { %v1061_v4 = vpop.xlane.xlu1 %1060  ;;  %v2388_v46 = vpop.xlane.xlu0 %2387 }
 0xa73   :  { %5351 = vrcp.f32 %v1061_v4 }
 0xa76   :  { %v1067_v39 = vpop.xlane.xlu1 %1066  ;;  %v1058_v2 = vpop.xlane.xlu0 %1057 }
 0xa77   :  { %5353 = vrcp.f32 %v1067_v39 }
 0xa78   :  { %5355 = vrcp.f32 %v1058_v2 }
 0xa7a   :  { %v1073_v20 = vpop.xlane.xlu1 %1072  ;;  %v1064_v37 = vpop.xlane.xlu0 %1063 }
 0xa7b   :  { %5357 = vrcp.f32 %v1073_v20 }
 0xa7c   :  { %5359 = vrcp.f32 %v1064_v37 }
 0xa7d   :  { %v5352_v6 = vpop.eup %5351 }
 0xa7e   :  { %v1070_v32 = vpop.xlane.xlu0 %1069  ;;  %v6590_v56 = vmul.f32 %v5352_v6, %v6140_v41  ;;  %v5216_v47 = vpop.permute.xlu1 %5215 }
 0xa7f   :  { %5361 = vrcp.f32 %v1070_v32  ;;  %v5218_v21 = vunpack.i.h.bf16 %v5216_v47  ;;  %v5217_v13 = vunpack.i.l.bf16 %v5216_v47 }
 0xa80   :  { %5363 = vrcp.f32 %v2373_v26 }
 0xa81   :  { %v5354_v52 = vpop.eup %5353  ;;  %v5001_v36 = vpack.c.bf16 %v5218_v21, %v5217_v13  ;;  %5365 = vrcp.f32 %v2370_v33  ;;  %v5447_v33 = vld [vmem:[%s7165_s2 + $0x61] ss:$0 sm:$0xff] }
 0xa82   :  { %v5356_v0 = vpop.eup %5355  ;;  %v5211_v24 = vpop.permute.xlu0 %5210  ;;  %v6593_v45 = vmul.f32 %v5354_v52, %v7193_v8  ;;  %5367 = vrcp.f32 %v2379_v28 }
 0xa83   :  { %v5213_v38 = vunpack.i.h.bf16 %v5211_v24  ;;  %v5212_v5 = vunpack.i.l.bf16 %v5211_v24  ;;  %v6596_v22 = vmul.f32 %v5356_v0, %v7194_v23  ;;  %5369 = vrcp.f32 %v2376_v25  ;;  %v2570_v28 = vpop.permute.xlu1 %2569 }
 0xa84   :  { %5371 = vrcp.f32 %v2385_v63  ;;  %v2657_v13 = vsel %vm847_vm9, %v6587_v19, %v2570_v28 }
 0xa85   :  { %v5358_v31 = vpop.eup %5357  ;;  %v4997_v42 = vpack.c.bf16 %v5213_v38, %v5212_v5  ;;  %5373 = vrcp.f32 %v2382_v40 }
 0xa86   :  { %v5360_v41 = vpop.eup %5359  ;;  %v6599_v11 = vmul.f32 %v5358_v31, %v7195_v14  ;;  %5375 = vrcp.f32 %v2391_v54 }
 0xa87   :  { %v6602_v48 = vmul.f32 %v5360_v41, %v7196_v18  ;;  %4998 = vmatprep.subr.bf16.mxu0 %v4997_v42  ;;  %5377 = vrcp.f32 %v2388_v46 }
 0xa88   :  { %5000 = vmatpush3.bf16.msra.mxu0 %v4997_v42 }
 0xa89   :  { %v5362_v59 = vpop.eup %5361  ;;  %5002 = vmatprep.subr.bf16.mxu0 %v5001_v36  ;;  %v2572_v25 = vpop.permute.xlu1 %2571 }
 0xa8a   :  { %v6605_v60 = vmul.f32 %v5362_v59, %v7197_v58  ;;  %v5364_v7 = vpop.eup %5363  ;;  %v2658_v24 = vsel %vm847_vm9, %v6576_v51, %v2572_v25 }
 0xa8b   :  { %v5366_v34 = vpop.eup %5365 }
 0xa8c   :  { %5004 = vmatpush3.bf16.msra.mxu0 %v5001_v36  ;;  %v5368_v50 = vpop.eup %5367 }
 0xa8d   :  { %v5370_v35 = vpop.eup %5369  ;;  %v2604_v63 = vpop.permute.xlu1 %2603 }
 0xa8e   :  { %v5372_v12 = vpop.eup %5371  ;;  %v2602_v40 = vpop.permute.xlu0 %2601  ;;  %v2667_v5 = vsel %vm2665_vm12, %v2658_v24, %v2604_v63 }
 0xa8f   :  { %v5374_v49 = vpop.eup %5373  ;;  %v2666_v8 = vsel %vm2665_vm12, %v2657_v13, %v2602_v40 }
 0xa90   :  { %v5376_v1 = vpop.eup %5375 }
 0xa91   :  { %v5378_v30 = vpop.eup %5377  ;;  %v2576_v54 = vpop.permute.xlu1 %2575 }
 0xa92   :  { %v2574_v4 = vpop.permute.xlu0 %2573  ;;  %v2660_v51 = vsel %vm847_vm9, %v6590_v56, %v2576_v54 }
 0xa93   :  { %v2659_v36 = vsel %vm847_vm9, %v6596_v22, %v2574_v4 }
 0xa95   :  { %v2608_v46 = vpop.permute.xlu1 %2607 }
 0xa96   :  { %v2606_v39 = vpop.permute.xlu0 %2605  ;;  %v2669_v14 = vsel %vm2665_vm12, %v2660_v51, %v2608_v46 }
 0xa97   :  { %v2668_v42 = vsel %vm2665_vm12, %v2659_v36, %v2606_v39 }
 0xa99   :  { %v2580_v2 = vpop.permute.xlu1 %2579 }
 0xa9a   :  { %v2578_v20 = vpop.permute.xlu0 %2577  ;;  %v2662_v56 = vsel %vm847_vm9, %v6593_v45, %v2580_v2 }
 0xa9b   :  { %v2661_v22 = vsel %vm847_vm9, %v6602_v48, %v2578_v20 }
 0xa9d   :  { %v2612_v37 = vpop.permute.xlu1 %2611 }
 0xa9e   :  { %v2610_v6 = vpop.permute.xlu0 %2609 }
 0xaa1   :  { %v2584_v32 = vpop.permute.xlu1 %2583 }
 0xaa2   :  { %v2582_v47 = vpop.permute.xlu0 %2581  ;;  %v2664_v45 = vsel %vm847_vm9, %v6599_v11, %v2584_v32  ;;  %v7200_v11 = vld [vmem:[#allocation2_spill] sm:$0xff] }
 0xaa3   :  { %v2663_v48 = vsel %vm847_vm9, %v6605_v60, %v2582_v47  ;;  %v7198_v60 = vld [vmem:[#allocation3_spill] sm:$0xff]  ;;  %v2827_v24 = vadd.s32 64, %v7200_v11 }
 0xaa5   :  { %v2616_v52 = vpop.permute.xlu1 %2615 }
 0xaa6   :  { %v2614_v21 = vpop.permute.xlu0 %2613 }
 0xabd   :  { %v4623_v3 = vpop.f32.mrb[40].mxu0 }
 0xabe   :  { %v2554_v43 = vmul.f32 %v5364_v7, %v4623_v3  ;;  %v2514_v29 = vpop.f32.mrb[41].mxu0  ;;  %v2670_v7 = vsel %vm2665_vm12, %v2661_v22, %v2610_v6  ;;  %v7203_v6 = vld [vmem:[#allocation5_spill] sm:$0xff] }
 0xabf   :  { %v2553_v17 = vmul.f32 %v5366_v34, %v2514_v29  ;;  %v2671_v34 = vsel %vm2665_vm12, %v2662_v56, %v2612_v37  ;;  %v2830_v56 = vadd.s32 88, %v7200_v11 }
 0xac0   :  { %2635 = vrot.lane.b32.xlu1 %v2554_v43, %s5477_s29 }
 0xac1   :  { %2633 = vrot.lane.b32.xlu0 %v2553_v17, %s5477_s29  ;;  %v4626_v16 = vpop.f32.mrb[42].mxu0 }
 0xac2   :  { %v2556_v9 = vmul.f32 %v5368_v50, %v4626_v16  ;;  %v2524_v53 = vpop.f32.mrb[43].mxu0  ;;  %v2672_v50 = vsel %vm2665_vm12, %v2663_v48, %v2614_v21  ;;  %v7204_v21 = vld [vmem:[#allocation9_spill] sm:$0xff] }
 0xac3   :  { %v2555_v55 = vmul.f32 %v5370_v35, %v2524_v53  ;;  %v2673_v35 = vsel %vm2665_vm12, %v2664_v45, %v2616_v52 }
 0xac4   :  { %2639 = vrot.lane.b32.xlu1 %v2556_v9, %s5477_s29 }
 0xac5   :  { %2637 = vrot.lane.b32.xlu0 %v2555_v55, %s5477_s29  ;;  %v4629_v57 = vpop.f32.mrb[44].mxu0  ;;  %v6652_v55 = vmul.u32 2, %v7198_v60  ;;  %v2834_v60 = vadd.s32 120, %v7200_v11 }
 0xac6   :  { %v2558_v62 = vmul.f32 %v5372_v12, %v4629_v57  ;;  %v2534_v61 = vpop.f32.mrb[45].mxu0  ;;  %v7199_v12 = vld [vmem:[#allocation4_spill] sm:$0xff] }
 0xac7   :  { %v2557_v44 = vmul.f32 %v5374_v49, %v2534_v61  ;;  %v2837_v57 = vsub.s32 %v7199_v12, %v6652_v55  ;;  %v2836_v49 = vsub.s32 %v7200_v11, %v6652_v55  ;;  %v2838_v32 = vsub.s32 %v7203_v6, %v6652_v55 }
 0xac8   :  { %2643 = vrot.lane.b32.xlu1 %v2558_v62, %s5477_s29  ;;  %v7201_v62 = vld [vmem:[#allocation8_spill] sm:$0xff]  ;;  %v2842_v13 = vsub.s32 %v7204_v21, %v6652_v55  ;;  %v2847_v48 = vsub.s32 %v2830_v56, %v6652_v55 }
 0xac9   :  { %2641 = vrot.lane.b32.xlu0 %v2557_v44, %s5477_s29  ;;  %v4632_v27 = vpop.f32.mrb[46].mxu0  ;;  %vm2852_vm14 = vcmp.ge.s32.totalorder %v2836_v49, 0  ;;  %vm2868_vm15 = vcmp.le.s32.totalorder %v2836_v49, 1  ;;  %v2841_v61 = vsub.s32 %v7201_v62, %v6652_v55  ;;  %vm2853_vm1 = vcmp.ge.s32.totalorder %v2837_v57, 0  ;;  %v5453_v21 = vld [vmem:[%s7164_s0 + $0x18] sm:$0xff] }
 0xaca   :  { %v2560_v15 = vmul.f32 %v5376_v1, %v4632_v27  ;;  %v2544_v10 = vpop.f32.mrb[47].mxu0  ;;  %vm2884_vm0 = vmand %vm2852_vm14, %vm2868_vm15  ;;  %vm2869_vm2 = vcmp.le.s32.totalorder %v2837_v57, 1  ;;  %v5478_v44 = vmov 0.0   ;;  %v7202_v27 = vld [vmem:[#allocation7_spill] sm:$0xff]  ;;  %vm2854_vm12 = vcmp.ge.s32.totalorder %v2838_v32, 0 }
 0xacb   :  { %v2559_v26 = vmul.f32 %v5378_v30, %v2544_v10  ;;  %v2900_v1 = vsel %vm2884_vm0, 1.0, %v5478_v44  ;;  %vm2885_vm3 = vmand %vm2853_vm1, %vm2869_vm2  ;;  %v2840_v30 = vsub.s32 %v7202_v27, %v6652_v55  ;;  %vm2857_vm6 = vcmp.ge.s32.totalorder %v2841_v61, 0 }
 0xacc   :  { %2647 = vrot.lane.b32.xlu1 %v2560_v15, %s5477_s29  ;;  %v6665_v15 = vsel %vm2885_vm3, 1.0, %v5478_v44  ;;  %vm2873_vm7 = vcmp.le.s32.totalorder %v2841_v61, 1  ;;  %vm2858_vm14 = vcmp.ge.s32.totalorder %v2842_v13, 0  ;;  %vm2874_vm15 = vcmp.le.s32.totalorder %v2842_v13, 1 }
 0xacd   :  { %2645 = vrot.lane.b32.xlu0 %v2559_v26, %s5477_s29  ;;  %vm2856_vm4 = vcmp.ge.s32.totalorder %v2840_v30, 0  ;;  %vm2872_vm5 = vcmp.le.s32.totalorder %v2840_v30, 1  ;;  %vm2889_vm10 = vmand %vm2857_vm6, %vm2873_vm7 }
 0xace   :  { %vm2888_vm9 = vmand %vm2856_vm4, %vm2872_vm5  ;;  %v6670_v26 = vsel %vm2889_vm10, 1.0, %v5478_v44 }
 0xacf   :  { %v2904_v10 = vsel %vm2888_vm9, 1.0, %v5478_v44  ;;  %vm2890_vm3 = vmand %vm2858_vm14, %vm2874_vm15 }
 0xad0   :  { %4675 = vmatprep.mubr.msk.f32.mxu1 %vm1001_vm11, %v2904_v10  ;;  %v5448_v10 = vld [vmem:[%s7164_s0 + $0x8] sm:$0xff] }
 0xad1   :  { %2695 = vrot.lane.b32.xlu0 %v5447_v33, %s5474_s1 }
 0xb32   :  { %v2636_v0 = vpop.permute.xlu1 %2635 }
 0xb33   :  { %v2634_v38 = vpop.permute.xlu0 %2633  ;;  %v2676_v31 = vsel %vm2674_vm13, %v2667_v5, %v2636_v0  ;;  %v7205_v5 = vld [vmem:[#allocation6_spill] sm:$0xff] }
 0xb34   :  { %v2675_v23 = vsel %vm2674_vm13, %v2666_v8, %v2634_v38 }
 0xb35   :  { %4641 = vmatprep.mubr.msk.f32.mxu0 %vm307_vm8, %v2675_v23  ;;  %v2839_v23 = vsub.s32 %v7205_v5, %v6652_v55 }
 0xb36   :  { %4642 = vmatmul.mubr.msk.f32.vlgmr.msra.gmra.mrb[48].mxu0 %vm307_vm8, %v2676_v31  ;;  %v2640_v19 = vpop.permute.xlu1 %2639 }
 0xb37   :  { %v2638_v41 = vpop.permute.xlu0 %2637  ;;  %v2678_v59 = vsel %vm2674_vm13, %v2669_v14, %v2640_v19  ;;  %v7206_v19 = vld [vmem:[#allocation10_spill] sm:$0xff]  ;;  %v2844_v14 = vsub.s32 %v2827_v24, %v6652_v55  ;;  %vm2855_vm1 = vcmp.ge.s32.totalorder %v2839_v23, 0  ;;  %vm2871_vm2 = vcmp.le.s32.totalorder %v2839_v23, 1 }
 0xb38   :  { %v2677_v18 = vsel %vm2674_vm13, %v2668_v42, %v2638_v41  ;;  %v2843_v51 = vsub.s32 %v7206_v19, %v6652_v55  ;;  %v2828_v42 = vadd.s32 72, %v7200_v11  ;;  %vm6696_vm9 = vmand %vm2855_vm1, %vm2871_vm2 }
 0xb39   :  { %4644 = vmatprep.mubr.msk.f32.mxu0 %vm307_vm8, %v2677_v18  ;;  %v2829_v18 = vadd.s32 80, %v7200_v11  ;;  %vm2860_vm6 = vcmp.ge.s32.totalorder %v2844_v14, 0  ;;  %vm2876_vm7 = vcmp.le.s32.totalorder %v2844_v14, 1 }
 0xb3a   :  { %4645 = vmatmul.mubr.msk.f32.gmra.mrb[50].mxu0 %vm307_vm8, %v2678_v59  ;;  %v2644_v58 = vpop.permute.xlu1 %2643  ;;  %vm2859_vm4 = vcmp.ge.s32.totalorder %v2843_v51, 0  ;;  %vm2875_vm5 = vcmp.le.s32.totalorder %v2843_v51, 1 }
 0xb3b   :  { %v2642_v3 = vpop.permute.xlu0 %2641  ;;  %v2680_v29 = vsel %vm2674_vm13, %v2671_v34, %v2644_v58  ;;  %v2845_v58 = vsub.s32 %v2828_v42, %v6652_v55  ;;  %vm2891_vm10 = vmand %vm2859_vm4, %vm2875_vm5  ;;  %vm2879_vm4 = vcmp.le.s32.totalorder %v2847_v48, 1 }
 0xb3c   :  { %v2679_v43 = vsel %vm2674_vm13, %v2670_v7, %v2642_v3  ;;  %v2846_v7 = vsub.s32 %v2829_v18, %v6652_v55  ;;  %v2831_v3 = vadd.s32 96, %v7200_v11  ;;  %v5457_v18 = vld [vmem:[%s7164_s0 + $0x50] sm:$0xff] }
 0xb3d   :  { %4647 = vmatprep.mubr.msk.f32.mxu0 %vm307_vm8, %v2679_v43  ;;  %vm2877_vm14 = vcmp.le.s32.totalorder %v2845_v58, 1 }
 0xb3e   :  { %4648 = vmatmul.mubr.msk.f32.gmra.mrb[52].mxu0 %vm307_vm8, %v2680_v29  ;;  %v2648_v17 = vpop.permute.xlu1 %2647  ;;  %v2906_v29 = vsel %vm2890_vm3, 1.0, %v5478_v44  ;;  %vm2862_vm15 = vcmp.ge.s32.totalorder %v2846_v7, 0  ;;  %vm2878_vm1 = vcmp.le.s32.totalorder %v2846_v7, 1  ;;  %v2848_v45 = vsub.s32 %v2831_v3, %v6652_v55  ;;  %v5458_v3 = vld [vmem:[%s7164_s0 + $0x48] sm:$0xff] }
 0xb3f   :  { %v2646_v16 = vpop.permute.xlu0 %2645  ;;  %v2682_v53 = vsel %vm2674_vm13, %v2673_v35, %v2648_v17  ;;  %v2832_v17 = vadd.s32 104, %v7200_v11  ;;  %v2907_v35 = vsel %vm2891_vm10, 1.0, %v5478_v44  ;;  %vm2894_vm2 = vmand %vm2862_vm15, %vm2878_vm1  ;;  %vm2863_vm3 = vcmp.ge.s32.totalorder %v2847_v48, 0 }
 0xb40   :  { %v2681_v9 = vsel %vm2674_vm13, %v2672_v50, %v2646_v16  ;;  %vm2870_vm13 = vcmp.le.s32.totalorder %v2838_v32, 1  ;;  %v2833_v50 = vadd.s32 112, %v7200_v11  ;;  %v2903_v16 = vsel %vm6696_vm9, 1.0, %v5478_v44  ;;  %v5452_v32 = vld [vmem:[%s7164_s0 + $0x30] sm:$0xff] }
 0xb41   :  { %4650 = vmatprep.mubr.msk.f32.mxu0 %vm307_vm8, %v2681_v9  ;;  %vm6686_vm0 = vmand %vm2854_vm12, %vm2870_vm13  ;;  %vm2861_vm13 = vcmp.ge.s32.totalorder %v2845_v58, 0  ;;  %vm2864_vm5 = vcmp.ge.s32.totalorder %v2848_v45, 0  ;;  %v2910_v49 = vsel %vm2894_vm2, 1.0, %v5478_v44  ;;  %v2851_v11 = vsub.s32 %v2834_v60, %v6652_v55 }
 0xb42   :  { %4651 = vmatmul.mubr.msk.f32.gmra.mrb[54].mxu0 %vm307_vm8, %v2682_v53  ;;  %v2902_v43 = vsel %vm6686_vm0, 1.0, %v5478_v44  ;;  %vm2892_vm12 = vmand %vm2860_vm6, %vm2876_vm7  ;;  %v2849_v53 = vsub.s32 %v2832_v17, %v6652_v55  ;;  %vm2880_vm6 = vcmp.le.s32.totalorder %v2848_v45, 1  ;;  %v2850_v12 = vsub.s32 %v2833_v50, %v6652_v55 }
 0xb43   :  { %4669 = vmatprep.mubr.msk.f32.mxu0 %vm1001_vm11, %v2900_v1  ;;  %v2696_v33 = vpop.permute.xlu0 %2695  ;;  %v2908_v9 = vsel %vm2892_vm12, 1.0, %v5478_v44  ;;  %vm2893_vm0 = vmand %vm2861_vm13, %vm2877_vm14  ;;  %vm2883_vm2 = vcmp.le.s32.totalorder %v2851_v11, 1 }
 0xb44   :  { %v2909_v57 = vsel %vm2893_vm0, 1.0, %v5478_v44  ;;  %vm2895_vm7 = vmand %vm2863_vm3, %vm2879_vm4  ;;  %vm2865_vm10 = vcmp.ge.s32.totalorder %v2849_v53, 0  ;;  %vm2881_vm12 = vcmp.le.s32.totalorder %v2849_v53, 1  ;;  %vm2866_vm13 = vcmp.ge.s32.totalorder %v2850_v12, 0 }
 0xb45   :  { %vm2896_vm9 = vmand %vm2864_vm5, %vm2880_vm6  ;;  %vm2882_vm14 = vcmp.le.s32.totalorder %v2850_v12, 1  ;;  %v2911_v62 = vsel %vm2895_vm7, 1.0, %v5478_v44  ;;  %vm2867_vm0 = vcmp.ge.s32.totalorder %v2851_v11, 0 }
 0xb46   :  { %v2912_v61 = vsel %vm2896_vm9, 1.0, %v5478_v44  ;;  %vm2897_vm15 = vmand %vm2865_vm10, %vm2881_vm12 }
 0xb47   :  { %vm2898_vm1 = vmand %vm2866_vm13, %vm2882_vm14  ;;  %v2913_v55 = vsel %vm2897_vm15, 1.0, %v5478_v44 }
 0xb48   :  { %v2914_v1 = vsel %vm2898_vm1, 1.0, %v5478_v44  ;;  %vm2899_vm3 = vmand %vm2867_vm0, %vm2883_vm2 }
 0xb49   :  { %v2915_v27 = vsel %vm2899_vm3, 1.0, %v5478_v44  ;;  %v5450_v44 = vld [vmem:[%s7164_s0 + $0x20] sm:$0xff] }
 0xc09   :  { %v4643_v28 = vpop.f32.mrb[48].mxu0 }
 0xc0a   :  { %v2788_v25 = vpop.f32.mrb[49].mxu0  ;;  %v2794_v63 = vadd.f32 %v4643_v28, %v2696_v33 }
 0xc0b   :  { %v2789_v40 = vadd.f32 %v2788_v25, %v2696_v33  ;;  %v5449_v25 = vld [vmem:[%s7164_s0] sm:$0xff] }
 0xc0d   :  { %v5005_v54 = vpack.c.bf16 %v2794_v63, %v2789_v40  ;;  %v4646_v4 = vpop.f32.mrb[50].mxu0 }
 0xc0e   :  { %v2804_v46 = vadd.f32 %v4646_v4, %v2696_v33  ;;  %v2798_v39 = vpop.f32.mrb[51].mxu0 }
 0xc0f   :  { %v2799_v2 = vadd.f32 %v2798_v39, %v2696_v33  ;;  %5006 = vmatprep.subr.bf16.mxu0 %v5005_v54  ;;  %5037 = vmatprep.subr.bf16.mxu1 %v5005_v54 }
 0xc10   :  { %5008 = vmatpush3.bf16.msra.mxu0 %v5005_v54  ;;  %5041 = vmatpush3.bf16.msra.mxu1 %v5005_v54 }
 0xc11   :  { %v5009_v20 = vpack.c.bf16 %v2804_v46, %v2799_v2  ;;  %v4649_v37 = vpop.f32.mrb[52].mxu0 }
 0xc12   :  { %v2814_v47 = vadd.f32 %v4649_v37, %v2696_v33  ;;  %v2808_v52 = vpop.f32.mrb[53].mxu0  ;;  %v5451_v37 = vld [vmem:[%s7164_s0 + $0x10] sm:$0xff] }
 0xc13   :  { %v2809_v0 = vadd.f32 %v2808_v52, %v2696_v33  ;;  %5010 = vmatprep.subr.bf16.mxu0 %v5009_v20  ;;  %5038 = vmatprep.subr.bf16.mxu1 %v5009_v20 }
 0xc14   :  { %5012 = vmatpush3.bf16.msra.mxu0 %v5009_v20  ;;  %5042 = vmatpush3.bf16.msra.mxu1 %v5009_v20 }
 0xc15   :  { %v5013_v8 = vpack.c.bf16 %v2814_v47, %v2809_v0  ;;  %v4652_v38 = vpop.f32.mrb[54].mxu0 }
 0xc16   :  { %v2824_v31 = vadd.f32 %v4652_v38, %v2696_v33  ;;  %v2818_v36 = vpop.f32.mrb[55].mxu0  ;;  %v5454_v38 = vld [vmem:[%s7164_s0 + $0x40] sm:$0xff] }
 0xc17   :  { %v2819_v41 = vadd.f32 %v2818_v36, %v2696_v33  ;;  %5014 = vmatprep.subr.bf16.mxu0 %v5013_v8  ;;  %5039 = vmatprep.subr.bf16.mxu1 %v5013_v8 }
 0xc18   :  { %5016 = vmatpush3.bf16.msra.mxu0 %v5013_v8  ;;  %5043 = vmatpush3.bf16.msra.mxu1 %v5013_v8 }
 0xc19   :  { %v5017_v59 = vpack.c.bf16 %v2824_v31, %v2819_v41  ;;  %v5455_v31 = vld [vmem:[%s7164_s0 + $0x28] sm:$0xff]  ;;  %v5456_v41 = vld [vmem:[%s7164_s0 + $0x38] sm:$0xff] }
 0xc1b   :  { %5018 = vmatprep.subr.bf16.mxu0 %v5017_v59  ;;  %5040 = vmatprep.subr.bf16.mxu1 %v5017_v59 }
 0xc1c   :  { %5020 = vmatpush3.bf16.msra.mxu0 %v5017_v59  ;;  %5044 = vmatpush3.bf16.msra.mxu1 %v5017_v59 }
 0xc1f   :  { %4670 = vmatmul.mubr.msk.f32.vlgmr.msra.gmra.mrb[56].mxu0 %vm1001_vm11, %v6665_v15  ;;  %4676 = vmatmul.mubr.msk.f32.vlgmr.msra.gmra.mrb[48].mxu1 %vm1001_vm11, %v6670_v26 }
 0xc20   :  { %4672 = vmatprep.mubr.msk.f32.mxu0 %vm1001_vm11, %v2902_v43  ;;  %4678 = vmatprep.mubr.msk.f32.mxu1 %vm1001_vm11, %v2906_v29  ;;  %v5459_v43 = vld [vmem:[%s7164_s0 + $0x60] sm:$0xff] }
 0xc23   :  { %4673 = vmatmul.mubr.msk.f32.gmra.mrb[58].mxu0 %vm1001_vm11, %v2903_v16  ;;  %4679 = vmatmul.mubr.msk.f32.gmra.mrb[50].mxu1 %vm1001_vm11, %v2907_v35  ;;  %v5460_v16 = vld [vmem:[%s7164_s0 + $0x58] sm:$0xff] }
 0xc24   :  { %4681 = vmatprep.mubr.msk.f32.mxu1 %vm1001_vm11, %v2908_v9  ;;  %v5461_v9 = vld [vmem:[%s7164_s0 + $0x70] sm:$0xff] }
 0xc27   :  { %4682 = vmatmul.mubr.msk.f32.gmra.mrb[52].mxu1 %vm1001_vm11, %v2909_v57  ;;  %v5462_v57 = vld [vmem:[%s7164_s0 + $0x68] sm:$0xff] }
 0xc28   :  { %4684 = vmatprep.mubr.msk.f32.mxu1 %vm1001_vm11, %v2910_v49 }
 0xc2b   :  { %4685 = vmatmul.mubr.msk.f32.gmra.mrb[54].mxu1 %vm1001_vm11, %v2911_v62 }
 0xc2c   :  { %4687 = vmatprep.mubr.msk.f32.mxu1 %vm1001_vm11, %v2912_v61  ;;  %v5463_v61 = vld [vmem:[%s7164_s0 + $0x78] sm:$0xff] }
 0xc2f   :  { %4688 = vmatmul.mubr.msk.f32.gmra.mrb[56].mxu1 %vm1001_vm11, %v2913_v55 }
 0xc30   :  { %4690 = vmatprep.mubr.msk.f32.mxu1 %vm1001_vm11, %v2914_v1 }
 0xc33   :  { %4691 = vmatmul.mubr.msk.f32.gmra.mrb[58].mxu1 %vm1001_vm11, %v2915_v27 }
 0xcf2   :  { %v4671_v30 = vpop.f32.mrb[56].mxu0  ;;  %v4677_v15 = vpop.f32.mrb[48].mxu1 }
 0xcf3   :  { %v6745_v26 = vadd.f32 %v5448_v10, %v4671_v30  ;;  %v3030_v33 = vpop.f32.mrb[57].mxu0  ;;  %v3050_v28 = vpop.f32.mrb[49].mxu1  ;;  %v6790_v36 = vadd.f32 %v5455_v31, %v4677_v15 }
 0xcf4   :  { %v6750_v63 = vadd.f32 %v5449_v25, %v3030_v33  ;;  %v6755_v40 = vadd.f32 %v5450_v44, %v3050_v28 }
 0xcf5   :  { %v3128_v54 = vsel %vm307_vm8, %v6745_v26, 0.0  ;;  %v3140_v58 = vsel %vm307_vm8, %v6790_v36, 0.0 }
 0xcf6   :  { %3129 = vadd.xlane.f32.xlu0 %v3128_v54  ;;  %v4674_v4 = vpop.f32.mrb[58].mxu0  ;;  %v3125_v46 = vsel %vm307_vm8, %v6750_v63, 0.0  ;;  %v4680_v39 = vpop.f32.mrb[50].mxu1  ;;  %v3137_v52 = vsel %vm307_vm8, %v6755_v40, 0.0 }
 0xcf7   :  { %3126 = vadd.xlane.f32.xlu1 %v3125_v46  ;;  %v3040_v2 = vpop.f32.mrb[59].mxu0  ;;  %v3060_v20 = vpop.f32.mrb[51].mxu1  ;;  %v6776_v13 = vadd.f32 %v5453_v21, %v4674_v4  ;;  %v6797_v14 = vadd.f32 %v5456_v41, %v4680_v39 }
 0xcf8   :  { %v6764_v6 = vadd.f32 %v5451_v37, %v3040_v2  ;;  %v6769_v47 = vadd.f32 %v5452_v32, %v3060_v20 }
 0xcf9   :  { %v3134_v19 = vsel %vm307_vm8, %v6776_v13, 0.0  ;;  %v3146_v17 = vsel %vm307_vm8, %v6797_v14, 0.0 }
 0xcfa   :  { %v3131_v0 = vsel %vm307_vm8, %v6764_v6, 0.0  ;;  %v4683_v24 = vpop.f32.mrb[52].mxu1  ;;  %v3143_v23 = vsel %vm307_vm8, %v6769_v47, 0.0 }
 0xcfb   :  { %3138 = vadd.xlane.f32.xlu1 %v3137_v52  ;;  %3132 = vadd.xlane.f32.xlu0 %v3131_v0  ;;  %v3070_v8 = vpop.f32.mrb[53].mxu1  ;;  %v6811_v34 = vadd.f32 %v5458_v3, %v4683_v24 }
 0xcfc   :  { %v6783_v5 = vadd.f32 %v5454_v38, %v3070_v8 }
 0xcfd   :  { %v3152_v12 = vsel %vm307_vm8, %v6811_v34, 0.0 }
 0xcfe   :  { %v4686_v51 = vpop.f32.mrb[54].mxu1  ;;  %v3149_v22 = vsel %vm307_vm8, %v6783_v5, 0.0 }
 0xcff   :  { %3144 = vadd.xlane.f32.xlu1 %v3143_v23  ;;  %3135 = vadd.xlane.f32.xlu0 %v3134_v19  ;;  %v3080_v42 = vpop.f32.mrb[55].mxu1  ;;  %v6825_v35 = vadd.f32 %v5460_v16, %v4686_v51 }
 0xd00   :  { %v6802_v59 = vadd.f32 %v5457_v18, %v3080_v42 }
 0xd01   :  { %v3158_v62 = vsel %vm307_vm8, %v6825_v35, 0.0 }
 0xd02   :  { %v4689_v56 = vpop.f32.mrb[56].mxu1  ;;  %v3155_v48 = vsel %vm307_vm8, %v6802_v59, 0.0 }
 0xd03   :  { %3150 = vadd.xlane.f32.xlu1 %v3149_v22  ;;  %3141 = vadd.xlane.f32.xlu0 %v3140_v58  ;;  %v3090_v7 = vpop.f32.mrb[57].mxu1  ;;  %v6839_v49 = vadd.f32 %v5462_v57, %v4689_v56 }
 0xd04   :  { %v6816_v29 = vadd.f32 %v5459_v43, %v3090_v7 }
 0xd05   :  { %v3164_v1 = vsel %vm307_vm8, %v6839_v49, 0.0 }
 0xd06   :  { %v4692_v45 = vpop.f32.mrb[58].mxu1  ;;  %v3161_v60 = vsel %vm307_vm8, %v6816_v29, 0.0 }
 0xd07   :  { %3156 = vadd.xlane.f32.xlu1 %v3155_v48  ;;  %3147 = vadd.xlane.f32.xlu0 %v3146_v17  ;;  %v3100_v50 = vpop.f32.mrb[59].mxu1  ;;  %v6848_v55 = vadd.f32 %v5463_v61, %v4692_v45 }
 0xd08   :  { %v6830_v53 = vadd.f32 %v5461_v9, %v3100_v50 }
 0xd09   :  { %v3170_v27 = vsel %vm307_vm8, %v6848_v55, 0.0 }
 0xd0a   :  { %v3167_v11 = vsel %vm307_vm8, %v6830_v53, 0.0 }
 0xd0b   :  { %3162 = vadd.xlane.f32.xlu1 %v3161_v60  ;;  %3153 = vadd.xlane.f32.xlu0 %v3152_v12 }
 0xd0f   :  { %3168 = vadd.xlane.f32.xlu1 %v3167_v11  ;;  %3159 = vadd.xlane.f32.xlu0 %v3158_v62 }
 0xd13   :  { %3165 = vadd.xlane.f32.xlu0 %v3164_v1 }
 0xd17   :  { %3171 = vadd.xlane.f32.xlu0 %v3170_v27 }
 0xd83   :  { %v3130_v30 = vpop.xlane.xlu0 %3129 }
 0xd84   :  { %v3174_v15 = vmul.f32 0.03125, %v3130_v30  ;;  %v3127_v10 = vpop.xlane.xlu1 %3126 }
 0xd85   :  { %v3173_v33 = vmul.f32 0.03125, %v3127_v10 }
 0xd86   :  { %v6855_v28 = vsub.f32 %v6745_v26, %v3174_v15 }
 0xd87   :  { %v6858_v25 = vsub.f32 %v6750_v63, %v3173_v33 }
 0xd88   :  { %v3139_v44 = vpop.xlane.xlu1 %3138  ;;  %v3133_v54 = vpop.xlane.xlu0 %3132  ;;  %v3206_v4 = vmul.f32 %v6855_v28, %v6855_v28 }
 0xd89   :  { %v3177_v46 = vmul.f32 0.03125, %v3139_v44  ;;  %v3175_v39 = vmul.f32 0.03125, %v3133_v54  ;;  %v3205_v2 = vmul.f32 %v6858_v25, %v6858_v25 }
 0xd8a   :  { %v3224_v20 = vsel %vm307_vm8, %v3206_v4, 0.0 }
 0xd8b   :  { %v6866_v37 = vsub.f32 %v6755_v40, %v3177_v46  ;;  %v6869_v32 = vsub.f32 %v6764_v6, %v3175_v39  ;;  %3225 = vadd.xlane.f32.xlu0 %v3224_v20  ;;  %v3221_v52 = vsel %vm307_vm8, %v3205_v2, 0.0 }
 0xd8c   :  { %3222 = vadd.xlane.f32.xlu1 %v3221_v52  ;;  %v3145_v21 = vpop.xlane.xlu1 %3144  ;;  %v3136_v0 = vpop.xlane.xlu0 %3135 }
 0xd8d   :  { %v3179_v24 = vmul.f32 0.03125, %v3145_v21  ;;  %v3209_v8 = vmul.f32 %v6866_v37, %v6866_v37  ;;  %v3176_v38 = vmul.f32 0.03125, %v3136_v0  ;;  %v3207_v19 = vmul.f32 %v6869_v32, %v6869_v32 }
 0xd8f   :  { %v6875_v23 = vsub.f32 %v6769_v47, %v3179_v24  ;;  %v3233_v31 = vsel %vm307_vm8, %v3209_v8, 0.0  ;;  %v6881_v22 = vsub.f32 %v6776_v13, %v3176_v38  ;;  %v3227_v3 = vsel %vm307_vm8, %v3207_v19, 0.0 }
 0xd90   :  { %3234 = vadd.xlane.f32.xlu1 %v3233_v31  ;;  %v3151_v51 = vpop.xlane.xlu1 %3150  ;;  %v3142_v42 = vpop.xlane.xlu0 %3141 }
 0xd91   :  { %v3181_v41 = vmul.f32 0.03125, %v3151_v51  ;;  %v3178_v18 = vmul.f32 0.03125, %v3142_v42  ;;  %v3211_v58 = vmul.f32 %v6875_v23, %v6875_v23  ;;  %v3208_v9 = vmul.f32 %v6881_v22, %v6881_v22 }
 0xd93   :  { %v6886_v56 = vsub.f32 %v6783_v5, %v3181_v41  ;;  %v6889_v7 = vsub.f32 %v6790_v36, %v3178_v18  ;;  %v3239_v16 = vsel %vm307_vm8, %v3211_v58, 0.0  ;;  %v3230_v30 = vsel %vm307_vm8, %v3208_v9, 0.0 }
 0xd94   :  { %v3157_v43 = vpop.xlane.xlu1 %3156  ;;  %3228 = vadd.xlane.f32.xlu1 %v3227_v3  ;;  %v3148_v48 = vpop.xlane.xlu0 %3147 }
 0xd95   :  { %v3183_v17 = vmul.f32 0.03125, %v3157_v43  ;;  %v3180_v45 = vmul.f32 0.03125, %v3148_v48  ;;  %v3210_v50 = vmul.f32 %v6889_v7, %v6889_v7  ;;  %v3213_v11 = vmul.f32 %v6886_v56, %v6886_v56 }
 0xd97   :  { %v6898_v60 = vsub.f32 %v6802_v59, %v3183_v17  ;;  %v6901_v12 = vsub.f32 %v6797_v14, %v3180_v45  ;;  %v3236_v57 = vsel %vm307_vm8, %v3210_v50, 0.0  ;;  %v3245_v44 = vsel %vm307_vm8, %v3213_v11, 0.0  ;;  %v18_v11 = vld [vmem:[%s7165_s2 + $0x20] sm:$0xff] }
 0xd98   :  { %v3163_v62 = vpop.xlane.xlu1 %3162  ;;  %3240 = vadd.xlane.f32.xlu1 %v3239_v16  ;;  %3237 = vadd.xlane.f32.xlu0 %v3236_v57  ;;  %v3154_v61 = vpop.xlane.xlu0 %3153  ;;  %v5464_v57 = vld [vmem:[%s7165_s2 + $0x60] ss:$0 sm:$0xff] }
 0xd99   :  { %v3185_v1 = vmul.f32 0.03125, %v3163_v62  ;;  %v3182_v27 = vmul.f32 0.03125, %v3154_v61  ;;  %v3215_v15 = vmul.f32 %v6898_v60, %v6898_v60  ;;  %v3212_v54 = vmul.f32 %v6901_v12, %v6901_v12  ;;  %v19_v62 = vld [vmem:[%s7165_s2 + $0x28] sm:$0xff] }
 0xd9a   :  { %v5021_v61 = vpack.c.bf16 %v19_v62, %v18_v11 }
 0xd9b   :  { %v6910_v10 = vsub.f32 %v6816_v29, %v3185_v1  ;;  %v6913_v33 = vsub.f32 %v6811_v34, %v3182_v27  ;;  %v3251_v20 = vsel %vm307_vm8, %v3215_v15, 0.0  ;;  %v3242_v24 = vsel %vm307_vm8, %v3212_v54, 0.0  ;;  %v20_v1 = vld [vmem:[%s7165_s2 + $0x30] sm:$0xff]  ;;  %v21_v27 = vld [vmem:[%s7165_s2 + $0x38] sm:$0xff]  ;;  %v22_v15 = vld [vmem:[%s7165_s2 + $0x40] sm:$0xff] }
 0xd9c   :  { %v3169_v4 = vpop.xlane.xlu1 %3168  ;;  %3246 = vadd.xlane.f32.xlu1 %v3245_v44  ;;  %3231 = vadd.xlane.f32.xlu0 %v3230_v30  ;;  %v3160_v46 = vpop.xlane.xlu0 %3159  ;;  %v5025_v30 = vpack.c.bf16 %v21_v27, %v20_v1  ;;  %v23_v44 = vld [vmem:[%s7165_s2 + $0x48] sm:$0xff] }
 0xd9d   :  { %v3187_v39 = vmul.f32 0.03125, %v3169_v4  ;;  %v3184_v2 = vmul.f32 0.03125, %v3160_v46  ;;  %v3217_v52 = vmul.f32 %v6910_v10, %v6910_v10  ;;  %v3214_v8 = vmul.f32 %v6913_v33, %v6913_v33  ;;  %5022 = vmatprep.subr.bf16.mxu0 %v5021_v61 }
 0xd9e   :  { %5024 = vmatpush3.bf16.msra.mxu0 %v5021_v61  ;;  %v5029_v54 = vpack.c.bf16 %v23_v44, %v22_v15 }
 0xd9f   :  { %v6922_v21 = vsub.f32 %v6830_v53, %v3187_v39  ;;  %v6925_v0 = vsub.f32 %v6825_v35, %v3184_v2  ;;  %v3257_v19 = vsel %vm307_vm8, %v3217_v52, 0.0  ;;  %v3248_v42 = vsel %vm307_vm8, %v3214_v8, 0.0  ;;  %5026 = vmatprep.subr.bf16.mxu0 %v5025_v30 }
 0xda0   :  { %3252 = vadd.xlane.f32.xlu1 %v3251_v20  ;;  %3243 = vadd.xlane.f32.xlu0 %v3242_v24  ;;  %v3166_v38 = vpop.xlane.xlu0 %3165 }
 0xda1   :  { %v3186_v31 = vmul.f32 0.03125, %v3166_v38  ;;  %v3219_v41 = vmul.f32 %v6922_v21, %v6922_v21  ;;  %v3216_v18 = vmul.f32 %v6925_v0, %v6925_v0  ;;  %5030 = vmatprep.subr.bf16.mxu1 %v5029_v54 }
 0xda2   :  { %5028 = vmatpush3.bf16.msra.mxu0 %v5025_v30  ;;  %5032 = vmatpush3.bf16.xpose.msra.mxu1 %v5029_v54 }
 0xda3   :  { %v6932_v51 = vsub.f32 %v6839_v49, %v3186_v31  ;;  %v3263_v48 = vsel %vm307_vm8, %v3219_v41, 0.0  ;;  %v3254_v17 = vsel %vm307_vm8, %v3216_v18, 0.0 }
 0xda4   :  { %3258 = vadd.xlane.f32.xlu1 %v3257_v19  ;;  %3249 = vadd.xlane.f32.xlu0 %v3248_v42  ;;  %v3172_v58 = vpop.xlane.xlu0 %3171 }
 0xda5   :  { %v3188_v3 = vmul.f32 0.03125, %v3172_v58  ;;  %v3218_v45 = vmul.f32 %v6932_v51, %v6932_v51 }
 0xda7   :  { %v6940_v43 = vsub.f32 %v6848_v55, %v3188_v3  ;;  %v3260_v50 = vsel %vm307_vm8, %v3218_v45, 0.0 }
 0xda8   :  { %3264 = vadd.xlane.f32.xlu1 %v3263_v48  ;;  %3255 = vadd.xlane.f32.xlu0 %v3254_v17 }
 0xda9   :  { %v3220_v16 = vmul.f32 %v6940_v43, %v6940_v43 }
 0xdab   :  { %v3266_v9 = vsel %vm307_vm8, %v3220_v16, 0.0 }
 0xdac   :  { %3261 = vadd.xlane.f32.xlu0 %v3260_v50 }
 0xdb0   :  { %3267 = vadd.xlane.f32.xlu0 %v3266_v9 }
 0xdb9   :  { %3333 = vrot.lane.b32.xlu1 %v5464_v57, %s5468_s23 }
 0xdc6   :  { %3352 = vrot.lane.b32.xlu0 %v5464_v57, %s5474_s1 }
 0xe18   :  { %v3226_v39 = vpop.xlane.xlu0 %3225 }
 0xe19   :  { %v3223_v4 = vpop.xlane.xlu1 %3222  ;;  %v3270_v24 = vmul.f32 0.03125, %v3226_v39 }
 0xe1a   :  { %v3269_v8 = vmul.f32 0.03125, %v3223_v4 }
 0xe1b   :  { %v3286_v42 = vadd.f32 1e-05, %v3270_v24 }
 0xe1c   :  { %v3285_v18 = vadd.f32 1e-05, %v3269_v8 }
 0xe1d   :  { %v3235_v46 = vpop.xlane.xlu1 %3234  ;;  %5379 = vrsqrt.f32 %v3286_v42 }
 0xe1e   :  { %v3273_v17 = vmul.f32 0.03125, %v3235_v46  ;;  %5381 = vrsqrt.f32 %v3285_v18 }
 0xe20   :  { %v3289_v11 = vadd.f32 1e-05, %v3273_v17 }
 0xe21   :  { %v3229_v2 = vpop.xlane.xlu1 %3228 }
 0xe22   :  { %v3271_v19 = vmul.f32 0.03125, %v3229_v2 }
 0xe24   :  { %v3287_v48 = vadd.f32 1e-05, %v3271_v19 }
 0xe25   :  { %v3241_v20 = vpop.xlane.xlu1 %3240  ;;  %v3238_v52 = vpop.xlane.xlu0 %3237 }
 0xe26   :  { %v3274_v50 = vmul.f32 0.03125, %v3238_v52  ;;  %5383 = vrsqrt.f32 %v3287_v48  ;;  %v3275_v62 = vmul.f32 0.03125, %v3241_v20 }
 0xe27   :  { %v5380_v52 = vpop.eup %5379 }
 0xe28   :  { %v3290_v61 = vadd.f32 1e-05, %v3274_v50  ;;  %v3291_v44 = vadd.f32 1e-05, %v3275_v62  ;;  %v5382_v8 = vpop.eup %5381 }
 0xe29   :  { %v3247_v38 = vpop.xlane.xlu1 %3246  ;;  %v3232_v31 = vpop.xlane.xlu0 %3231  ;;  %v3317_v48 = vmul.f32 %v5382_v8, %v6858_v25 }
 0xe2a   :  { %v3272_v41 = vmul.f32 0.03125, %v3232_v31  ;;  %v3277_v1 = vmul.f32 0.03125, %v3247_v38 }
 0xe2c   :  { %v3288_v45 = vadd.f32 1e-05, %v3272_v41  ;;  %v3293_v46 = vadd.f32 1e-05, %v3277_v1 }
 0xe2d   :  { %v3253_v58 = vpop.xlane.xlu1 %3252  ;;  %v3244_v3 = vpop.xlane.xlu0 %3243 }
 0xe2e   :  { %v3276_v57 = vmul.f32 0.03125, %v3244_v3  ;;  %5385 = vrsqrt.f32 %v3288_v45  ;;  %v3279_v54 = vmul.f32 0.03125, %v3253_v58  ;;  %v3318_v58 = vmul.f32 %v5380_v52, %v6855_v28 }
 0xe2f   :  { %5387 = vrsqrt.f32 %v3289_v11 }
 0xe30   :  { %v3292_v30 = vadd.f32 1e-05, %v3276_v57  ;;  %5389 = vrsqrt.f32 %v3290_v61  ;;  %v3295_v20 = vadd.f32 1e-05, %v3279_v54  ;;  %v5384_v19 = vpop.eup %5383 }
 0xe31   :  { %v3259_v16 = vpop.xlane.xlu1 %3258  ;;  %v3250_v9 = vpop.xlane.xlu0 %3249  ;;  %v3319_v50 = vmul.f32 %v5384_v19, %v6869_v32 }
 0xe32   :  { %v3278_v15 = vmul.f32 0.03125, %v3250_v9  ;;  %5391 = vrsqrt.f32 %v3292_v30  ;;  %v3281_v31 = vmul.f32 0.03125, %v3259_v16 }
 0xe33   :  { %5393 = vrsqrt.f32 %v3291_v44 }
 0xe34   :  { %v3294_v24 = vadd.f32 1e-05, %v3278_v15  ;;  %5395 = vrsqrt.f32 %v3293_v46  ;;  %v3297_v17 = vadd.f32 1e-05, %v3281_v31 }
 0xe35   :  { %v3256_v27 = vpop.xlane.xlu0 %3255  ;;  %v3265_v4 = vpop.xlane.xlu1 %3264 }
 0xe36   :  { %v3280_v39 = vmul.f32 0.03125, %v3256_v27  ;;  %5397 = vrsqrt.f32 %v3294_v24  ;;  %v3283_v45 = vmul.f32 0.03125, %v3265_v4 }
 0xe37   :  { %5399 = vrsqrt.f32 %v3295_v20 }
 0xe38   :  { %v3296_v38 = vadd.f32 1e-05, %v3280_v39  ;;  %v5386_v18 = vpop.eup %5385  ;;  %v3299_v32 = vadd.f32 1e-05, %v3283_v45 }
 0xe39   :  { %v3262_v2 = vpop.xlane.xlu0 %3261  ;;  %v6973_v42 = vpop.permute.xlu1 %3333  ;;  %v3320_v28 = vmul.f32 %v5386_v18, %v6881_v22 }
 0xe3a   :  { %v3282_v3 = vmul.f32 0.03125, %v3262_v2  ;;  %v3336_v16 = vmul.f32 %v6973_v42, %v3317_v48  ;;  %v3337_v9 = vmul.f32 %v6973_v42, %v3318_v58  ;;  %v5388_v57 = vpop.eup %5387  ;;  %5401 = vrsqrt.f32 %v3296_v38 }
 0xe3b   :  { %v3338_v62 = vmul.f32 %v6973_v42, %v3319_v50  ;;  %v5390_v30 = vpop.eup %5389  ;;  %5403 = vrsqrt.f32 %v3297_v17  ;;  %v3321_v54 = vmul.f32 %v5388_v57, %v6866_v37  ;;  %v3339_v22 = vmul.f32 %v6973_v42, %v3320_v28 }
 0xe3c   :  { %v3298_v61 = vadd.f32 1e-05, %v3282_v3  ;;  %v5392_v15 = vpop.eup %5391  ;;  %v3322_v24 = vmul.f32 %v5390_v30, %v6889_v7 }
 0xe3d   :  { %v3268_v41 = vpop.xlane.xlu0 %3267  ;;  %v5394_v4 = vpop.eup %5393  ;;  %v3340_v39 = vmul.f32 %v6973_v42, %v3321_v54  ;;  %v3324_v8 = vmul.f32 %v5392_v15, %v6901_v12 }
 0xe3e   :  { %v3284_v1 = vmul.f32 0.03125, %v3268_v41  ;;  %5405 = vrsqrt.f32 %v3298_v61  ;;  %v5396_v2 = vpop.eup %5395  ;;  %v3323_v31 = vmul.f32 %v5394_v4, %v6875_v23  ;;  %v3341_v38 = vmul.f32 %v6973_v42, %v3322_v24 }
 0xe3f   :  { %5407 = vrsqrt.f32 %v3299_v32  ;;  %v3325_v18 = vmul.f32 %v5396_v2, %v6886_v56  ;;  %v3343_v58 = vmul.f32 %v6973_v42, %v3324_v8 }
 0xe40   :  { %v3300_v46 = vadd.f32 1e-05, %v3284_v1  ;;  %v5398_v37 = vpop.eup %5397  ;;  %v3342_v41 = vmul.f32 %v6973_v42, %v3323_v31 }
 0xe41   :  { %v6980_v11 = vpop.permute.xlu0 %3352  ;;  %v5400_v19 = vpop.eup %5399  ;;  %v3326_v3 = vmul.f32 %v5398_v37, %v6913_v33  ;;  %v3344_v45 = vmul.f32 %v6973_v42, %v3325_v18 }
 0xe42   :  { %v3355_v25 = vadd.f32 %v6980_v11, %v3336_v16  ;;  %v3356_v27 = vadd.f32 %v6980_v11, %v3337_v9  ;;  %v3357_v44 = vadd.f32 %v6980_v11, %v3338_v62  ;;  %v3358_v52 = vadd.f32 %v6980_v11, %v3339_v22  ;;  %v24_v22 = vld [vmem:[%s7165_s2 + $0x50] sm:$0xff] }
 0xe43   :  { %v3359_v20 = vadd.f32 %v6980_v11, %v3340_v39  ;;  %5409 = vrsqrt.f32 %v3300_v46  ;;  %v3360_v12 = vadd.f32 %v6980_v11, %v3341_v38  ;;  %v3361_v23 = vadd.f32 %v6980_v11, %v3342_v41  ;;  %v25_v46 = vld [vmem:[%s7165_s2 + $0x58] sm:$0xff] }
 0xe44   :  { %4701 = vmatprep.mubr.msk.f32.mxu0 %vm307_vm8, %v3355_v25  ;;  %v5402_v7 = vpop.eup %5401  ;;  %v3327_v48 = vmul.f32 %v5400_v19, %v6898_v60  ;;  %v3362_v56 = vadd.f32 %v6980_v11, %v3343_v58  ;;  %v3345_v50 = vmul.f32 %v6973_v42, %v3326_v3  ;;  %v3363_v33 = vadd.f32 %v6980_v11, %v3344_v45 }
 0xe45   :  { %4702 = vmatmul.mubr.msk.f32.vlgmr.msra.gmra.mrb[60].mxu0 %vm307_vm8, %v3356_v27  ;;  %v5404_v17 = vpop.eup %5403  ;;  %v3328_v16 = vmul.f32 %v5402_v7, %v6925_v0  ;;  %v5033_v39 = vpack.c.bf16 %v25_v46, %v24_v22 }
 0xe46   :  { %4704 = vmatprep.mubr.msk.f32.mxu0 %vm307_vm8, %v3357_v44  ;;  %v3346_v57 = vmul.f32 %v6973_v42, %v3327_v48  ;;  %v3329_v60 = vmul.f32 %v5404_v17, %v6910_v10  ;;  %v3364_v28 = vadd.f32 %v6980_v11, %v3345_v50 }
 0xe47   :  { %v3347_v61 = vmul.f32 %v6973_v42, %v3328_v16  ;;  %5034 = vmatprep.subr.bf16.mxu1 %v5033_v39 }
 0xe48   :  { %v5406_v9 = vpop.eup %5405  ;;  %v3365_v0 = vadd.f32 %v6980_v11, %v3346_v57  ;;  %v3348_v27 = vmul.f32 %v6973_v42, %v3329_v60  ;;  %5036 = vmatpush3.bf16.xpose.msra.mxu1 %v5033_v39 }
 0xe49   :  { %4705 = vmatmul.mubr.msk.f32.gmra.mrb[62].mxu0 %vm307_vm8, %v3358_v52  ;;  %v5408_v62 = vpop.eup %5407  ;;  %v3330_v1 = vmul.f32 %v5406_v9, %v6932_v51  ;;  %v3366_v10 = vadd.f32 %v6980_v11, %v3347_v61 }
 0xe4a   :  { %4707 = vmatprep.mubr.msk.f32.mxu0 %vm307_vm8, %v3359_v20  ;;  %v3331_v30 = vmul.f32 %v5408_v62, %v6922_v21  ;;  %v3367_v44 = vadd.f32 %v6980_v11, %v3348_v27 }
 0xe4b   :  { %v3349_v32 = vmul.f32 %v6973_v42, %v3330_v1 }
 0xe4c   :  { %v3350_v51 = vmul.f32 %v6973_v42, %v3331_v30 }
 0xe4d   :  { %4708 = vmatmul.mubr.msk.f32.gmra.mrb[64].mxu0 %vm307_vm8, %v3360_v12  ;;  %v5410_v25 = vpop.eup %5409  ;;  %v3368_v21 = vadd.f32 %v6980_v11, %v3349_v32 }
 0xe4e   :  { %4710 = vmatprep.mubr.msk.f32.mxu0 %vm307_vm8, %v3361_v23  ;;  %v3332_v15 = vmul.f32 %v5410_v25, %v6940_v43  ;;  %v3369_v4 = vadd.f32 %v6980_v11, %v3350_v51 }
 0xe50   :  { %v3351_v54 = vmul.f32 %v6973_v42, %v3332_v15  ;;  %v7050_v42 = vld [vmem:[%s7165_s2 + $0x62] ss:$0 sm:$0xff] }
 0xe51   :  { %4711 = vmatmul.mubr.msk.f32.gmra.mrb[66].mxu0 %vm307_vm8, %v3362_v56 }
 0xe52   :  { %4713 = vmatprep.mubr.msk.f32.mxu0 %vm307_vm8, %v3363_v33  ;;  %v3370_v43 = vadd.f32 %v6980_v11, %v3351_v54 }
 0xe55   :  { %4714 = vmatmul.mubr.msk.f32.gmra.mrb[68].mxu0 %vm307_vm8, %v3364_v28 }
 0xe56   :  { %4716 = vmatprep.mubr.msk.f32.mxu0 %vm307_vm8, %v3365_v0 }
 0xe59   :  { %4717 = vmatmul.mubr.msk.f32.gmra.mrb[70].mxu0 %vm307_vm8, %v3366_v10 }
 0xe5a   :  { %4719 = vmatprep.mubr.msk.f32.mxu0 %vm307_vm8, %v3367_v44 }
 0xe5d   :  { %4720 = vmatmul.mubr.msk.f32.gmra.mrb[72].mxu0 %vm307_vm8, %v3368_v21 }
 0xe5e   :  { %4722 = vmatprep.mubr.msk.f32.mxu0 %vm307_vm8, %v3369_v4 }
 0xe61   :  { %4723 = vmatmul.mubr.msk.f32.gmra.mrb[74].mxu0 %vm307_vm8, %v3370_v43 }
 0xf18   :  { %v4703_v2 = vpop.f32.mrb[60].mxu0 }
 0xf19   :  { %v3495_v11 = vadd.f32 %v4703_v2, %v7050_v42  ;;  %v3489_v52 = vpop.f32.mrb[61].mxu0 }
 0xf1a   :  { %v3490_v24 = vadd.f32 %v7050_v42, %v3489_v52 }
 0xf1b   :  { %v3585_v8 = vmul.f32 0.70710677, %v3495_v11  ;;  %v3569_v0 = vmul.f32 0.5, %v3495_v11 }
 0xf1c   :  { %v3584_v37 = vmul.f32 0.70710677, %v3490_v24  ;;  %v4706_v20 = vpop.f32.mrb[62].mxu0  ;;  %v3568_v28 = vmul.f32 0.5, %v3490_v24 }
 0xf1d   :  { %5411 = verf.f32 %v3585_v8  ;;  %v3505_v31 = vadd.f32 %v4706_v20, %v7050_v42  ;;  %v3499_v19 = vpop.f32.mrb[63].mxu0 }
 0xf1e   :  { %5413 = verf.f32 %v3584_v37  ;;  %v3500_v38 = vadd.f32 %v7050_v42, %v3499_v19 }
 0xf1f   :  { %v3587_v41 = vmul.f32 0.70710677, %v3505_v31  ;;  %v3571_v39 = vmul.f32 0.5, %v3505_v31 }
 0xf20   :  { %v3586_v18 = vmul.f32 0.70710677, %v3500_v38  ;;  %v4709_v7 = vpop.f32.mrb[64].mxu0  ;;  %v3570_v4 = vmul.f32 0.5, %v3500_v38 }
 0xf21   :  { %5415 = verf.f32 %v3587_v41  ;;  %v3515_v12 = vadd.f32 %v4709_v7, %v7050_v42  ;;  %v3509_v58 = vpop.f32.mrb[65].mxu0 }
 0xf22   :  { %5417 = verf.f32 %v3586_v18  ;;  %v3510_v3 = vadd.f32 %v7050_v42, %v3509_v58 }
 0xf23   :  { %v3589_v23 = vmul.f32 0.70710677, %v3515_v12  ;;  %v3573_v31 = vmul.f32 0.5, %v3515_v12 }
 0xf24   :  { %v3588_v48 = vmul.f32 0.70710677, %v3510_v3  ;;  %v4712_v17 = vpop.f32.mrb[66].mxu0  ;;  %v3572_v41 = vmul.f32 0.5, %v3510_v3 }
 0xf25   :  { %5419 = verf.f32 %v3589_v23  ;;  %v7059_v45 = vadd.f32 %v4712_v17, %v7050_v42  ;;  %v3519_v56 = vpop.f32.mrb[67].mxu0 }
 0xf26   :  { %5421 = verf.f32 %v3588_v48  ;;  %v3520_v50 = vadd.f32 %v7050_v42, %v3519_v56 }
 0xf27   :  { %v5412_v16 = vpop.eup %5411  ;;  %v3591_v9 = vmul.f32 0.70710677, %v7059_v45  ;;  %v3575_v12 = vmul.f32 0.5, %v7059_v45 }
 0xf28   :  { %v5414_v33 = vpop.eup %5413  ;;  %v3617_v57 = vadd.f32 1.0, %v5412_v16  ;;  %v3590_v60 = vmul.f32 0.70710677, %v3520_v50  ;;  %v4715_v62 = vpop.f32.mrb[68].mxu0  ;;  %v3574_v3 = vmul.f32 0.5, %v3520_v50 }
 0xf29   :  { %v3616_v61 = vadd.f32 1.0, %v5414_v33  ;;  %5423 = verf.f32 %v3591_v9  ;;  %v7064_v1 = vadd.f32 %v4715_v62, %v7050_v42  ;;  %v3529_v25 = vpop.f32.mrb[69].mxu0 }
 0xf2a   :  { %5425 = verf.f32 %v3590_v60  ;;  %v3530_v27 = vadd.f32 %v7050_v42, %v3529_v25  ;;  %v3633_v44 = vmul.f32 %v3617_v57, %v3569_v0 }
 0xf2b   :  { %v5416_v30 = vpop.eup %5415  ;;  %v3593_v10 = vmul.f32 0.70710677, %v7064_v1  ;;  %v3632_v32 = vmul.f32 %v3616_v61, %v3568_v28 }
 0xf2c   :  { %v5418_v15 = vpop.eup %5417  ;;  %v3619_v51 = vadd.f32 1.0, %v5416_v30  ;;  %v3592_v21 = vmul.f32 0.70710677, %v3530_v27  ;;  %v4718_v54 = vpop.f32.mrb[70].mxu0  ;;  %v3576_v50 = vmul.f32 0.5, %v3530_v27 }
 0xf2d   :  { %v3618_v43 = vadd.f32 1.0, %v5418_v15  ;;  %5427 = verf.f32 %v3593_v10  ;;  %v7069_v22 = vadd.f32 %v4718_v54, %v7050_v42  ;;  %v3539_v46 = vpop.f32.mrb[71].mxu0  ;;  %4733 = vmatprep.mubr.f32.mxu1 %v3632_v32  ;;  %v3577_v54 = vmul.f32 0.5, %v7064_v1 }
 0xf2e   :  { %5429 = verf.f32 %v3592_v21  ;;  %v3540_v2 = vadd.f32 %v7050_v42, %v3539_v46  ;;  %4734 = vmatmul.mubr.f32.vlgmr.msra.gmra.mrb[60].mxu1 %v3633_v44  ;;  %v3635_v38 = vmul.f32 %v3619_v51, %v3571_v39 }
 0xf2f   :  { %v5420_v11 = vpop.eup %5419  ;;  %v3595_v52 = vmul.f32 0.70710677, %v7069_v22  ;;  %v3634_v24 = vmul.f32 %v3618_v43, %v3570_v4 }
 0xf30   :  { %v5422_v8 = vpop.eup %5421  ;;  %v3621_v37 = vadd.f32 1.0, %v5420_v11  ;;  %v3594_v20 = vmul.f32 0.70710677, %v3540_v2  ;;  %v4721_v19 = vpop.f32.mrb[72].mxu0  ;;  %v3578_v39 = vmul.f32 0.5, %v3540_v2 }
 0xf31   :  { %v3620_v18 = vadd.f32 1.0, %v5422_v8  ;;  %5431 = verf.f32 %v3595_v52  ;;  %v3555_v7 = vadd.f32 %v4721_v19, %v7050_v42  ;;  %v3549_v58 = vpop.f32.mrb[73].mxu0  ;;  %4736 = vmatprep.mubr.f32.mxu1 %v3634_v24  ;;  %v3579_v52 = vmul.f32 0.5, %v7069_v22 }
 0xf32   :  { %5433 = verf.f32 %v3594_v20  ;;  %v3550_v23 = vadd.f32 %v7050_v42, %v3549_v58  ;;  %4737 = vmatmul.mubr.f32.gmra.mrb[62].mxu1 %v3635_v38  ;;  %v3637_v60 = vmul.f32 %v3621_v37, %v3573_v31 }
 0xf33   :  { %v5424_v48 = vpop.eup %5423  ;;  %v3597_v17 = vmul.f32 0.70710677, %v3555_v7  ;;  %v3636_v56 = vmul.f32 %v3620_v18, %v3572_v41  ;;  %v3581_v38 = vmul.f32 0.5, %v3555_v7 }
 0xf34   :  { %v5426_v16 = vpop.eup %5425  ;;  %v3623_v9 = vadd.f32 1.0, %v5424_v48  ;;  %v3596_v33 = vmul.f32 0.70710677, %v3550_v23  ;;  %v4724_v57 = vpop.f32.mrb[74].mxu0  ;;  %v3580_v19 = vmul.f32 0.5, %v3550_v23 }
 0xf35   :  { %v3622_v62 = vadd.f32 1.0, %v5426_v16  ;;  %5435 = verf.f32 %v3597_v17  ;;  %v3565_v28 = vadd.f32 %v4724_v57, %v7050_v42  ;;  %v3559_v61 = vpop.f32.mrb[75].mxu0  ;;  %4739 = vmatprep.mubr.f32.mxu1 %v3636_v56  ;;  %v4004_v23 = vld [vmem:[%s7165_s2 + $0x63] ss:$0 sm:$0xff] }
 0xf36   :  { %5437 = verf.f32 %v3596_v33  ;;  %v3560_v25 = vadd.f32 %v7050_v42, %v3559_v61  ;;  %4740 = vmatmul.mubr.f32.gmra.mrb[64].mxu1 %v3637_v60  ;;  %v3639_v51 = vmul.f32 %v3623_v9, %v3575_v12 }
 0xf37   :  { %v5428_v0 = vpop.eup %5427  ;;  %v3599_v30 = vmul.f32 0.70710677, %v3565_v28  ;;  %v3638_v10 = vmul.f32 %v3622_v62, %v3574_v3  ;;  %v3583_v22 = vmul.f32 0.5, %v3565_v28 }
 0xf38   :  { %v5430_v32 = vpop.eup %5429  ;;  %v3625_v15 = vadd.f32 1.0, %v5428_v0  ;;  %v3598_v44 = vmul.f32 0.70710677, %v3560_v25  ;;  %v3582_v48 = vmul.f32 0.5, %v3560_v25 }
 0xf39   :  { %v3624_v21 = vadd.f32 1.0, %v5430_v32  ;;  %5439 = verf.f32 %v3599_v30  ;;  %4742 = vmatprep.mubr.f32.mxu1 %v3638_v10 }
 0xf3a   :  { %5441 = verf.f32 %v3598_v44  ;;  %4743 = vmatmul.mubr.f32.gmra.mrb[66].mxu1 %v3639_v51  ;;  %v3641_v46 = vmul.f32 %v3625_v15, %v3577_v54 }
 0xf3b   :  { %v5432_v45 = vpop.eup %5431  ;;  %v3640_v4 = vmul.f32 %v3624_v21, %v3576_v50 }
 0xf3c   :  { %v5434_v43 = vpop.eup %5433  ;;  %v3627_v42 = vadd.f32 1.0, %v5432_v45 }
 0xf3d   :  { %v3626_v11 = vadd.f32 1.0, %v5434_v43  ;;  %4745 = vmatprep.mubr.f32.mxu1 %v3640_v4 }
 0xf3e   :  { %4746 = vmatmul.mubr.f32.gmra.mrb[68].mxu1 %v3641_v46  ;;  %v3643_v20 = vmul.f32 %v3627_v42, %v3579_v52 }
 0xf3f   :  { %v5436_v24 = vpop.eup %5435  ;;  %v3642_v27 = vmul.f32 %v3626_v11, %v3578_v39 }
 0xf40   :  { %v5438_v8 = vpop.eup %5437  ;;  %v3629_v37 = vadd.f32 1.0, %v5436_v24 }
 0xf41   :  { %v3628_v1 = vadd.f32 1.0, %v5438_v8  ;;  %4748 = vmatprep.mubr.f32.mxu1 %v3642_v27 }
 0xf42   :  { %4749 = vmatmul.mubr.f32.gmra.mrb[70].mxu1 %v3643_v20  ;;  %v3645_v2 = vmul.f32 %v3629_v37, %v3581_v38 }
 0xf43   :  { %v5440_v41 = vpop.eup %5439  ;;  %v3644_v18 = vmul.f32 %v3628_v1, %v3580_v19 }
 0xf44   :  { %v5442_v58 = vpop.eup %5441  ;;  %v3631_v31 = vadd.f32 1.0, %v5440_v41 }
 0xf45   :  { %v3630_v17 = vadd.f32 1.0, %v5442_v58  ;;  %4751 = vmatprep.mubr.f32.mxu1 %v3644_v18 }
 0xf46   :  { %4752 = vmatmul.mubr.f32.gmra.mrb[72].mxu1 %v3645_v2  ;;  %v3647_v16 = vmul.f32 %v3631_v31, %v3583_v22 }
 0xf47   :  { %v3646_v56 = vmul.f32 %v3630_v17, %v3582_v48 }
 0xf49   :  { %4754 = vmatprep.mubr.f32.mxu1 %v3646_v56 }
 0xf4a   :  { %4755 = vmatmul.mubr.f32.gmra.mrb[74].mxu1 %v3647_v16 }
0x1001   :  { %v4735_v7 = vpop.f32.mrb[60].mxu1 }
0x1002   :  { %v3724_v9 = vadd.f32 %v4735_v7, %v4004_v23  ;;  %v3718_v33 = vpop.f32.mrb[61].mxu1 }
0x1003   :  { %v3719_v57 = vadd.f32 %v4004_v23, %v3718_v33 }
0x1004   :  { %v3798_v60 = vadd.f32 %v3724_v9, %v6745_v26 }
0x1005   :  { %v3797_v3 = vadd.f32 %v3719_v57, %v6750_v63  ;;  %v4738_v62 = vpop.f32.mrb[62].mxu1 }
0x1006   :  { %3814 = vst.msk [vmem:[%s7166_s3 + $0x8] sm:$0xff] %vm307_vm8, %v3798_v60  ;;  %v3734_v28 = vadd.f32 %v4738_v62, %v4004_v23  ;;  %v3728_v61 = vpop.f32.mrb[63].mxu1 }
0x1007   :  { %3813 = vst.msk [vmem:[%s7166_s3] sm:$0xff] %vm307_vm8, %v3797_v3  ;;  %v3729_v12 = vadd.f32 %v4004_v23, %v3728_v61 }
0x1008   :  { %v3800_v25 = vadd.f32 %v3734_v28, %v6776_v13 }
0x1009   :  { %v3799_v26 = vadd.f32 %v3729_v12, %v6764_v6  ;;  %v4741_v0 = vpop.f32.mrb[64].mxu1 }
0x100a   :  { %3816 = vst.msk [vmem:[%s7166_s3 + $0x18] sm:$0xff] %vm307_vm8, %v3800_v25  ;;  %v3744_v63 = vadd.f32 %v4741_v0, %v4004_v23  ;;  %v3738_v30 = vpop.f32.mrb[65].mxu1 }
0x100b   :  { %3815 = vst.msk [vmem:[%s7166_s3 + $0x10] sm:$0xff] %vm307_vm8, %v3799_v26  ;;  %v3739_v10 = vadd.f32 %v4004_v23, %v3738_v30 }
0x100c   :  { %v3802_v32 = vadd.f32 %v3744_v63, %v6790_v36 }
0x100d   :  { %v3801_v13 = vadd.f32 %v3739_v10, %v6755_v40  ;;  %v4744_v15 = vpop.f32.mrb[66].mxu1 }
0x100e   :  { %3818 = vst.msk [vmem:[%s7166_s3 + $0x28] sm:$0xff] %vm307_vm8, %v3802_v32  ;;  %v3754_v6 = vadd.f32 %v4744_v15, %v4004_v23  ;;  %v3748_v44 = vpop.f32.mrb[67].mxu1 }
0x100f   :  { %3817 = vst.msk [vmem:[%s7166_s3 + $0x20] sm:$0xff] %vm307_vm8, %v3801_v13  ;;  %v3749_v51 = vadd.f32 %v4004_v23, %v3748_v44 }
0x1010   :  { %v3804_v50 = vadd.f32 %v3754_v6, %v6797_v14 }
0x1011   :  { %v3803_v36 = vadd.f32 %v3749_v51, %v6769_v47  ;;  %v4747_v21 = vpop.f32.mrb[68].mxu1 }
0x1012   :  { %3820 = vst.msk [vmem:[%s7166_s3 + $0x38] sm:$0xff] %vm307_vm8, %v3804_v50  ;;  %v3764_v40 = vadd.f32 %v4747_v21, %v4004_v23  ;;  %v3758_v54 = vpop.f32.mrb[69].mxu1 }
0x1013   :  { %3819 = vst.msk [vmem:[%s7166_s3 + $0x30] sm:$0xff] %vm307_vm8, %v3803_v36  ;;  %v3759_v45 = vadd.f32 %v4004_v23, %v3758_v54 }
0x1014   :  { %v3806_v4 = vadd.f32 %v3764_v40, %v6811_v34 }
0x1015   :  { %v3805_v14 = vadd.f32 %v3759_v45, %v6783_v5  ;;  %v4750_v43 = vpop.f32.mrb[70].mxu1 }
0x1016   :  { %3822 = vst.msk [vmem:[%s7166_s3 + $0x48] sm:$0xff] %vm307_vm8, %v3806_v4  ;;  %v3774_v47 = vadd.f32 %v4750_v43, %v4004_v23  ;;  %v3768_v42 = vpop.f32.mrb[71].mxu1 }
0x1017   :  { %3821 = vst.msk [vmem:[%s7166_s3 + $0x40] sm:$0xff] %vm307_vm8, %v3805_v14  ;;  %v3769_v46 = vadd.f32 %v4004_v23, %v3768_v42 }
0x1018   :  { %v3808_v39 = vadd.f32 %v3774_v47, %v6825_v35 }
0x1019   :  { %v3807_v34 = vadd.f32 %v3769_v46, %v6802_v59  ;;  %v4753_v11 = vpop.f32.mrb[72].mxu1 }
0x101a   :  { %3824 = vst.msk [vmem:[%s7166_s3 + $0x58] sm:$0xff] %vm307_vm8, %v3808_v39  ;;  %v3784_v5 = vadd.f32 %v4753_v11, %v4004_v23  ;;  %v3778_v52 = vpop.f32.mrb[73].mxu1 }
0x101b   :  { %3823 = vst.msk [vmem:[%s7166_s3 + $0x50] sm:$0xff] %vm307_vm8, %v3807_v34  ;;  %v3779_v24 = vadd.f32 %v4004_v23, %v3778_v52 }
0x101c   :  { %v3810_v27 = vadd.f32 %v3784_v5, %v6839_v49 }
0x101d   :  { %v3809_v35 = vadd.f32 %v3779_v24, %v6816_v29  ;;  %v4756_v8 = vpop.f32.mrb[74].mxu1 }
0x101e   :  { %3826 = vst.msk [vmem:[%s7166_s3 + $0x68] sm:$0xff] %vm307_vm8, %v3810_v27  ;;  %v3794_v59 = vadd.f32 %v4756_v8, %v4004_v23  ;;  %v3788_v37 = vpop.f32.mrb[75].mxu1 }
0x101f   :  { %3825 = vst.msk [vmem:[%s7166_s3 + $0x60] sm:$0xff] %vm307_vm8, %v3809_v35  ;;  %v3789_v20 = vadd.f32 %v4004_v23, %v3788_v37 }
0x1020   :  { %v3812_v19 = vadd.f32 %v3794_v59, %v6848_v55 }
0x1021   :  { %v3811_v49 = vadd.f32 %v3789_v20, %v6830_v53 }
0x1022   :  { %3828 = vst.msk [vmem:[%s7166_s3 + $0x78] sm:$0xff] %vm307_vm8, %v3812_v19 }
0x1023   :  { %3827 = vst.msk [vmem:[%s7166_s3 + $0x70] sm:$0xff] %vm307_vm8, %v3811_v49 }

</bundles_post_ra>
